<compile_context>
chip_gen: v7x
topology: tpu7x:2x2x1
jax: 0.10.0
libtpu: 0.0.40
codegen_flags: <defaults>
</compile_context>

<pallas_src>
import functools
import math

import jax
import jax.numpy as jnp
from jax import lax
from jax.experimental import pallas as pl
from jax.experimental.pallas import tpu as pltpu

EPS_LN = 1e-12            # nn.LayerNorm(size, eps=1e-12)
EPS_BN = 1e-5             # nn.BatchNorm1d default eps
_VMEM_LIMIT = 48 * 1024 * 1024   # < v7x 64 MiB physical, > 32 MiB default scoped limit


def _layer_norm(x, gamma, beta):
    mu = jnp.mean(x, axis=-1, keepdims=True)
    var = jnp.mean((x - mu) ** 2, axis=-1, keepdims=True)
    return (x - mu) * lax.rsqrt(var + EPS_LN) * gamma + beta


def _bf16(x):
    return x.astype(jnp.bfloat16)


# --------------------------------------------------------------------------------------
# Kernel A: fused macaron feed-forward + chunk-local multi-head self-attention.
# One grid step processes G chunks:  (G, chunk, C) in -> (G, chunk, C) out.
# --------------------------------------------------------------------------------------
def _ffn_mha_kernel(x_ref, mrow_ref, mcol_ref,
                    gmac_ref, bmac_ref, mw1_ref, mb1_ref, mw2_ref, mb2_ref,
                    gmha_ref, bmha_ref,
                    wq_ref, bq_ref, wk_ref, bk_ref, wv_ref, bv_ref, wo_ref, bo_ref,
                    o_ref, *, num_heads, d_head, ff_scale):
    g, chunk, c = x_ref.shape
    n = g * chunk
    x = x_ref[...].reshape(n, c)                                  # (N, C) f32

    # ---- macaron FFN: x = x + 0.5 * (W2 relu(W1 LN(x) + b1) + b2) ----
    xn = _layer_norm(x, gmac_ref[...], bmac_ref[...])
    h = jnp.dot(_bf16(xn), mw1_ref[...], preferred_element_type=jnp.float32) + mb1_ref[...]
    h = jnp.maximum(h, 0.0)                                       # ReLU
    y = jnp.dot(_bf16(h), mw2_ref[...], preferred_element_type=jnp.float32) + mb2_ref[...]
    x = x + ff_scale * y                                          # dropout = identity (eval)

    # ---- chunk-local MHSA ----
    xn = _layer_norm(x, gmha_ref[...], bmha_ref[...])             # norm_mha
    xb = _bf16(xn)
    q = jnp.dot(xb, wq_ref[...], preferred_element_type=jnp.float32) + bq_ref[...]
    k = jnp.dot(xb, wk_ref[...], preferred_element_type=jnp.float32) + bk_ref[...]
    v = jnp.dot(xb, wv_ref[...], preferred_element_type=jnp.float32) + bv_ref[...]
    q3 = q.reshape(g, chunk, c)
    k3 = k.reshape(g, chunk, c)
    v3 = v.reshape(g, chunk, c)

    keymask = mrow_ref[...] > 0.5                                 # (G, 1, chunk) key padding
    scale = 1.0 / math.sqrt(d_head)
    neg = jnp.finfo(jnp.float32).min
    heads = []
    # Static head loop; each head is one G-batched einsum (single batch dim), which keeps the
    # per-matmul work G*chunk rows instead of one tiny 2-D dot per (chunk, head).
    for hh in range(num_heads):
        lo = hh * d_head
        qh = _bf16(q3[..., lo:lo + d_head])
        kh = _bf16(k3[..., lo:lo + d_head])
        vh = _bf16(v3[..., lo:lo + d_head])
        s = jnp.einsum('gqd,gkd->gqk', qh, kh,
                       preferred_element_type=jnp.float32) * scale
        s = jnp.where(keymask, s, neg)                            # masked_fill(-inf)
        p = jax.nn.softmax(s, axis=-1)
        p = jnp.where(keymask, p, 0.0)                            # masked_fill(0.0)
        heads.append(jnp.einsum('gqk,gkd->gqd', _bf16(p), vh,
                                preferred_element_type=jnp.float32))
    att = jnp.concatenate(heads, axis=-1).reshape(n, c)
    att = jnp.dot(_bf16(att), wo_ref[...], preferred_element_type=jnp.float32) + bo_ref[...]
    att = att * mcol_ref[...].reshape(n, 1)                       # x *= mask.unsqueeze(-1)
    o_ref[...] = (x + att).reshape(g, chunk, c)                   # residual + dropout(x_att)


# --------------------------------------------------------------------------------------
# Kernel B: fused convolution module + final feed-forward + norm_final.
# One grid step = one batch element: (T, C) slab.
# --------------------------------------------------------------------------------------
def _conv_ffn_kernel(x_ref, m_ref,
                     gconv_ref, bconv_ref, pw1_ref, pb1_ref, dw_ref, dwb_ref,
                     bng_ref, bnb_ref, bnm_ref, bnv_ref, pw2_ref, pb2_ref,
                     gff_ref, bff_ref, fw1_ref, fb1_ref, fw2_ref, fb2_ref,
                     gfin_ref, bfin_ref, o_ref, *, kernel_size, ff_scale):
    x = x_ref[0]                                                  # (T, C)
    m = m_ref[0]                                                  # (T, 1)
    t, c = x.shape

    # ---- conv module: x = x + PW2(Swish(BN(DWConv(GLU(PW1(m * LN(x))))))) * m ----
    xn = _layer_norm(x, gconv_ref[...], bconv_ref[...]) * m       # norm_conv + masked_fill
    y = jnp.dot(_bf16(xn), pw1_ref[...], preferred_element_type=jnp.float32) + pb1_ref[...]
    y = y[:, :c] * jax.nn.sigmoid(y[:, c:])                       # GLU over channel dim

    pad = (kernel_size - 1) // 2
    row = lax.broadcasted_iota(jnp.int32, (t, 1), 0)
    wdw = dw_ref[...]                                             # (K, C) f32 (VPU work)
    acc = jnp.zeros((t, c), jnp.float32)
    for kk in range(kernel_size):                                 # 'same' depthwise conv
        off = kk - pad
        shifted = y if off == 0 else pltpu.roll(y, shift=(-off) % t, axis=0)
        valid = jnp.logical_and(row + off >= 0, row + off < t)    # zero wrapped rows
        acc = acc + jnp.where(valid, shifted, 0.0) * wdw[kk:kk + 1, :]
    acc = acc + dwb_ref[...]

    z = (acc - bnm_ref[...]) * lax.rsqrt(bnv_ref[...] + EPS_BN) * bng_ref[...] + bnb_ref[...]
    z = z * jax.nn.sigmoid(z)                                     # Swish
    z = jnp.dot(_bf16(z), pw2_ref[...], preferred_element_type=jnp.float32) + pb2_ref[...]
    z = z * m                                                     # trailing masked_fill
    x = x + z                                                     # residual + dropout

    # ---- final FFN + norm_final ----
    xn = _layer_norm(x, gff_ref[...], bff_ref[...])               # norm_ff
    h = jnp.dot(_bf16(xn), fw1_ref[...], preferred_element_type=jnp.float32) + fb1_ref[...]
    h = jnp.maximum(h, 0.0)
    y2 = jnp.dot(_bf16(h), fw2_ref[...], preferred_element_type=jnp.float32) + fb2_ref[...]
    x = x + ff_scale * y2
    o_ref[0] = _layer_norm(x, gfin_ref[...], bfin_ref[...])       # norm_final


# --------------------------------------------------------------------------------------
# Host-side wrapper.
# --------------------------------------------------------------------------------------
def _full2d(shape):
    return pl.BlockSpec(shape, lambda i: (0, 0))


def _pick_chunk_group(n_ck, chunk, target_rows=512):
    """Largest divisor g of n_ck with g*chunk <= target_rows, keeping >=2 grid steps."""
    best = 1
    for g in range(1, n_ck + 1):
        if n_ck % g != 0 or g * chunk > target_rows:
            continue
        if n_ck // g < 2 and n_ck >= 2:
            continue
        best = g
    return best


def schunk_conformer_encoder_layer(x, mask, pos_emb, mask_pad, p,
                                   *, chunk_size, num_heads, kernel_size):
    """x: (B,T,C) f32; mask: (B,T,T) bool (unused w/o output_cache);
       pos_emb: unused by this forward; mask_pad: (B,1,T) bool."""
    del mask, pos_emb
    B, T, C = x.shape
    assert T % chunk_size == 0, "T must be divisible by chunk_size"
    assert C % num_heads == 0
    ff_scale = 0.5                                   # macaron FFN present
    hidden = p["mac_w1"].shape[1]
    d_head = C // num_heads
    bf = lambda name: p[name].astype(jnp.bfloat16)   # bf16 copies for MXU weights

    # ---------------- kernel A: macaron FFN + chunked MHSA ----------------
    n_chunks = T // chunk_size
    n_ck = B * n_chunks
    G = _pick_chunk_group(n_ck, chunk_size)
    x_chunks = x.reshape(n_ck, chunk_size, C)        # shift_size == 0: pure reshape
    mpad = mask_pad.astype(jnp.float32).reshape(B, T)
    m_chunks = mpad.reshape(n_ck, chunk_size)
    mrow = m_chunks[:, None, :]                      # (n_ck, 1, chunk)  key padding mask
    mcol = m_chunks[:, :, None]                      # (n_ck, chunk, 1)  time padding mask

    kern_a = functools.partial(_ffn_mha_kernel, num_heads=num_heads,
                               d_head=d_head, ff_scale=ff_scale)
    grp3 = lambda shape: pl.BlockSpec(shape, lambda i: (i, 0, 0))
    att = pl.pallas_call(
        kern_a,
        out_shape=jax.ShapeDtypeStruct((n_ck, chunk_size, C), jnp.float32),
        grid=(n_ck // G,),
        in_specs=[
            grp3((G, chunk_size, C)),
            grp3((G, 1, chunk_size)),
            grp3((G, chunk_size, 1)),
            _full2d((1, C)), _full2d((1, C)),              # norm_ff_macaron
            _full2d((C, hidden)), _full2d((1, hidden)),    # macaron w1/b1
            _full2d((hidden, C)), _full2d((1, C)),         # macaron w2/b2
            _full2d((1, C)), _full2d((1, C)),              # norm_mha
            _full2d((C, C)), _full2d((1, C)),              # wq/bq
            _full2d((C, C)), _full2d((1, C)),              # wk/bk
            _full2d((C, C)), _full2d((1, C)),              # wv/bv
            _full2d((C, C)), _full2d((1, C)),              # wo/bo
        ],
        out_specs=grp3((G, chunk_size, C)),
        compiler_params=pltpu.CompilerParams(
            dimension_semantics=("parallel",),
            vmem_limit_bytes=_VMEM_LIMIT),
    )(x_chunks, mrow, mcol,
      p["ln_mac_g"], p["ln_mac_b"], bf("mac_w1"), p["mac_b1"], bf("mac_w2"), p["mac_b2"],
      p["ln_mha_g"], p["ln_mha_b"],
      bf("wq"), p["bq"], bf("wk"), p["bk"], bf("wv"), p["bv"], bf("wo"), p["bo"])
    x = att.reshape(B, T, C)                         # chunk_reverse

    # ------------- kernel B: conv module + final FFN + norm_final -------------
    kern_b = functools.partial(_conv_ffn_kernel, kernel_size=kernel_size, ff_scale=ff_scale)
    mcol_full = mpad.reshape(B, T, 1)
    x = pl.pallas_call(
        kern_b,
        out_shape=jax.ShapeDtypeStruct((B, T, C), jnp.float32),
        grid=(B,),
        in_specs=[
            pl.BlockSpec((1, T, C), lambda i: (i, 0, 0)),
            pl.BlockSpec((1, T, 1), lambda i: (i, 0, 0)),
            _full2d((1, C)), _full2d((1, C)),              # norm_conv
            _full2d((C, 2 * C)), _full2d((1, 2 * C)),      # pointwise conv 1
            _full2d((kernel_size, C)), _full2d((1, C)),    # depthwise conv
            _full2d((1, C)), _full2d((1, C)),              # BN gamma/beta
            _full2d((1, C)), _full2d((1, C)),              # BN running mean/var
            _full2d((C, C)), _full2d((1, C)),              # pointwise conv 2
            _full2d((1, C)), _full2d((1, C)),              # norm_ff
            _full2d((C, hidden)), _full2d((1, hidden)),    # ff w1/b1
            _full2d((hidden, C)), _full2d((1, C)),         # ff w2/b2
            _full2d((1, C)), _full2d((1, C)),              # norm_final
        ],
        out_specs=pl.BlockSpec((1, T, C), lambda i: (i, 0, 0)),
        compiler_params=pltpu.CompilerParams(
            dimension_semantics=("parallel",),
            vmem_limit_bytes=_VMEM_LIMIT),
    )(x, mcol_full,
      p["ln_conv_g"], p["ln_conv_b"], bf("pw1_w"), p["pw1_b"], p["dw_w"], p["dw_b"],
      p["bn_g"], p["bn_b"], p["bn_m"], p["bn_v"], bf("pw2_w"), p["pw2_b"],
      p["ln_ff_g"], p["ln_ff_b"], bf("ff_w1"), p["ff_b1"], bf("ff_w2"), p["ff_b2"],
      p["ln_final_g"], p["ln_final_b"])

    new_cnn_cache = jnp.zeros((1,), jnp.float32)     # non-causal conv: dummy cache
    return x, mask_pad[:, 0, :], new_cnn_cache


# --------------------------------------------------------------------------------------
# Deterministic synthetic parameter init (shapes implied by the module's __init__).
# --------------------------------------------------------------------------------------
def init_params(key, size, hidden, kernel_size):
    ks = list(jax.random.split(key, 40))
    nk = iter(ks)

    def w(shape, scale=0.05):
        return scale * jax.random.normal(next(nk), shape, jnp.float32)

    def ln():
        g = 1.0 + 0.1 * jax.random.normal(next(nk), (1, size), jnp.float32)
        b = 0.1 * jax.random.normal(next(nk), (1, size), jnp.float32)
        return g, b

    p = {}
    p["ln_mac_g"], p["ln_mac_b"] = ln()          # norm_ff_macaron
    p["ln_mha_g"], p["ln_mha_b"] = ln()          # norm_mha
    p["ln_conv_g"], p["ln_conv_b"] = ln()        # norm_conv
    p["ln_ff_g"], p["ln_ff_b"] = ln()            # norm_ff
    p["ln_final_g"], p["ln_final_b"] = ln()      # norm_final
    # macaron FFN
    p["mac_w1"], p["mac_b1"] = w((size, hidden)), w((1, hidden))
    p["mac_w2"], p["mac_b2"] = w((hidden, size)), w((1, size))
    # MHSA projections
    p["wq"], p["bq"] = w((size, size)), w((1, size))
    p["wk"], p["bk"] = w((size, size)), w((1, size))
    p["wv"], p["bv"] = w((size, size)), w((1, size))
    p["wo"], p["bo"] = w((size, size)), w((1, size))
    # conv module
    p["pw1_w"], p["pw1_b"] = w((size, 2 * size)), w((1, 2 * size))
    p["dw_w"], p["dw_b"] = w((kernel_size, size)), w((1, size))
    p["bn_g"] = 1.0 + 0.1 * jax.random.normal(next(nk), (1, size), jnp.float32)
    p["bn_b"] = 0.1 * jax.random.normal(next(nk), (1, size), jnp.float32)
    p["bn_m"] = jnp.zeros((1, size), jnp.float32)    # eval-mode running stats
    p["bn_v"] = jnp.ones((1, size), jnp.float32)
    p["pw2_w"], p["pw2_b"] = w((size, size)), w((1, size))
    # final FFN
    p["ff_w1"], p["ff_b1"] = w((size, hidden)), w((1, hidden))
    p["ff_w2"], p["ff_b2"] = w((hidden, size)), w((1, size))
    return p


if __name__ == "__main__":
    B, T, C = 2, 64, 128          # C multiple of 128 -> lane-dense stores everywhere
    HIDDEN = 256
    NUM_HEADS = 4                 # module hard-codes num_heads = 4
    CHUNK = 16                    # module default chunk_size
    KSIZE = 15

    key = jax.random.PRNGKey(0)
    kx, kp = jax.random.split(key)
    params = init_params(kp, C, HIDDEN, KSIZE)

    x = jax.random.normal(kx, (B, T, C), jnp.float32)
    mask = jnp.ones((B, T, T), dtype=jnp.bool_)        # unused (no output_cache)
    pos_emb = jnp.zeros((1, T, C), jnp.float32)        # unused by this forward
    mask_pad = jnp.ones((B, 1, T), dtype=jnp.bool_)
    mask_pad = mask_pad.at[1, 0, T - 8:].set(False)    # exercise the padding-mask path

    out, out_mask, cnn_cache = schunk_conformer_encoder_layer(
        x, mask, pos_emb, mask_pad, params,
        chunk_size=CHUNK, num_heads=NUM_HEADS, kernel_size=KSIZE)

    jax.block_until_ready((out, out_mask, cnn_cache))
    assert out.shape == (B, T, C) and out_mask.shape == (B, T)
    assert bool(jnp.all(jnp.isfinite(out)))
    print("KERNEL_OK")
</pallas_src>

<mosaic_0001>
module attributes {stable_mosaic.version = 11 : i64} {
  func.func @_ffn_mha_kernel(%arg0: i32, %arg1: memref<4x16x128xf32, #tpu.memory_space<vmem>>, %arg2: memref<4x1x16xf32, #tpu.memory_space<vmem>>, %arg3: memref<4x16x1xf32, #tpu.memory_space<vmem>>, %arg4: memref<1x128xf32, #tpu.memory_space<vmem>>, %arg5: memref<1x128xf32, #tpu.memory_space<vmem>>, %arg6: memref<128x256xbf16, #tpu.memory_space<vmem>>, %arg7: memref<1x256xf32, #tpu.memory_space<vmem>>, %arg8: memref<256x128xbf16, #tpu.memory_space<vmem>>, %arg9: memref<1x128xf32, #tpu.memory_space<vmem>>, %arg10: memref<1x128xf32, #tpu.memory_space<vmem>>, %arg11: memref<1x128xf32, #tpu.memory_space<vmem>>, %arg12: memref<128x128xbf16, #tpu.memory_space<vmem>>, %arg13: memref<1x128xf32, #tpu.memory_space<vmem>>, %arg14: memref<128x128xbf16, #tpu.memory_space<vmem>>, %arg15: memref<1x128xf32, #tpu.memory_space<vmem>>, %arg16: memref<128x128xbf16, #tpu.memory_space<vmem>>, %arg17: memref<1x128xf32, #tpu.memory_space<vmem>>, %arg18: memref<128x128xbf16, #tpu.memory_space<vmem>>, %arg19: memref<1x128xf32, #tpu.memory_space<vmem>>, %arg20: memref<4x16x128xf32, #tpu.memory_space<vmem>>) attributes {dimension_semantics = [#tpu.dimension_semantics<parallel>], iteration_bounds = array<i64: 2>, scalar_prefetch = 0 : i64, scratch_operands = 0 : i64, tpu.core_type = #tpu.core_type<tc>, window_params = [{transform_indices = @transform_0, window_bounds = array<i64: 4, 16, 128>}, {transform_indices = @transform_1, window_bounds = array<i64: 4, 1, 16>}, {transform_indices = @transform_2, window_bounds = array<i64: 4, 16, 1>}, {pipeline_mode = #tpu.pipeline_mode<synchronous>, transform_indices = @transform_3, window_bounds = array<i64: 1, 128>}, {pipeline_mode = #tpu.pipeline_mode<synchronous>, transform_indices = @transform_4, window_bounds = array<i64: 1, 128>}, {pipeline_mode = #tpu.pipeline_mode<synchronous>, transform_indices = @transform_5, window_bounds = array<i64: 128, 256>}, {pipeline_mode = #tpu.pipeline_mode<synchronous>, transform_indices = @transform_6, window_bounds = array<i64: 1, 256>}, {pipeline_mode = #tpu.pipeline_mode<synchronous>, transform_indices = @transform_7, window_bounds = array<i64: 256, 128>}, {pipeline_mode = #tpu.pipeline_mode<synchronous>, transform_indices = @transform_8, window_bounds = array<i64: 1, 128>}, {pipeline_mode = #tpu.pipeline_mode<synchronous>, transform_indices = @transform_9, window_bounds = array<i64: 1, 128>}, {pipeline_mode = #tpu.pipeline_mode<synchronous>, transform_indices = @transform_10, window_bounds = array<i64: 1, 128>}, {pipeline_mode = #tpu.pipeline_mode<synchronous>, transform_indices = @transform_11, window_bounds = array<i64: 128, 128>}, {pipeline_mode = #tpu.pipeline_mode<synchronous>, transform_indices = @transform_12, window_bounds = array<i64: 1, 128>}, {pipeline_mode = #tpu.pipeline_mode<synchronous>, transform_indices = @transform_13, window_bounds = array<i64: 128, 128>}, {pipeline_mode = #tpu.pipeline_mode<synchronous>, transform_indices = @transform_14, window_bounds = array<i64: 1, 128>}, {pipeline_mode = #tpu.pipeline_mode<synchronous>, transform_indices = @transform_15, window_bounds = array<i64: 128, 128>}, {pipeline_mode = #tpu.pipeline_mode<synchronous>, transform_indices = @transform_16, window_bounds = array<i64: 1, 128>}, {pipeline_mode = #tpu.pipeline_mode<synchronous>, transform_indices = @transform_17, window_bounds = array<i64: 128, 128>}, {pipeline_mode = #tpu.pipeline_mode<synchronous>, transform_indices = @transform_18, window_bounds = array<i64: 1, 128>}, {transform_indices = @transform_19, window_bounds = array<i64: 4, 16, 128>}]} {
    %c0 = arith.constant 0 : index
    %c0_0 = arith.constant 0 : index
    %c0_1 = arith.constant 0 : index
    %0 = vector.load %arg1[%c0, %c0_0, %c0_1] : memref<4x16x128xf32, #tpu.memory_space<vmem>>, vector<4x16x128xf32>
    %1 = vector.shape_cast %0 : vector<4x16x128xf32> to vector<64x128xf32>
    %c0_2 = arith.constant 0 : index
    %c0_3 = arith.constant 0 : index
    %2 = vector.load %arg4[%c0_2, %c0_3] : memref<1x128xf32, #tpu.memory_space<vmem>>, vector<1x128xf32>
    %c0_4 = arith.constant 0 : index
    %c0_5 = arith.constant 0 : index
    %3 = vector.load %arg5[%c0_4, %c0_5] : memref<1x128xf32, #tpu.memory_space<vmem>>, vector<1x128xf32>
    %cst = arith.constant dense<0.000000e+00> : vector<64xf32>
    %4 = vector.multi_reduction <add>, %1, %cst [1] : vector<64x128xf32> to vector<64xf32>
    %5 = vector.shape_cast %4 : vector<64xf32> to vector<64x1xf32>
    %cst_6 = arith.constant 1.280000e+02 : f32
    %6 = vector.broadcast %cst_6 : f32 to vector<64x1xf32>
    %7 = arith.divf %5, %6 : vector<64x1xf32>
    %8 = vector.broadcast %7 : vector<64x1xf32> to vector<64x128xf32>
    %9 = arith.subf %1, %8 : vector<64x128xf32>
    %10 = arith.mulf %9, %9 : vector<64x128xf32>
    %cst_7 = arith.constant dense<0.000000e+00> : vector<64xf32>
    %11 = vector.multi_reduction <add>, %10, %cst_7 [1] : vector<64x128xf32> to vector<64xf32>
    %12 = vector.shape_cast %11 : vector<64xf32> to vector<64x1xf32>
    %cst_8 = arith.constant 1.280000e+02 : f32
    %13 = vector.broadcast %cst_8 : f32 to vector<64x1xf32>
    %14 = arith.divf %12, %13 : vector<64x1xf32>
    %15 = vector.broadcast %7 : vector<64x1xf32> to vector<64x128xf32>
    %16 = arith.subf %1, %15 : vector<64x128xf32>
    %cst_9 = arith.constant 9.99999996E-13 : f32
    %17 = vector.broadcast %cst_9 : f32 to vector<64x1xf32>
    %18 = arith.addf %14, %17 : vector<64x1xf32>
    %19 = math.rsqrt %18 : vector<64x1xf32>
    %20 = vector.broadcast %19 : vector<64x1xf32> to vector<64x128xf32>
    %21 = arith.mulf %16, %20 : vector<64x128xf32>
    %22 = vector.broadcast %2 : vector<1x128xf32> to vector<64x128xf32>
    %23 = arith.mulf %21, %22 : vector<64x128xf32>
    %24 = vector.broadcast %3 : vector<1x128xf32> to vector<64x128xf32>
    %25 = arith.addf %23, %24 : vector<64x128xf32>
    %26 = arith.truncf %25 : vector<64x128xf32> to vector<64x128xbf16>
    %c0_10 = arith.constant 0 : index
    %c0_11 = arith.constant 0 : index
    %27 = vector.load %arg6[%c0_10, %c0_11] : memref<128x256xbf16, #tpu.memory_space<vmem>>, vector<128x256xbf16>
    %cst_12 = arith.constant dense<0.000000e+00> : vector<64x256xf32>
    %28 = tpu.matmul %26, %27, %cst_12 {dimension_numbers = #tpu.dot_dimension_numbers<[1], [0], [0], [1], [0, 0, 1, 1], [], []>} : vector<64x128xbf16>, vector<128x256xbf16>, vector<64x256xf32> -> vector<64x256xf32>
    %c0_13 = arith.constant 0 : index
    %c0_14 = arith.constant 0 : index
    %29 = vector.load %arg7[%c0_13, %c0_14] : memref<1x256xf32, #tpu.memory_space<vmem>>, vector<1x256xf32>
    %30 = vector.broadcast %29 : vector<1x256xf32> to vector<64x256xf32>
    %31 = arith.addf %28, %30 : vector<64x256xf32>
    %cst_15 = arith.constant 0.000000e+00 : f32
    %32 = vector.broadcast %cst_15 : f32 to vector<64x256xf32>
    %33 = arith.maximumf %31, %32 : vector<64x256xf32>
    %34 = arith.truncf %33 : vector<64x256xf32> to vector<64x256xbf16>
    %c0_16 = arith.constant 0 : index
    %c0_17 = arith.constant 0 : index
    %35 = vector.load %arg8[%c0_16, %c0_17] : memref<256x128xbf16, #tpu.memory_space<vmem>>, vector<256x128xbf16>
    %cst_18 = arith.constant dense<0.000000e+00> : vector<64x128xf32>
    %36 = tpu.matmul %34, %35, %cst_18 {dimension_numbers = #tpu.dot_dimension_numbers<[1], [0], [0], [1], [0, 0, 1, 1], [], []>} : vector<64x256xbf16>, vector<256x128xbf16>, vector<64x128xf32> -> vector<64x128xf32>
    %c0_19 = arith.constant 0 : index
    %c0_20 = arith.constant 0 : index
    %37 = vector.load %arg9[%c0_19, %c0_20] : memref<1x128xf32, #tpu.memory_space<vmem>>, vector<1x128xf32>
    %38 = vector.broadcast %37 : vector<1x128xf32> to vector<64x128xf32>
    %39 = arith.addf %36, %38 : vector<64x128xf32>
    %cst_21 = arith.constant 5.000000e-01 : f32
    %40 = vector.broadcast %cst_21 : f32 to vector<64x128xf32>
    %41 = arith.mulf %40, %39 : vector<64x128xf32>
    %42 = arith.addf %1, %41 : vector<64x128xf32>
    %c0_22 = arith.constant 0 : index
    %c0_23 = arith.constant 0 : index
    %43 = vector.load %arg10[%c0_22, %c0_23] : memref<1x128xf32, #tpu.memory_space<vmem>>, vector<1x128xf32>
    %c0_24 = arith.constant 0 : index
    %c0_25 = arith.constant 0 : index
    %44 = vector.load %arg11[%c0_24, %c0_25] : memref<1x128xf32, #tpu.memory_space<vmem>>, vector<1x128xf32>
    %cst_26 = arith.constant dense<0.000000e+00> : vector<64xf32>
    %45 = vector.multi_reduction <add>, %42, %cst_26 [1] : vector<64x128xf32> to vector<64xf32>
    %46 = vector.shape_cast %45 : vector<64xf32> to vector<64x1xf32>
    %cst_27 = arith.constant 1.280000e+02 : f32
    %47 = vector.broadcast %cst_27 : f32 to vector<64x1xf32>
    %48 = arith.divf %46, %47 : vector<64x1xf32>
    %49 = vector.broadcast %48 : vector<64x1xf32> to vector<64x128xf32>
    %50 = arith.subf %42, %49 : vector<64x128xf32>
    %51 = arith.mulf %50, %50 : vector<64x128xf32>
    %cst_28 = arith.constant dense<0.000000e+00> : vector<64xf32>
    %52 = vector.multi_reduction <add>, %51, %cst_28 [1] : vector<64x128xf32> to vector<64xf32>
    %53 = vector.shape_cast %52 : vector<64xf32> to vector<64x1xf32>
    %cst_29 = arith.constant 1.280000e+02 : f32
    %54 = vector.broadcast %cst_29 : f32 to vector<64x1xf32>
    %55 = arith.divf %53, %54 : vector<64x1xf32>
    %56 = vector.broadcast %48 : vector<64x1xf32> to vector<64x128xf32>
    %57 = arith.subf %42, %56 : vector<64x128xf32>
    %cst_30 = arith.constant 9.99999996E-13 : f32
    %58 = vector.broadcast %cst_30 : f32 to vector<64x1xf32>
    %59 = arith.addf %55, %58 : vector<64x1xf32>
    %60 = math.rsqrt %59 : vector<64x1xf32>
    %61 = vector.broadcast %60 : vector<64x1xf32> to vector<64x128xf32>
    %62 = arith.mulf %57, %61 : vector<64x128xf32>
    %63 = vector.broadcast %43 : vector<1x128xf32> to vector<64x128xf32>
    %64 = arith.mulf %62, %63 : vector<64x128xf32>
    %65 = vector.broadcast %44 : vector<1x128xf32> to vector<64x128xf32>
    %66 = arith.addf %64, %65 : vector<64x128xf32>
    %67 = arith.truncf %66 : vector<64x128xf32> to vector<64x128xbf16>
    %c0_31 = arith.constant 0 : index
    %c0_32 = arith.constant 0 : index
    %68 = vector.load %arg12[%c0_31, %c0_32] : memref<128x128xbf16, #tpu.memory_space<vmem>>, vector<128x128xbf16>
    %cst_33 = arith.constant dense<0.000000e+00> : vector<64x128xf32>
    %69 = tpu.matmul %67, %68, %cst_33 {dimension_numbers = #tpu.dot_dimension_numbers<[1], [0], [0], [1], [0, 0, 1, 1], [], []>} : vector<64x128xbf16>, vector<128x128xbf16>, vector<64x128xf32> -> vector<64x128xf32>
    %c0_34 = arith.constant 0 : index
    %c0_35 = arith.constant 0 : index
    %70 = vector.load %arg13[%c0_34, %c0_35] : memref<1x128xf32, #tpu.memory_space<vmem>>, vector<1x128xf32>
    %71 = vector.broadcast %70 : vector<1x128xf32> to vector<64x128xf32>
    %72 = arith.addf %69, %71 : vector<64x128xf32>
    %c0_36 = arith.constant 0 : index
    %c0_37 = arith.constant 0 : index
    %73 = vector.load %arg14[%c0_36, %c0_37] : memref<128x128xbf16, #tpu.memory_space<vmem>>, vector<128x128xbf16>
    %cst_38 = arith.constant dense<0.000000e+00> : vector<64x128xf32>
    %74 = tpu.matmul %67, %73, %cst_38 {dimension_numbers = #tpu.dot_dimension_numbers<[1], [0], [0], [1], [0, 0, 1, 1], [], []>} : vector<64x128xbf16>, vector<128x128xbf16>, vector<64x128xf32> -> vector<64x128xf32>
    %c0_39 = arith.constant 0 : index
    %c0_40 = arith.constant 0 : index
    %75 = vector.load %arg15[%c0_39, %c0_40] : memref<1x128xf32, #tpu.memory_space<vmem>>, vector<1x128xf32>
    %76 = vector.broadcast %75 : vector<1x128xf32> to vector<64x128xf32>
    %77 = arith.addf %74, %76 : vector<64x128xf32>
    %c0_41 = arith.constant 0 : index
    %c0_42 = arith.constant 0 : index
    %78 = vector.load %arg16[%c0_41, %c0_42] : memref<128x128xbf16, #tpu.memory_space<vmem>>, vector<128x128xbf16>
    %cst_43 = arith.constant dense<0.000000e+00> : vector<64x128xf32>
    %79 = tpu.matmul %67, %78, %cst_43 {dimension_numbers = #tpu.dot_dimension_numbers<[1], [0], [0], [1], [0, 0, 1, 1], [], []>} : vector<64x128xbf16>, vector<128x128xbf16>, vector<64x128xf32> -> vector<64x128xf32>
    %c0_44 = arith.constant 0 : index
    %c0_45 = arith.constant 0 : index
    %80 = vector.load %arg17[%c0_44, %c0_45] : memref<1x128xf32, #tpu.memory_space<vmem>>, vector<1x128xf32>
    %81 = vector.broadcast %80 : vector<1x128xf32> to vector<64x128xf32>
    %82 = arith.addf %79, %81 : vector<64x128xf32>
    %83 = vector.shape_cast %72 : vector<64x128xf32> to vector<4x16x128xf32>
    %84 = vector.shape_cast %77 : vector<64x128xf32> to vector<4x16x128xf32>
    %85 = vector.shape_cast %82 : vector<64x128xf32> to vector<4x16x128xf32>
    %c0_46 = arith.constant 0 : index
    %c0_47 = arith.constant 0 : index
    %c0_48 = arith.constant 0 : index
    %86 = vector.load %arg2[%c0_46, %c0_47, %c0_48] : memref<4x1x16xf32, #tpu.memory_space<vmem>>, vector<4x1x16xf32>
    %cst_49 = arith.constant 5.000000e-01 : f32
    %87 = vector.broadcast %cst_49 : f32 to vector<4x1x16xf32>
    %88 = arith.cmpf ogt, %86, %87 : vector<4x1x16xf32>
    %89 = vector.extract_strided_slice %83 {offsets = [0, 0, 0], sizes = [4, 16, 32], strides = [1, 1, 1]} : vector<4x16x128xf32> to vector<4x16x32xf32>
    %90 = arith.truncf %89 : vector<4x16x32xf32> to vector<4x16x32xbf16>
    %91 = vector.extract_strided_slice %84 {offsets = [0, 0, 0], sizes = [4, 16, 32], strides = [1, 1, 1]} : vector<4x16x128xf32> to vector<4x16x32xf32>
    %92 = arith.truncf %91 : vector<4x16x32xf32> to vector<4x16x32xbf16>
    %93 = vector.extract_strided_slice %85 {offsets = [0, 0, 0], sizes = [4, 16, 32], strides = [1, 1, 1]} : vector<4x16x128xf32> to vector<4x16x32xf32>
    %94 = arith.truncf %93 : vector<4x16x32xf32> to vector<4x16x32xbf16>
    "tpu.trace_start"() <{level = 10 : i32, message = "gqd,gkd->gqk"}> : () -> ()
    %cst_50 = arith.constant dense<0.000000e+00> : vector<4x16x16xf32>
    %95 = tpu.matmul %90, %92, %cst_50 {dimension_numbers = #tpu.dot_dimension_numbers<[2], [2], [1], [1], [0, 0, 0, 1, 1, 1], [0], [0]>} : vector<4x16x32xbf16>, vector<4x16x32xbf16>, vector<4x16x16xf32> -> vector<4x16x16xf32>
    "tpu.trace_stop"() : () -> ()
    %cst_51 = arith.constant 0.176776692 : f32
    %96 = vector.broadcast %cst_51 : f32 to vector<4x16x16xf32>
    %97 = arith.mulf %95, %96 : vector<4x16x16xf32>
    %cst_52 = arith.constant -3.40282347E+38 : f32
    %98 = vector.shape_cast %88 : vector<4x1x16xi1> to vector<4x1x16xi1>
    %99 = vector.broadcast %98 : vector<4x1x16xi1> to vector<4x16x16xi1>
    %100 = vector.broadcast %cst_52 : f32 to vector<4x16x16xf32>
    %101 = arith.select %99, %97, %100 : vector<4x16x16xi1>, vector<4x16x16xf32>
    %cst_53 = arith.constant dense<0xFF800000> : vector<4x16xf32>
    %102 = vector.multi_reduction <maximumf>, %101, %cst_53 [2] : vector<4x16x16xf32> to vector<4x16xf32>
    %cst_54 = arith.constant 0xFF800000 : f32
    %103 = vector.broadcast %cst_54 : f32 to vector<4x16xf32>
    %104 = arith.maximumf %103, %102 : vector<4x16xf32>
    %105 = vector.shape_cast %104 : vector<4x16xf32> to vector<4x16x1xf32>
    %106 = vector.broadcast %105 : vector<4x16x1xf32> to vector<4x16x16xf32>
    %107 = arith.subf %101, %106 : vector<4x16x16xf32>
    %108 = math.exp %107 : vector<4x16x16xf32>
    %cst_55 = arith.constant dense<0.000000e+00> : vector<4x16xf32>
    %109 = vector.multi_reduction <add>, %108, %cst_55 [2] : vector<4x16x16xf32> to vector<4x16xf32>
    %110 = vector.shape_cast %109 : vector<4x16xf32> to vector<4x16x1xf32>
    %111 = vector.broadcast %110 : vector<4x16x1xf32> to vector<4x16x16xf32>
    %112 = arith.divf %108, %111 : vector<4x16x16xf32>
    %cst_56 = arith.constant 0.000000e+00 : f32
    %113 = vector.shape_cast %88 : vector<4x1x16xi1> to vector<4x1x16xi1>
    %114 = vector.broadcast %113 : vector<4x1x16xi1> to vector<4x16x16xi1>
    %115 = vector.broadcast %cst_56 : f32 to vector<4x16x16xf32>
    %116 = arith.select %114, %112, %115 : vector<4x16x16xi1>, vector<4x16x16xf32>
    %117 = arith.truncf %116 : vector<4x16x16xf32> to vector<4x16x16xbf16>
    "tpu.trace_start"() <{level = 10 : i32, message = "gqk,gkd->gqd"}> : () -> ()
    %cst_57 = arith.constant dense<0.000000e+00> : vector<4x16x32xf32>
    %118 = tpu.matmul %117, %94, %cst_57 {dimension_numbers = #tpu.dot_dimension_numbers<[2], [1], [1], [2], [0, 0, 0, 1, 1, 2], [0], [0]>} : vector<4x16x16xbf16>, vector<4x16x32xbf16>, vector<4x16x32xf32> -> vector<4x16x32xf32>
    "tpu.trace_stop"() : () -> ()
    %119 = vector.extract_strided_slice %83 {offsets = [0, 0, 32], sizes = [4, 16, 32], strides = [1, 1, 1]} : vector<4x16x128xf32> to vector<4x16x32xf32>
    %120 = arith.truncf %119 : vector<4x16x32xf32> to vector<4x16x32xbf16>
    %121 = vector.extract_strided_slice %84 {offsets = [0, 0, 32], sizes = [4, 16, 32], strides = [1, 1, 1]} : vector<4x16x128xf32> to vector<4x16x32xf32>
    %122 = arith.truncf %121 : vector<4x16x32xf32> to vector<4x16x32xbf16>
    %123 = vector.extract_strided_slice %85 {offsets = [0, 0, 32], sizes = [4, 16, 32], strides = [1, 1, 1]} : vector<4x16x128xf32> to vector<4x16x32xf32>
    %124 = arith.truncf %123 : vector<4x16x32xf32> to vector<4x16x32xbf16>
    "tpu.trace_start"() <{level = 10 : i32, message = "gqd,gkd->gqk"}> : () -> ()
    %cst_58 = arith.constant dense<0.000000e+00> : vector<4x16x16xf32>
    %125 = tpu.matmul %120, %122, %cst_58 {dimension_numbers = #tpu.dot_dimension_numbers<[2], [2], [1], [1], [0, 0, 0, 1, 1, 1], [0], [0]>} : vector<4x16x32xbf16>, vector<4x16x32xbf16>, vector<4x16x16xf32> -> vector<4x16x16xf32>
    "tpu.trace_stop"() : () -> ()
    %cst_59 = arith.constant 0.176776692 : f32
    %126 = vector.broadcast %cst_59 : f32 to vector<4x16x16xf32>
    %127 = arith.mulf %125, %126 : vector<4x16x16xf32>
    %cst_60 = arith.constant -3.40282347E+38 : f32
    %128 = vector.shape_cast %88 : vector<4x1x16xi1> to vector<4x1x16xi1>
    %129 = vector.broadcast %128 : vector<4x1x16xi1> to vector<4x16x16xi1>
    %130 = vector.broadcast %cst_60 : f32 to vector<4x16x16xf32>
    %131 = arith.select %129, %127, %130 : vector<4x16x16xi1>, vector<4x16x16xf32>
    %cst_61 = arith.constant dense<0xFF800000> : vector<4x16xf32>
    %132 = vector.multi_reduction <maximumf>, %131, %cst_61 [2] : vector<4x16x16xf32> to vector<4x16xf32>
    %cst_62 = arith.constant 0xFF800000 : f32
    %133 = vector.broadcast %cst_62 : f32 to vector<4x16xf32>
    %134 = arith.maximumf %133, %132 : vector<4x16xf32>
    %135 = vector.shape_cast %134 : vector<4x16xf32> to vector<4x16x1xf32>
    %136 = vector.broadcast %135 : vector<4x16x1xf32> to vector<4x16x16xf32>
    %137 = arith.subf %131, %136 : vector<4x16x16xf32>
    %138 = math.exp %137 : vector<4x16x16xf32>
    %cst_63 = arith.constant dense<0.000000e+00> : vector<4x16xf32>
    %139 = vector.multi_reduction <add>, %138, %cst_63 [2] : vector<4x16x16xf32> to vector<4x16xf32>
    %140 = vector.shape_cast %139 : vector<4x16xf32> to vector<4x16x1xf32>
    %141 = vector.broadcast %140 : vector<4x16x1xf32> to vector<4x16x16xf32>
    %142 = arith.divf %138, %141 : vector<4x16x16xf32>
    %cst_64 = arith.constant 0.000000e+00 : f32
    %143 = vector.shape_cast %88 : vector<4x1x16xi1> to vector<4x1x16xi1>
    %144 = vector.broadcast %143 : vector<4x1x16xi1> to vector<4x16x16xi1>
    %145 = vector.broadcast %cst_64 : f32 to vector<4x16x16xf32>
    %146 = arith.select %144, %142, %145 : vector<4x16x16xi1>, vector<4x16x16xf32>
    %147 = arith.truncf %146 : vector<4x16x16xf32> to vector<4x16x16xbf16>
    "tpu.trace_start"() <{level = 10 : i32, message = "gqk,gkd->gqd"}> : () -> ()
    %cst_65 = arith.constant dense<0.000000e+00> : vector<4x16x32xf32>
    %148 = tpu.matmul %147, %124, %cst_65 {dimension_numbers = #tpu.dot_dimension_numbers<[2], [1], [1], [2], [0, 0, 0, 1, 1, 2], [0], [0]>} : vector<4x16x16xbf16>, vector<4x16x32xbf16>, vector<4x16x32xf32> -> vector<4x16x32xf32>
    "tpu.trace_stop"() : () -> ()
    %149 = vector.extract_strided_slice %83 {offsets = [0, 0, 64], sizes = [4, 16, 32], strides = [1, 1, 1]} : vector<4x16x128xf32> to vector<4x16x32xf32>
    %150 = arith.truncf %149 : vector<4x16x32xf32> to vector<4x16x32xbf16>
    %151 = vector.extract_strided_slice %84 {offsets = [0, 0, 64], sizes = [4, 16, 32], strides = [1, 1, 1]} : vector<4x16x128xf32> to vector<4x16x32xf32>
    %152 = arith.truncf %151 : vector<4x16x32xf32> to vector<4x16x32xbf16>
    %153 = vector.extract_strided_slice %85 {offsets = [0, 0, 64], sizes = [4, 16, 32], strides = [1, 1, 1]} : vector<4x16x128xf32> to vector<4x16x32xf32>
    %154 = arith.truncf %153 : vector<4x16x32xf32> to vector<4x16x32xbf16>
    "tpu.trace_start"() <{level = 10 : i32, message = "gqd,gkd->gqk"}> : () -> ()
    %cst_66 = arith.constant dense<0.000000e+00> : vector<4x16x16xf32>
    %155 = tpu.matmul %150, %152, %cst_66 {dimension_numbers = #tpu.dot_dimension_numbers<[2], [2], [1], [1], [0, 0, 0, 1, 1, 1], [0], [0]>} : vector<4x16x32xbf16>, vector<4x16x32xbf16>, vector<4x16x16xf32> -> vector<4x16x16xf32>
    "tpu.trace_stop"() : () -> ()
    %cst_67 = arith.constant 0.176776692 : f32
    %156 = vector.broadcast %cst_67 : f32 to vector<4x16x16xf32>
    %157 = arith.mulf %155, %156 : vector<4x16x16xf32>
    %cst_68 = arith.constant -3.40282347E+38 : f32
    %158 = vector.shape_cast %88 : vector<4x1x16xi1> to vector<4x1x16xi1>
    %159 = vector.broadcast %158 : vector<4x1x16xi1> to vector<4x16x16xi1>
    %160 = vector.broadcast %cst_68 : f32 to vector<4x16x16xf32>
    %161 = arith.select %159, %157, %160 : vector<4x16x16xi1>, vector<4x16x16xf32>
    %cst_69 = arith.constant dense<0xFF800000> : vector<4x16xf32>
    %162 = vector.multi_reduction <maximumf>, %161, %cst_69 [2] : vector<4x16x16xf32> to vector<4x16xf32>
    %cst_70 = arith.constant 0xFF800000 : f32
    %163 = vector.broadcast %cst_70 : f32 to vector<4x16xf32>
    %164 = arith.maximumf %163, %162 : vector<4x16xf32>
    %165 = vector.shape_cast %164 : vector<4x16xf32> to vector<4x16x1xf32>
    %166 = vector.broadcast %165 : vector<4x16x1xf32> to vector<4x16x16xf32>
    %167 = arith.subf %161, %166 : vector<4x16x16xf32>
    %168 = math.exp %167 : vector<4x16x16xf32>
    %cst_71 = arith.constant dense<0.000000e+00> : vector<4x16xf32>
    %169 = vector.multi_reduction <add>, %168, %cst_71 [2] : vector<4x16x16xf32> to vector<4x16xf32>
    %170 = vector.shape_cast %169 : vector<4x16xf32> to vector<4x16x1xf32>
    %171 = vector.broadcast %170 : vector<4x16x1xf32> to vector<4x16x16xf32>
    %172 = arith.divf %168, %171 : vector<4x16x16xf32>
    %cst_72 = arith.constant 0.000000e+00 : f32
    %173 = vector.shape_cast %88 : vector<4x1x16xi1> to vector<4x1x16xi1>
    %174 = vector.broadcast %173 : vector<4x1x16xi1> to vector<4x16x16xi1>
    %175 = vector.broadcast %cst_72 : f32 to vector<4x16x16xf32>
    %176 = arith.select %174, %172, %175 : vector<4x16x16xi1>, vector<4x16x16xf32>
    %177 = arith.truncf %176 : vector<4x16x16xf32> to vector<4x16x16xbf16>
    "tpu.trace_start"() <{level = 10 : i32, message = "gqk,gkd->gqd"}> : () -> ()
    %cst_73 = arith.constant dense<0.000000e+00> : vector<4x16x32xf32>
    %178 = tpu.matmul %177, %154, %cst_73 {dimension_numbers = #tpu.dot_dimension_numbers<[2], [1], [1], [2], [0, 0, 0, 1, 1, 2], [0], [0]>} : vector<4x16x16xbf16>, vector<4x16x32xbf16>, vector<4x16x32xf32> -> vector<4x16x32xf32>
    "tpu.trace_stop"() : () -> ()
    %179 = vector.extract_strided_slice %83 {offsets = [0, 0, 96], sizes = [4, 16, 32], strides = [1, 1, 1]} : vector<4x16x128xf32> to vector<4x16x32xf32>
    %180 = arith.truncf %179 : vector<4x16x32xf32> to vector<4x16x32xbf16>
    %181 = vector.extract_strided_slice %84 {offsets = [0, 0, 96], sizes = [4, 16, 32], strides = [1, 1, 1]} : vector<4x16x128xf32> to vector<4x16x32xf32>
    %182 = arith.truncf %181 : vector<4x16x32xf32> to vector<4x16x32xbf16>
    %183 = vector.extract_strided_slice %85 {offsets = [0, 0, 96], sizes = [4, 16, 32], strides = [1, 1, 1]} : vector<4x16x128xf32> to vector<4x16x32xf32>
    %184 = arith.truncf %183 : vector<4x16x32xf32> to vector<4x16x32xbf16>
    "tpu.trace_start"() <{level = 10 : i32, message = "gqd,gkd->gqk"}> : () -> ()
    %cst_74 = arith.constant dense<0.000000e+00> : vector<4x16x16xf32>
    %185 = tpu.matmul %180, %182, %cst_74 {dimension_numbers = #tpu.dot_dimension_numbers<[2], [2], [1], [1], [0, 0, 0, 1, 1, 1], [0], [0]>} : vector<4x16x32xbf16>, vector<4x16x32xbf16>, vector<4x16x16xf32> -> vector<4x16x16xf32>
    "tpu.trace_stop"() : () -> ()
    %cst_75 = arith.constant 0.176776692 : f32
    %186 = vector.broadcast %cst_75 : f32 to vector<4x16x16xf32>
    %187 = arith.mulf %185, %186 : vector<4x16x16xf32>
    %cst_76 = arith.constant -3.40282347E+38 : f32
    %188 = vector.shape_cast %88 : vector<4x1x16xi1> to vector<4x1x16xi1>
    %189 = vector.broadcast %188 : vector<4x1x16xi1> to vector<4x16x16xi1>
    %190 = vector.broadcast %cst_76 : f32 to vector<4x16x16xf32>
    %191 = arith.select %189, %187, %190 : vector<4x16x16xi1>, vector<4x16x16xf32>
    %cst_77 = arith.constant dense<0xFF800000> : vector<4x16xf32>
    %192 = vector.multi_reduction <maximumf>, %191, %cst_77 [2] : vector<4x16x16xf32> to vector<4x16xf32>
    %cst_78 = arith.constant 0xFF800000 : f32
    %193 = vector.broadcast %cst_78 : f32 to vector<4x16xf32>
    %194 = arith.maximumf %193, %192 : vector<4x16xf32>
    %195 = vector.shape_cast %194 : vector<4x16xf32> to vector<4x16x1xf32>
    %196 = vector.broadcast %195 : vector<4x16x1xf32> to vector<4x16x16xf32>
    %197 = arith.subf %191, %196 : vector<4x16x16xf32>
    %198 = math.exp %197 : vector<4x16x16xf32>
    %cst_79 = arith.constant dense<0.000000e+00> : vector<4x16xf32>
    %199 = vector.multi_reduction <add>, %198, %cst_79 [2] : vector<4x16x16xf32> to vector<4x16xf32>
    %200 = vector.shape_cast %199 : vector<4x16xf32> to vector<4x16x1xf32>
    %201 = vector.broadcast %200 : vector<4x16x1xf32> to vector<4x16x16xf32>
    %202 = arith.divf %198, %201 : vector<4x16x16xf32>
    %cst_80 = arith.constant 0.000000e+00 : f32
    %203 = vector.shape_cast %88 : vector<4x1x16xi1> to vector<4x1x16xi1>
    %204 = vector.broadcast %203 : vector<4x1x16xi1> to vector<4x16x16xi1>
    %205 = vector.broadcast %cst_80 : f32 to vector<4x16x16xf32>
    %206 = arith.select %204, %202, %205 : vector<4x16x16xi1>, vector<4x16x16xf32>
    %207 = arith.truncf %206 : vector<4x16x16xf32> to vector<4x16x16xbf16>
    "tpu.trace_start"() <{level = 10 : i32, message = "gqk,gkd->gqd"}> : () -> ()
    %cst_81 = arith.constant dense<0.000000e+00> : vector<4x16x32xf32>
    %208 = tpu.matmul %207, %184, %cst_81 {dimension_numbers = #tpu.dot_dimension_numbers<[2], [1], [1], [2], [0, 0, 0, 1, 1, 2], [0], [0]>} : vector<4x16x16xbf16>, vector<4x16x32xbf16>, vector<4x16x32xf32> -> vector<4x16x32xf32>
    "tpu.trace_stop"() : () -> ()
    %209 = tpu.concatenate %118, %148, %178, %208 in 2 : vector<4x16x32xf32>, vector<4x16x32xf32>, vector<4x16x32xf32>, vector<4x16x32xf32> -> vector<4x16x128xf32>
    %210 = vector.shape_cast %209 : vector<4x16x128xf32> to vector<64x128xf32>
    %211 = arith.truncf %210 : vector<64x128xf32> to vector<64x128xbf16>
    %c0_82 = arith.constant 0 : index
    %c0_83 = arith.constant 0 : index
    %212 = vector.load %arg18[%c0_82, %c0_83] : memref<128x128xbf16, #tpu.memory_space<vmem>>, vector<128x128xbf16>
    %cst_84 = arith.constant dense<0.000000e+00> : vector<64x128xf32>
    %213 = tpu.matmul %211, %212, %cst_84 {dimension_numbers = #tpu.dot_dimension_numbers<[1], [0], [0], [1], [0, 0, 1, 1], [], []>} : vector<64x128xbf16>, vector<128x128xbf16>, vector<64x128xf32> -> vector<64x128xf32>
    %c0_85 = arith.constant 0 : index
    %c0_86 = arith.constant 0 : index
    %214 = vector.load %arg19[%c0_85, %c0_86] : memref<1x128xf32, #tpu.memory_space<vmem>>, vector<1x128xf32>
    %215 = vector.broadcast %214 : vector<1x128xf32> to vector<64x128xf32>
    %216 = arith.addf %213, %215 : vector<64x128xf32>
    %c0_87 = arith.constant 0 : index
    %c0_88 = arith.constant 0 : index
    %c0_89 = arith.constant 0 : index
    %217 = vector.load %arg3[%c0_87, %c0_88, %c0_89] : memref<4x16x1xf32, #tpu.memory_space<vmem>>, vector<4x16x1xf32>
    %218 = vector.shape_cast %217 : vector<4x16x1xf32> to vector<64x1xf32>
    %219 = vector.broadcast %218 : vector<64x1xf32> to vector<64x128xf32>
    %220 = arith.mulf %216, %219 : vector<64x128xf32>
    %221 = arith.addf %42, %220 : vector<64x128xf32>
    %222 = vector.shape_cast %221 : vector<64x128xf32> to vector<4x16x128xf32>
    %c0_90 = arith.constant 0 : index
    %c0_91 = arith.constant 0 : index
    %c0_92 = arith.constant 0 : index
    %223 = vector.load %arg20[%c0_90, %c0_91, %c0_92] : memref<4x16x128xf32, #tpu.memory_space<vmem>>, vector<4x16x128xf32>
    tpu.vector_store %arg20[%c0_90, %c0_91, %c0_92], %222 {strides = array<i32>} : memref<4x16x128xf32, #tpu.memory_space<vmem>>, vector<4x16x128xf32>,
    return
  }
  func.func @transform_0(%arg0: i32) -> (i32, i32, i32) {
    %c0_i32 = arith.constant 0 : i32
    %c0_i32_0 = arith.constant 0 : i32
    %c0_i32_1 = arith.constant 0 : i32
    return %arg0, %c0_i32, %c0_i32_0 : i32, i32, i32
  }
  func.func @transform_1(%arg0: i32) -> (i32, i32, i32) {
    %c0_i32 = arith.constant 0 : i32
    %c0_i32_0 = arith.constant 0 : i32
    %c0_i32_1 = arith.constant 0 : i32
    return %arg0, %c0_i32, %c0_i32_0 : i32, i32, i32
  }
  func.func @transform_2(%arg0: i32) -> (i32, i32, i32) {
    %c0_i32 = arith.constant 0 : i32
    %c0_i32_0 = arith.constant 0 : i32
    %c0_i32_1 = arith.constant 0 : i32
    return %arg0, %c0_i32, %c0_i32_0 : i32, i32, i32
  }
  func.func @transform_3(%arg0: i32) -> (i32, i32) {
    %c0_i32 = arith.constant 0 : i32
    %c0_i32_0 = arith.constant 0 : i32
    %c0_i32_1 = arith.constant 0 : i32
    return %c0_i32, %c0_i32_0 : i32, i32
  }
  func.func @transform_4(%arg0: i32) -> (i32, i32) {
    %c0_i32 = arith.constant 0 : i32
    %c0_i32_0 = arith.constant 0 : i32
    %c0_i32_1 = arith.constant 0 : i32
    return %c0_i32, %c0_i32_0 : i32, i32
  }
  func.func @transform_5(%arg0: i32) -> (i32, i32) {
    %c0_i32 = arith.constant 0 : i32
    %c0_i32_0 = arith.constant 0 : i32
    %c0_i32_1 = arith.constant 0 : i32
    return %c0_i32, %c0_i32_0 : i32, i32
  }
  func.func @transform_6(%arg0: i32) -> (i32, i32) {
    %c0_i32 = arith.constant 0 : i32
    %c0_i32_0 = arith.constant 0 : i32
    %c0_i32_1 = arith.constant 0 : i32
    return %c0_i32, %c0_i32_0 : i32, i32
  }
  func.func @transform_7(%arg0: i32) -> (i32, i32) {
    %c0_i32 = arith.constant 0 : i32
    %c0_i32_0 = arith.constant 0 : i32
    %c0_i32_1 = arith.constant 0 : i32
    return %c0_i32, %c0_i32_0 : i32, i32
  }
  func.func @transform_8(%arg0: i32) -> (i32, i32) {
    %c0_i32 = arith.constant 0 : i32
    %c0_i32_0 = arith.constant 0 : i32
    %c0_i32_1 = arith.constant 0 : i32
    return %c0_i32, %c0_i32_0 : i32, i32
  }
  func.func @transform_9(%arg0: i32) -> (i32, i32) {
    %c0_i32 = arith.constant 0 : i32
    %c0_i32_0 = arith.constant 0 : i32
    %c0_i32_1 = arith.constant 0 : i32
    return %c0_i32, %c0_i32_0 : i32, i32
  }
  func.func @transform_10(%arg0: i32) -> (i32, i32) {
    %c0_i32 = arith.constant 0 : i32
    %c0_i32_0 = arith.constant 0 : i32
    %c0_i32_1 = arith.constant 0 : i32
    return %c0_i32, %c0_i32_0 : i32, i32
  }
  func.func @transform_11(%arg0: i32) -> (i32, i32) {
    %c0_i32 = arith.constant 0 : i32
    %c0_i32_0 = arith.constant 0 : i32
    %c0_i32_1 = arith.constant 0 : i32
    return %c0_i32, %c0_i32_0 : i32, i32
  }
  func.func @transform_12(%arg0: i32) -> (i32, i32) {
    %c0_i32 = arith.constant 0 : i32
    %c0_i32_0 = arith.constant 0 : i32
    %c0_i32_1 = arith.constant 0 : i32
    return %c0_i32, %c0_i32_0 : i32, i32
  }
  func.func @transform_13(%arg0: i32) -> (i32, i32) {
    %c0_i32 = arith.constant 0 : i32
    %c0_i32_0 = arith.constant 0 : i32
    %c0_i32_1 = arith.constant 0 : i32
    return %c0_i32, %c0_i32_0 : i32, i32
  }
  func.func @transform_14(%arg0: i32) -> (i32, i32) {
    %c0_i32 = arith.constant 0 : i32
    %c0_i32_0 = arith.constant 0 : i32
    %c0_i32_1 = arith.constant 0 : i32
    return %c0_i32, %c0_i32_0 : i32, i32
  }
  func.func @transform_15(%arg0: i32) -> (i32, i32) {
    %c0_i32 = arith.constant 0 : i32
    %c0_i32_0 = arith.constant 0 : i32
    %c0_i32_1 = arith.constant 0 : i32
    return %c0_i32, %c0_i32_0 : i32, i32
  }
  func.func @transform_16(%arg0: i32) -> (i32, i32) {
    %c0_i32 = arith.constant 0 : i32
    %c0_i32_0 = arith.constant 0 : i32
    %c0_i32_1 = arith.constant 0 : i32
    return %c0_i32, %c0_i32_0 : i32, i32
  }
  func.func @transform_17(%arg0: i32) -> (i32, i32) {
    %c0_i32 = arith.constant 0 : i32
    %c0_i32_0 = arith.constant 0 : i32
    %c0_i32_1 = arith.constant 0 : i32
    return %c0_i32, %c0_i32_0 : i32, i32
  }
  func.func @transform_18(%arg0: i32) -> (i32, i32) {
    %c0_i32 = arith.constant 0 : i32
    %c0_i32_0 = arith.constant 0 : i32
    %c0_i32_1 = arith.constant 0 : i32
    return %c0_i32, %c0_i32_0 : i32, i32
  }
  func.func @transform_19(%arg0: i32) -> (i32, i32, i32) {
    %c0_i32 = arith.constant 0 : i32
    %c0_i32_0 = arith.constant 0 : i32
    %c0_i32_1 = arith.constant 0 : i32
    return %arg0, %c0_i32, %c0_i32_0 : i32, i32, i32
  }
}

</mosaic_0001>

<bundles_post_ra>
// kernel: tpu_custom_call.1
= control target key start
LH: loop header
LB: loop body
LE: loop exit
PB: predicated region body
PF: predicated region fallthrough
CT: control target
= control target key end

     0   :  { %s7653_s0 = inlined_call_operand.vmem [shape: f32[8,16,128], index: 0, kind: input, shape index: {}]   ;;  %s7654_s1 = inlined_call_operand.hbm [shape: f32[8,1,16], index: 1, kind: input, shape index: {}]   ;;  %s7655_s2 = inlined_call_operand.vmem [shape: f32[8,16,1], index: 2, kind: input, shape index: {}]   ;;  %s7656_s3 = inlined_call_operand.hbm [shape: f32[1,128], index: 3, kind: input, shape index: {}]   ;;  %s7657_s4 = inlined_call_operand.hbm [shape: f32[1,128], index: 4, kind: input, shape index: {}]   ;;  %s7658_s5 = inlined_call_operand.hbm [shape: bf16[128,256], index: 5, kind: input, shape index: {}]   ;;  %s7659_s6 = inlined_call_operand.hbm [shape: f32[1,256], index: 6, kind: input, shape index: {}]   ;;  %s7660_s7 = inlined_call_operand.hbm [shape: bf16[256,128], index: 7, kind: input, shape index: {}]   ;;  %s7661_s8 = inlined_call_operand.hbm [shape: f32[1,128], index: 8, kind: input, shape index: {}]   ;;  %s7662_s9 = inlined_call_operand.hbm [shape: f32[1,128], index: 9, kind: input, shape index: {}]   ;;  %s7663_s10 = inlined_call_operand.hbm [shape: f32[1,128], index: 10, kind: input, shape index: {}]   ;;  %s7664_s11 = inlined_call_operand.hbm [shape: bf16[128,128], index: 11, kind: input, shape index: {}]   ;;  %s7665_s12 = inlined_call_operand.hbm [shape: f32[1,128], index: 12, kind: input, shape index: {}]   ;;  %s7666_s13 = inlined_call_operand.hbm [shape: bf16[128,128], index: 13, kind: input, shape index: {}]   ;;  %s7667_s14 = inlined_call_operand.hbm [shape: f32[1,128], index: 14, kind: input, shape index: {}]   ;;  %s7668_s15 = inlined_call_operand.vmem [shape: bf16[128,128], index: 15, kind: input, shape index: {}]   ;;  %s7669_s16 = inlined_call_operand.vmem [shape: f32[1,128], index: 16, kind: input, shape index: {}]   ;;  %s7670_s17 = inlined_call_operand.hbm [shape: bf16[128,128], index: 17, kind: input, shape index: {}]   ;;  %s7671_s18 = inlined_call_operand.vmem [shape: f32[1,128], index: 18, kind: input, shape index: {}]   ;;  %s7672_s19 = inlined_call_operand.hbm [shape: f32[8,16,128], index: 19, kind: output, shape index: {}]  }
   0x1   :  { %7691 = sst [smem:[#allocation41_spill]] %s7653_s0 }
   0x2   :  { %7692 = sst [smem:[#allocation42_spill]] %s7654_s1 }
   0x3   :  { %7693 = sst [smem:[#allocation43_spill]] %s7655_s2 }
   0x4   :  { %7694 = sst [smem:[#allocation44_spill]] %s7656_s3 }
   0x5   :  { %7695 = sst [smem:[#allocation45_spill]] %s7658_s5 }
   0x6   :  { %7696 = sst [smem:[#allocation46_spill]] %s7668_s15 }
   0x7   :  { %7697 = sst [smem:[#allocation47_spill]] %s7669_s16 }
   0x8   :  { %7698 = sst [smem:[#allocation48_spill]] %s7671_s18 }
   0x9   :  { %7699 = sst [smem:[#allocation49_spill]] %s7672_s19 }
   0xa   :  { %24 = vsyncpa [#allocation3], 0 }
   0xb   :  { %26 = vsyncpa [#allocation3 + $0x1], 0 }
   0xc   :  { %27 = vsyncpa [#allocation6], 0 }
   0xd   :  { %28 = vsyncpa [#allocation9], 0 }
   0xe   :  { %29 = vsyncpa [#allocation12], 0 }
   0xf   :  { %30 = vsyncpa [#allocation15], 0 }
  0x10   :  { %31 = vsyncpa [#allocation18], 0 }
  0x11   :  { %32 = vsyncpa [#allocation21], 0 }
  0x12   :  { %33 = vsyncpa [#allocation24], 0 }
  0x13   :  { %34 = vsyncpa [#allocation4], 0 }
  0x14   :  { %36 = vsyncpa [#allocation4 + $0x1], 0  ;;  %s6262_s0 = smov 0   ;;  %s6264_s30 = smov 0  }
  0x15   :  { %s6266_s20 = smov 0   ;;  %s6268_s21 = smov 0  }
  0x16 LB: > { %7700 = sst [smem:[#allocation35_spill]] %s6119_s0  ;;  %s6133_s1 = smov [#allocation5]   ;;  %s6131_s21 = sphi %s6268_s21, %s7773_s21   ;;  %s6127_s20 = sphi %s6266_s20, %s7772_s20   ;;  %s6123_s30 = sphi %s6264_s30, %s7771_s30   ;;  %s6119_s0 = sphi %s6262_s0, %s7770_s0  }
  0x17   : > { %7701 = sst [smem:[#allocation36_spill]] %s6123_s30  ;;  %s500_s22 = sshll.u32 %s6133_s1, 4  ;;  %s6288_s22 = int_to_ptr.vmem [resolvable:$true] %s500_s22 }
  0x18   : > { %s6283_s2 = sadd.s32 4294967295, %s6131_s21   ;;  %p4562_p0 = scmp.ge.s32.totalorder %s6131_s21, 1 }
  0x19   : > { %7702 = sst [smem:[#allocation37_spill]] %s6283_s2  ;;  %p7683_p1 = scmp.eq.s32.totalorder %s6283_s2, 0 }
  0x1a   : > { %p487_p2 = scmp.lt.s32.totalorder %s6131_s21, 3  ;;  %s6134_s24 = smov [#allocation8]  }
  0x1b   : > { %s521_s25 = sshll.u32 %s6134_s24, 4  ;;  %s6135_s26 = smov [#allocation11]   ;;  %s6297_s25 = int_to_ptr.vmem [resolvable:$true] %s521_s25 }
  0x1c   : > { %p6290_p3 = pnand %p4562_p0, %p487_p2  ;;  %s545_s27 = sshll.u32 %s6135_s26, 4  ;;  %s6305_s27 = int_to_ptr.vmem [resolvable:$true] %s545_s27 }
  0x1d   : > { %s7706_s1 = sld [smem:[#allocation44_spill]] }
  0x1e   : > { %s7703_s23 = scalar_select %p6290_p3, 1, 0 }
  0x1f   : > { %p5214_p5 = pneg %p6290_p3 }
  0x20   : > { %7704 = sst [smem:[#allocation38_spill]] %s7703_s23 }
  0x21   : > { %p6301_p6 = pnand %p5214_p5, %p7683_p1 }
  0x23   : > { %s5643_s19 = scalar_lea.hbm %s7706_s1, 16  ;;  %p6315_p8 = pneg %p6301_p6 }
  0x24   : > { %p5644_p7 = scmp.ne.s32.totalorder %s7706_s1, %s5643_s19  ;;  %p5650_p11 = scmp.lt.u32.totalorder %s5643_s19, %s7706_s1 }
  0x26   : > { %p5646_p9 = pnand %p6315_p8, %p5644_p7 }
  0x28   : > { %p5647_p10 = pneg %p5646_p9 }
  0x2a   : > { %p5652_p12 = pnand %p5650_p11, %p5647_p10 }
  0x2c   : > { %5655 = shalt.err (!%p5652_p12)
}
  0x2d   : > { %s5656_s16 = scalar_lea.vmem %s6288_s22, 16  ;;  %s5663_s18 = scalar_lea.vmem %s6288_s22, 32 }
  0x2e   : > { %p5657_p13 = scmp.ne.s32.totalorder %s6288_s22, %s5656_s16  ;;  %p5664_p5 = scmp.lt.s32.totalorder %s6288_s22, %s6288_s22 }
  0x2f   : > { %p5665_p7 = scmp.lt.s32.totalorder %s5663_s18, %s5656_s16 }
  0x30   : > { %p5659_p0 = pnand %p5657_p13, %p6315_p8 }
  0x31   : > { %p5666_p9 = por %p5665_p7, %p5664_p5 }
  0x32   : > { %p5660_p2 = pneg %p5659_p0 }
  0x34   : > { %p5667_p4 = pnand %p5666_p9, %p5660_p2 }
  0x36   : > { %5670 = shalt.err (!%p5667_p4)
}
  0x37   : > { %5217 = dma.hbm_to_vmem [thread:$0]  (!%p6301_p6), %s7706_s1, 16, %s6288_s22, [#allocation6]  }
  0x38   : > { %s7708_s5 = sld [smem:[#allocation45_spill]] }
  0x3e   : > { %s5671_s26 = scalar_lea.hbm %s7708_s5, 2048 }
  0x3f   : > { %p5672_p10 = scmp.ne.s32.totalorder %s7708_s5, %s5671_s26  ;;  %p5678_p4 = scmp.lt.u32.totalorder %s5671_s26, %s7708_s5 }
  0x41   : > { %p5674_p11 = pnand %p5672_p10, %p6315_p8 }
  0x43   : > { %p5675_p12 = pneg %p5674_p11 }
  0x45   : > { %p5680_p13 = pnand %p5678_p4, %p5675_p12 }
  0x47   : > { %5683 = shalt.err (!%p5680_p13)
}
  0x48   : > { %s5684_s22 = scalar_lea.vmem %s6297_s25, 2048  ;;  %p5692_p7 = scmp.lt.s32.totalorder %s6297_s25, %s6297_s25 }
  0x49   : > { %p5685_p0 = scmp.ne.s32.totalorder %s6297_s25, %s5684_s22  ;;  %p5693_p9 = scmp.lt.s32.totalorder %s5684_s22, %s5684_s22 }
  0x4b   : > { %p5687_p2 = pnand %p5685_p0, %p6315_p8  ;;  %p5694_p10 = por %p5693_p9, %p5692_p7 }
  0x4d   : > { %p5688_p5 = pneg %p5687_p2 }
  0x4f   : > { %p5695_p11 = pnand %p5694_p10, %p5688_p5 }
  0x51   : > { %5698 = shalt.err (!%p5695_p11)
}
  0x52   : > { %s6136_s2 = smov 128   ;;  %s6137_s23 = smov 8  }
  0x53   : > { %5223 = dma.hbm_to_vmem [thread:$0]  (!%p6301_p6), %s7708_s5, 2048, %s6297_s25, [#allocation9], %s6136_s2, %s6136_s2, %s6137_s23  }
  0x54   : > { %s5699_s26 = scalar_lea.hbm %s7660_s7, 2048 }
  0x55   : > { %p5700_p12 = scmp.ne.s32.totalorder %s7660_s7, %s5699_s26  ;;  %p5706_p0 = scmp.lt.u32.totalorder %s5699_s26, %s7660_s7 }
  0x57   : > { %p5702_p4 = pnand %p5700_p12, %p6315_p8 }
  0x59   : > { %p5703_p13 = pneg %p5702_p4 }
  0x5b   : > { %p5708_p2 = pnand %p5706_p0, %p5703_p13 }
  0x5d   : > { %5711 = shalt.err (!%p5708_p2)
}
  0x5e   : > { %s5712_s25 = scalar_lea.vmem %s6305_s27, 2048  ;;  %p5720_p10 = scmp.lt.s32.totalorder %s6305_s27, %s6305_s27 }
  0x5f   : > { %p5713_p5 = scmp.ne.s32.totalorder %s6305_s27, %s5712_s25  ;;  %p5721_p11 = scmp.lt.s32.totalorder %s5712_s25, %s5712_s25 }
  0x61   : > { %p5715_p7 = pnand %p5713_p5, %p6315_p8  ;;  %p5722_p12 = por %p5721_p11, %p5720_p10 }
  0x63   : > { %p5716_p9 = pneg %p5715_p7 }
  0x65   : > { %p5723_p4 = pnand %p5722_p12, %p5716_p9 }
  0x67   : > { %5726 = shalt.err (!%p5723_p4)
}
  0x68   : > { %s6138_s2 = smov 64   ;;  %s6139_s1 = smov 4  }
  0x69   : > { %5229 = dma.hbm_to_vmem [thread:$0]  (!%p6301_p6), %s7660_s7, 2048, %s6305_s27, [#allocation12], %s6138_s2, %s6138_s2, %s6139_s1  }
  0x6a   : > { %s6140_s19 = smov [#allocation14]   ;;  %s6141_s29 = smov [#allocation17]  }
  0x6b   : > { %s570_s28 = sshll.u32 %s6140_s19, 4  ;;  %s591_s26 = sshll.u32 %s6141_s29, 4  ;;  %s571_s28 = int_to_ptr.vmem [resolvable:$true] %s570_s28  ;;  %s592_s26 = int_to_ptr.vmem [resolvable:$true] %s591_s26 }
  0x6c   : > { %s5727_s22 = scalar_lea.hbm %s7662_s9, 16 }
  0x6d   : > { %p5728_p13 = scmp.ne.s32.totalorder %s7662_s9, %s5727_s22  ;;  %p5734_p5 = scmp.lt.u32.totalorder %s5727_s22, %s7662_s9 }
  0x6f   : > { %p5730_p0 = pnand %p5728_p13, %p6315_p8 }
  0x71   : > { %p5731_p2 = pneg %p5730_p0 }
  0x73   : > { %p5736_p7 = pnand %p5734_p5, %p5731_p2 }
  0x75   : > { %5739 = shalt.err (!%p5736_p7)
}
  0x76   : > { %s5740_s27 = scalar_lea.vmem %s571_s28, 16  ;;  %s5747_s23 = scalar_lea.vmem %s571_s28, 32 }
  0x77   : > { %p5741_p9 = scmp.ne.s32.totalorder %s571_s28, %s5740_s27  ;;  %p5748_p12 = scmp.lt.s32.totalorder %s571_s28, %s571_s28 }
  0x78   : > { %p5749_p4 = scmp.lt.s32.totalorder %s5747_s23, %s5740_s27 }
  0x79   : > { %p5743_p10 = pnand %p5741_p9, %p6315_p8 }
  0x7a   : > { %p5750_p1 = por %p5749_p4, %p5748_p12 }
  0x7b   : > { %p5744_p11 = pneg %p5743_p10 }
  0x7d   : > { %p5751_p3 = pnand %p5750_p1, %p5744_p11 }
  0x7f   : > { %5754 = shalt.err (!%p5751_p3)
}
  0x80   : > { %5235 = dma.hbm_to_vmem [thread:$0]  (!%p6301_p6), %s7662_s9, 16, %s571_s28, [#allocation15]  }
  0x81   : > { %s5755_s19 = scalar_lea.hbm %s7664_s11, 1024 }
  0x82   : > { %p5756_p13 = scmp.ne.s32.totalorder %s7664_s11, %s5755_s19  ;;  %p5762_p3 = scmp.lt.u32.totalorder %s5755_s19, %s7664_s11 }
  0x84   : > { %p5758_p0 = pnand %p5756_p13, %p6315_p8 }
  0x86   : > { %p5759_p1 = pneg %p5758_p0 }
  0x88   : > { %p5764_p2 = pnand %p5762_p3, %p5759_p1 }
  0x8a   : > { %5767 = shalt.err (!%p5764_p2)
}
  0x8b   : > { %s5768_s25 = scalar_lea.vmem %s592_s26, 1024  ;;  %p5776_p10 = scmp.lt.s32.totalorder %s592_s26, %s592_s26 }
  0x8c   : > { %p5769_p5 = scmp.ne.s32.totalorder %s592_s26, %s5768_s25  ;;  %p5777_p11 = scmp.lt.s32.totalorder %s5768_s25, %s5768_s25 }
  0x8e   : > { %p5771_p7 = pnand %p5769_p5, %p6315_p8  ;;  %p5778_p12 = por %p5777_p11, %p5776_p10 }
  0x90   : > { %p5772_p9 = pneg %p5771_p7 }
  0x92   : > { %p5779_p4 = pnand %p5778_p12, %p5772_p9 }
  0x94   : > { %5782 = shalt.err (!%p5779_p4)
}
  0x95   : > { %5241 = dma.hbm_to_vmem [thread:$0]  (!%p6301_p6), %s7664_s11, 1024, %s592_s26, [#allocation18], %s6138_s2, %s6138_s2, %s6139_s1  }
  0x96   : > { %s6142_s23 = smov [#allocation20]   ;;  %s6143_s15 = smov [#allocation7]  }
  0x97   : > { %s615_s5 = sshll.u32 %s6142_s23, 4  ;;  %s511_s0 = sshll.u32 %s6143_s15, 4  ;;  %s616_s5 = int_to_ptr.vmem [resolvable:$true] %s615_s5  ;;  %s512_s0 = int_to_ptr.vmem [resolvable:$true] %s511_s0 }
  0x98   : > { %s5783_s29 = scalar_lea.hbm %s7666_s13, 1024 }
  0x99   : > { %p5784_p13 = scmp.ne.s32.totalorder %s7666_s13, %s5783_s29  ;;  %p5790_p3 = scmp.lt.u32.totalorder %s5783_s29, %s7666_s13 }
  0x9b   : > { %p5786_p0 = pnand %p5784_p13, %p6315_p8 }
  0x9d   : > { %p5787_p1 = pneg %p5786_p0 }
  0x9f   : > { %p5792_p2 = pnand %p5790_p3, %p5787_p1 }
  0xa1   : > { %5795 = shalt.err (!%p5792_p2)
}
  0xa2   : > { %s5796_s26 = scalar_lea.vmem %s616_s5, 1024  ;;  %p5804_p10 = scmp.lt.s32.totalorder %s616_s5, %s616_s5 }
  0xa3   : > { %p5797_p5 = scmp.ne.s32.totalorder %s616_s5, %s5796_s26  ;;  %p5805_p11 = scmp.lt.s32.totalorder %s5796_s26, %s5796_s26 }
  0xa5   : > { %p5799_p7 = pnand %p5797_p5, %p6315_p8  ;;  %p5806_p12 = por %p5805_p11, %p5804_p10 }
  0xa7   : > { %p5800_p9 = pneg %p5799_p7 }
  0xa9   : > { %p5807_p4 = pnand %p5806_p12, %p5800_p9 }
  0xab   : > { %5810 = shalt.err (!%p5807_p4)
}
  0xac   : > { %5247 = dma.hbm_to_vmem [thread:$0]  (!%p6301_p6), %s7666_s13, 1024, %s616_s5, [#allocation21], %s6138_s2, %s6138_s2, %s6139_s1  }
  0xad   : > { %s5811_s30 = scalar_lea.hbm %s7657_s4, 16 }
  0xae   : > { %p5812_p13 = scmp.ne.s32.totalorder %s7657_s4, %s5811_s30  ;;  %p5818_p3 = scmp.lt.u32.totalorder %s5811_s30, %s7657_s4 }
  0xb0   : > { %p5814_p0 = pnand %p5812_p13, %p6315_p8 }
  0xb2   : > { %p5815_p1 = pneg %p5814_p0 }
  0xb4   : > { %p5820_p2 = pnand %p5818_p3, %p5815_p1 }
  0xb6   : > { %5823 = shalt.err (!%p5820_p2)
}
  0xb7   : > { %s5824_s22 = scalar_lea.vmem %s512_s0, 16  ;;  %s5831_s5 = scalar_lea.vmem %s512_s0, 32 }
  0xb8   : > { %p5825_p5 = scmp.ne.s32.totalorder %s512_s0, %s5824_s22  ;;  %p5832_p10 = scmp.lt.s32.totalorder %s512_s0, %s512_s0 }
  0xb9   : > { %p5833_p11 = scmp.lt.s32.totalorder %s5831_s5, %s5824_s22 }
  0xba   : > { %p5827_p7 = pnand %p5825_p5, %p6315_p8 }
  0xbb   : > { %p5834_p12 = por %p5833_p11, %p5832_p10 }
  0xbc   : > { %p5828_p9 = pneg %p5827_p7 }
  0xbe   : > { %p5835_p4 = pnand %p5834_p12, %p5828_p9 }
  0xc0   : > { %5838 = shalt.err (!%p5835_p4)
}
  0xc1   : > { %5220 = dma.hbm_to_vmem [thread:$0]  (!%p6301_p6), %s7657_s4, 16, %s512_s0, [#allocation6]  }
  0xc2   : > { %s6144_s28 = smov [#allocation10]   ;;  %s6145_s23 = smov [#allocation13]  }
  0xc3   : > { %s535_s27 = sshll.u32 %s6144_s28, 4  ;;  %s559_s15 = sshll.u32 %s6145_s23, 4  ;;  %s536_s27 = int_to_ptr.vmem [resolvable:$true] %s535_s27  ;;  %s560_s15 = int_to_ptr.vmem [resolvable:$true] %s559_s15 }
  0xc4   : > { %s5839_s29 = scalar_lea.hbm %s7659_s6, 32 }
  0xc5   : > { %p5840_p13 = scmp.ne.s32.totalorder %s7659_s6, %s5839_s29  ;;  %p5846_p3 = scmp.lt.u32.totalorder %s5839_s29, %s7659_s6 }
  0xc7   : > { %p5842_p0 = pnand %p5840_p13, %p6315_p8 }
  0xc9   : > { %p5843_p1 = pneg %p5842_p0 }
  0xcb   : > { %p5848_p2 = pnand %p5846_p3, %p5843_p1 }
  0xcd   : > { %5851 = shalt.err (!%p5848_p2)
}
  0xce   : > { %s5852_s0 = scalar_lea.vmem %s536_s27, 32  ;;  %p5860_p10 = scmp.lt.s32.totalorder %s536_s27, %s536_s27 }
  0xcf   : > { %p5853_p5 = scmp.ne.s32.totalorder %s536_s27, %s5852_s0  ;;  %p5861_p11 = scmp.lt.s32.totalorder %s5852_s0, %s5852_s0 }
  0xd1   : > { %p5855_p7 = pnand %p5853_p5, %p6315_p8  ;;  %p5862_p12 = por %p5861_p11, %p5860_p10 }
  0xd3   : > { %p5856_p9 = pneg %p5855_p7 }
  0xd5   : > { %p5863_p4 = pnand %p5862_p12, %p5856_p9 }
  0xd7   : > { %5866 = shalt.err (!%p5863_p4)
}
  0xd8   : > { %5226 = dma.hbm_to_vmem [thread:$0]  (!%p6301_p6), %s7659_s6, 32, %s536_s27, [#allocation9]  }
  0xd9   : > { %s5867_s30 = scalar_lea.hbm %s7661_s8, 16 }
  0xda   : > { %p5868_p13 = scmp.ne.s32.totalorder %s7661_s8, %s5867_s30  ;;  %p5874_p3 = scmp.lt.u32.totalorder %s5867_s30, %s7661_s8 }
  0xdc   : > { %p5870_p0 = pnand %p5868_p13, %p6315_p8 }
  0xde   : > { %p5871_p1 = pneg %p5870_p0 }
  0xe0   : > { %p5876_p2 = pnand %p5874_p3, %p5871_p1 }
  0xe2   : > { %5879 = shalt.err (!%p5876_p2)
}
  0xe3   : > { %s5880_s22 = scalar_lea.vmem %s560_s15, 16  ;;  %s5887_s27 = scalar_lea.vmem %s560_s15, 32 }
  0xe4   : > { %p5881_p5 = scmp.ne.s32.totalorder %s560_s15, %s5880_s22  ;;  %p5888_p10 = scmp.lt.s32.totalorder %s560_s15, %s560_s15 }
  0xe5   : > { %p5889_p11 = scmp.lt.s32.totalorder %s5887_s27, %s5880_s22 }
  0xe6   : > { %p5883_p7 = pnand %p5881_p5, %p6315_p8 }
  0xe7   : > { %p5890_p12 = por %p5889_p11, %p5888_p10 }
  0xe8   : > { %p5884_p9 = pneg %p5883_p7 }
  0xea   : > { %p5891_p4 = pnand %p5890_p12, %p5884_p9 }
  0xec   : > { %5894 = shalt.err (!%p5891_p4)
}
  0xed   : > { %5232 = dma.hbm_to_vmem [thread:$0]  (!%p6301_p6), %s7661_s8, 16, %s560_s15, [#allocation12]  }
  0xee   : > { %s6146_s25 = smov [#allocation16]   ;;  %s6147_s28 = smov [#allocation19]  }
  0xef   : > { %s581_s26 = sshll.u32 %s6146_s25, 4  ;;  %s605_s23 = sshll.u32 %s6147_s28, 4  ;;  %s582_s26 = int_to_ptr.vmem [resolvable:$true] %s581_s26  ;;  %s606_s23 = int_to_ptr.vmem [resolvable:$true] %s605_s23 }
  0xf0   : > { %s5895_s29 = scalar_lea.hbm %s7663_s10, 16 }
  0xf1   : > { %p5896_p13 = scmp.ne.s32.totalorder %s7663_s10, %s5895_s29  ;;  %p5902_p3 = scmp.lt.u32.totalorder %s5895_s29, %s7663_s10 }
  0xf3   : > { %p5898_p0 = pnand %p5896_p13, %p6315_p8 }
  0xf5   : > { %p5899_p1 = pneg %p5898_p0 }
  0xf7   : > { %p5904_p2 = pnand %p5902_p3, %p5899_p1 }
  0xf9   : > { %5907 = shalt.err (!%p5904_p2)
}
  0xfa   : > { %s5908_s15 = scalar_lea.vmem %s582_s26, 16  ;;  %s5915_s5 = scalar_lea.vmem %s582_s26, 32 }
  0xfb   : > { %p5909_p5 = scmp.ne.s32.totalorder %s582_s26, %s5908_s15  ;;  %p5916_p10 = scmp.lt.s32.totalorder %s582_s26, %s582_s26 }
  0xfc   : > { %p5917_p11 = scmp.lt.s32.totalorder %s5915_s5, %s5908_s15 }
  0xfd   : > { %p5911_p7 = pnand %p5909_p5, %p6315_p8 }
  0xfe   : > { %p5918_p12 = por %p5917_p11, %p5916_p10 }
  0xff   : > { %p5912_p9 = pneg %p5911_p7 }
 0x101   : > { %p5919_p4 = pnand %p5918_p12, %p5912_p9 }
 0x103   : > { %5922 = shalt.err (!%p5919_p4)
}
 0x104   : > { %5238 = dma.hbm_to_vmem [thread:$0]  (!%p6301_p6), %s7663_s10, 16, %s582_s26, [#allocation15]  }
 0x105   : > { %s5923_s19 = scalar_lea.hbm %s7665_s12, 16 }
 0x106   : > { %p5924_p13 = scmp.ne.s32.totalorder %s7665_s12, %s5923_s19  ;;  %p5930_p3 = scmp.lt.u32.totalorder %s5923_s19, %s7665_s12 }
 0x108   : > { %p5926_p0 = pnand %p5924_p13, %p6315_p8 }
 0x10a   : > { %p5927_p1 = pneg %p5926_p0 }
 0x10c   : > { %p5932_p2 = pnand %p5930_p3, %p5927_p1 }
 0x10e   : > { %5935 = shalt.err (!%p5932_p2)
}
 0x10f   : > { %s5936_s27 = scalar_lea.vmem %s606_s23, 16  ;;  %s5943_s26 = scalar_lea.vmem %s606_s23, 32 }
 0x110   : > { %p5937_p5 = scmp.ne.s32.totalorder %s606_s23, %s5936_s27  ;;  %p5944_p10 = scmp.lt.s32.totalorder %s606_s23, %s606_s23 }
 0x111   : > { %p5945_p11 = scmp.lt.s32.totalorder %s5943_s26, %s5936_s27 }
 0x112   : > { %p5939_p7 = pnand %p5937_p5, %p6315_p8 }
 0x113   : > { %p5946_p12 = por %p5945_p11, %p5944_p10 }
 0x114   : > { %p5940_p9 = pneg %p5939_p7 }
 0x116   : > { %p5947_p4 = pnand %p5946_p12, %p5940_p9 }
 0x118   : > { %5950 = shalt.err (!%p5947_p4)
}
 0x119   : > { %5244 = dma.hbm_to_vmem [thread:$0]  (!%p6301_p6), %s7665_s12, 16, %s606_s23, [#allocation18]  }
 0x11a   : > { %s6148_s0 = smov [#allocation22]   ;;  %s6149_s28 = smov [#allocation23]  }
 0x11b   : > { %s629_s25 = sshll.u32 %s6148_s0, 4  ;;  %s645_s30 = sshll.u32 %s6149_s28, 4  ;;  %s630_s25 = int_to_ptr.vmem [resolvable:$true] %s629_s25  ;;  %s646_s30 = int_to_ptr.vmem [resolvable:$true] %s645_s30 }
 0x11c   : > { %s5951_s16 = scalar_lea.hbm %s7667_s14, 16 }
 0x11d   : > { %p5952_p13 = scmp.ne.s32.totalorder %s7667_s14, %s5951_s16  ;;  %p5958_p3 = scmp.lt.u32.totalorder %s5951_s16, %s7667_s14 }
 0x11f   : > { %p5954_p0 = pnand %p5952_p13, %p6315_p8 }
 0x121   : > { %p5955_p1 = pneg %p5954_p0 }
 0x123   : > { %p5960_p2 = pnand %p5958_p3, %p5955_p1 }
 0x125   : > { %5963 = shalt.err (!%p5960_p2)
}
 0x126   : > { %s5964_s23 = scalar_lea.vmem %s630_s25, 16  ;;  %s5971_s15 = scalar_lea.vmem %s630_s25, 32 }
 0x127   : > { %p5965_p5 = scmp.ne.s32.totalorder %s630_s25, %s5964_s23  ;;  %p5972_p10 = scmp.lt.s32.totalorder %s630_s25, %s630_s25 }
 0x128   : > { %p5973_p11 = scmp.lt.s32.totalorder %s5971_s15, %s5964_s23 }
 0x129   : > { %p5967_p7 = pnand %p5965_p5, %p6315_p8 }
 0x12a   : > { %p5974_p12 = por %p5973_p11, %p5972_p10 }
 0x12b   : > { %p5968_p9 = pneg %p5967_p7 }
 0x12d   : > { %p5975_p4 = pnand %p5974_p12, %p5968_p9 }
 0x12f   : > { %5978 = shalt.err (!%p5975_p4)
}
 0x130   : > { %5250 = dma.hbm_to_vmem [thread:$0]  (!%p6301_p6), %s7667_s14, 16, %s630_s25, [#allocation21]  }
 0x131   : > { %s5979_s29 = scalar_lea.hbm %s7670_s17, 1024 }
 0x132   : > { %p5980_p13 = scmp.ne.s32.totalorder %s7670_s17, %s5979_s29  ;;  %p5986_p3 = scmp.lt.u32.totalorder %s5979_s29, %s7670_s17 }
 0x134   : > { %p5982_p0 = pnand %p5980_p13, %p6315_p8 }
 0x136   : > { %p5983_p1 = pneg %p5982_p0 }
 0x138   : > { %p5988_p2 = pnand %p5986_p3, %p5983_p1 }
 0x13a   : > { %5991 = shalt.err (!%p5988_p2)
}
 0x13b   : > { %s5992_s26 = scalar_lea.vmem %s646_s30, 1024  ;;  %p6000_p10 = scmp.lt.s32.totalorder %s646_s30, %s646_s30 }
 0x13c   : > { %p5993_p5 = scmp.ne.s32.totalorder %s646_s30, %s5992_s26  ;;  %p6001_p11 = scmp.lt.s32.totalorder %s5992_s26, %s5992_s26 }
 0x13e   : > { %p5995_p7 = pnand %p5993_p5, %p6315_p8  ;;  %p6002_p12 = por %p6001_p11, %p6000_p10 }
 0x140   : > { %p5996_p9 = pneg %p5995_p7 }
 0x142   : > { %p6003_p4 = pnand %p6002_p12, %p5996_p9 }
 0x144   : > { %6006 = shalt.err (!%p6003_p4)
}
 0x145   : > { %s7709_s24 = sld [smem:[#allocation36_spill]]  ;;  %s7710_s15 = sld [smem:[#allocation35_spill]] }
 0x146   : > { %s7711_s5 = sld [smem:[#allocation37_spill]]  ;;  %s4561_s3 = sadd.s32 4294967294, %s6131_s21  }
 0x147   : > { %5253 = dma.hbm_to_vmem [thread:$0]  (!%p6301_p6), %s7670_s17, 1024, %s646_s30, [#allocation24], %s6138_s2, %s6138_s2, %s6139_s1  }
 0x148   : > { %s6577_s0 = sadd.s32 1, %s6131_s21   ;;  %s75_s28 = sadd.s32 1, %s6127_s20 }
 0x149   : > { %s72_s19 = ssub.s32 %s6131_s21, %s6577_s0  ;;  %p83_p0 = scmp.eq.s32.totalorder %s6131_s21, 0 }
 0x14a   : > { %p73_p13 = scmp.eq.s32.totalorder %s72_s19, 0  ;;  %p480_p9 = scmp.eq.s32.totalorder %s4561_s3, 1 }
 0x14b   : > { %p82_p8 = scmp.ne.s32.totalorder %s6127_s20, %s7709_s24  ;;  %p88_p1 = scmp.ne.s32.totalorder %s7709_s24, %s7710_s15 }
 0x14c   : > { %p474_p3 = scmp.eq.s32.totalorder %s7711_s5, 1  ;;  %p7712_p5 = scmp.eq.s32.totalorder %s7711_s5, 0 }
 0x14d   : > { %s6589_s29 = scalar_select %p73_p13, %s6127_s20, %s75_s28  }
 0x14e   : > { %p84_p2 = por %p83_p0, %p82_p8  ;;  %p6593_p7 = por %p7712_p5, %p88_p1 }
 0x14f   : > { %p6597_p6 = por %p474_p3, %p82_p8  ;;  %p5275_p10 = scmp.lt.s32.totalorder %s6131_s21, 2 }
 0x150   : > { %s672_s1 = sand.u32 1, %s6127_s20   ;;  %p6603_p11 = por %p480_p9, %p88_p1 }
 0x151   : > { %s7714_s2 = scalar_select %p6597_p6, 1, 0 }
 0x152   : > { %s7715_s30 = scalar_select %p6603_p11, 1, 0 }
 0x153   : > { %s4577_s18 = sshll.u32 %s672_s1, 2  ;;  %s4713_s22 = sshll.u32 %s6131_s21, 6 }
 0x154   : > { %s7716_s25 = sld [smem:[#allocation42_spill]]  ;;  %s676_s24 = scalar_lea.vmem [#allocation2], %s4577_s18 }
 0x155   : > { %s683_s15 = sshll.u32 %s676_s24, 4  ;;  %p6613_p12 = pnand %p5275_p10, %p84_p2  ;;  %s6617_s15 = int_to_ptr.vmem [resolvable:$true] %s683_s15 }
 0x156   : > { %s6619_s3 = scalar_lea.sflag [#allocation3], %s672_s1 }
 0x157   : > { %p6009_p8 = pneg %p6613_p12 }
 0x15a   : > { %s6611_s23 = scalar_lea.hbm %s7716_s25, %s4713_s22  ;;  %s6012_s22 = scalar_lea.hbm %s7716_s25, 128 }
 0x15b   : > { %s6007_s28 = scalar_lea.hbm %s6611_s23, 64  ;;  %p6013_p1 = scmp.lt.u32.totalorder %s6611_s23, %s7716_s25 }
 0x15c   : > { %p6008_p4 = scmp.ne.s32.totalorder %s6611_s23, %s6007_s28  ;;  %p6014_p3 = scmp.lt.u32.totalorder %s6012_s22, %s6007_s28 }
 0x15d   : > { %p6016_p5 = scmp.lt.u32.totalorder %s6007_s28, %s6611_s23 }
 0x15e   : > { %p6010_p13 = pnand %p6009_p8, %p6008_p4  ;;  %p6015_p2 = por %p6014_p3, %p6013_p1 }
 0x160   : > { %p6011_p0 = pneg %p6010_p13  ;;  %p6017_p9 = por %p6016_p5, %p6015_p2 }
 0x162   : > { %p6018_p10 = pnand %p6017_p9, %p6011_p0 }
 0x164   : > { %6021 = shalt.err (!%p6018_p10)
}
 0x165   : > { %s6022_s1 = scalar_lea.vmem %s6617_s15, 64  ;;  %s6150_s24 = smov [#allocation2]  }
 0x166   : > { %p6023_p4 = scmp.ne.s32.totalorder %s6617_s15, %s6022_s1  ;;  %s6027_s19 = sshll.u32 %s6150_s24, 4  ;;  %s6028_s19 = int_to_ptr.vmem [resolvable:$false] %s6027_s19 }
 0x167   : > { %s6029_s18 = scalar_lea.vmem %s6028_s19, 128  ;;  %p6030_p6 = scmp.lt.s32.totalorder %s6617_s15, %s6028_s19 }
 0x168   : > { %p6025_p13 = pnand %p6023_p4, %p6009_p8  ;;  %p6031_p1 = scmp.lt.s32.totalorder %s6029_s18, %s6022_s1 }
 0x16a   : > { %p6026_p11 = pneg %p6025_p13  ;;  %p6032_p3 = por %p6031_p1, %p6030_p6 }
 0x16c   : > { %p6033_p2 = pnand %p6032_p3, %p6026_p11 }
 0x16e   : > { %6036 = shalt.err (!%p6033_p2)
}
 0x16f   : > { %s6151_s28 = smov 16   ;;  %s6152_s22 = smov 1  }
 0x170   : > { %5257 = dma.hbm_to_vmem [thread:$0]  (!%p6613_p12), %s6611_s23, 64, %s6617_s15, %s6619_s3, %s6151_s28, %s6151_s28, %s6152_s22  }
 0x171   : > { %s7718_s27 = sld [smem:[#allocation38_spill]] }
 0x177   : > { %p7719_p8 = scmp.ne.s32.totalorder %s7718_s27, 0 }
 0x179   : > { %705 = sbr.rel (%p7719_p8) target bundleno = 4727 (0x1277), region = 96 }
 0x180   : > { %s7720_s26 = sld [smem:[#allocation36_spill]] }
 0x186   : > { %s6650_s24 = sand.u32 1, %s7720_s26  }
 0x187   : > { %s4581_s1 = sshll.u32 %s6650_s24, 2  ;;  %s708_s19 = scalar_lea.sflag [#allocation3], %s6650_s24 }
 0x188   : > { %s6654_s18 = scalar_lea.vmem [#allocation2], %s4581_s1 }
 0x189   : > { %6082 = dma.done.wait (%p6593_p7), %s708_s19, 64  }
 0x18a   : > { %6084 = vsyncadd (%p6593_p7), %s708_s19, 4294967232  ;;  %s7721_s5 = sld [smem:[#allocation37_spill]] }
 0x190   : > { %p7722_p6 = scmp.eq.s32.totalorder %s7721_s5, 0 }
 0x192   : > { %6086 = dma.done.wait (%p7722_p6), [#allocation6], 32   ;;  %p7723_p11 = pmov %p7722_p6 }
 0x193   : > { %p7724_p12 = pmov %p7722_p6 }
 0x194   : > { %6088 = vsyncadd (%p7723_p11), [#allocation6], 4294967264 }
 0x195   : > { %6090 = dma.done.wait (%p7724_p12), [#allocation9], 2080   ;;  %p7725_p0 = pmov %p7722_p6 }
 0x197   : > { %6092 = vsyncadd (%p7725_p0), [#allocation9], 4294965216  ;;  %p7726_p5 = pmov %p7725_p0 }
 0x198   : > { %p7727_p9 = pmov %p7725_p0 }
 0x199   : > { %6094 = dma.done.wait (%p7726_p5), [#allocation12], 2064  }
 0x19a   : > { %6096 = vsyncadd (%p7727_p9), [#allocation12], 4294965232  ;;  %p7728_p7 = pmov %p7725_p0 }
 0x19b   : > { %p7729_p10 = pmov %p7725_p0 }
 0x19c   : > { %6098 = dma.done.wait (%p7728_p7), [#allocation15], 32  }
 0x19d   : > { %6100 = vsyncadd (%p7729_p10), [#allocation15], 4294967264  ;;  %p7730_p4 = pmov %p7725_p0 }
 0x19e   : > { %p7731_p13 = pmov %p7725_p0 }
 0x19f   : > { %6102 = dma.done.wait (%p7730_p4), [#allocation18], 1040  }
 0x1a0   : > { %6104 = vsyncadd (%p7731_p13), [#allocation18], 4294966256  ;;  %p7732_p1 = pmov %p7725_p0 }
 0x1a1   : > { %p7733_p3 = pmov %p7725_p0 }
 0x1a2   : > { %6106 = dma.done.wait (%p7732_p1), [#allocation21], 1040  }
 0x1a3   : > { %6108 = vsyncadd (%p7733_p3), [#allocation21], 4294966256  ;;  %p7734_p2 = pmov %p7725_p0 }
 0x1a4   : > { %p7735_p8 = pmov %p7725_p0 }
 0x1a5   : > { %6110 = dma.done.wait (%p7734_p2), [#allocation24], 1024  }
 0x1a6   : > { %6112 = vsyncadd (%p7735_p8), [#allocation24], 4294966272  ;;  %s4596_s16 = sshll.u32 %s7721_s5, 2  ;;  %s7736_s28 = sld [smem:[#allocation41_spill]]  ;;  %v5411_v8 = vld [vmem:[#allocation8 + $0x4] ss:$8 sps:$4 sm:$0xff]  }
 0x1a7   : > { %p831_p6 = scmp.lt.s32.totalorder %s4596_s16, 7  ;;  %v5413_v9 = vld [vmem:[#allocation8] ss:$8 sps:$4 sm:$0xff]   ;;  %v5414_v10 = vld [vmem:[#allocation8 + $0x14] ss:$8 sps:$4 sm:$0xff]   ;;  %1086 = vmatprep.subr.bf16.mxu1 %v5411_v8  ;;  %v6153_v56 = vmov 0  }
 0x1a8   : > { %1087 = vmatpush1.bf16.msra.mxu1 %v5413_v9  ;;  %v5416_v43 = vld [vmem:[#allocation8 + $0x10] ss:$8 sps:$4 sm:$0xff]   ;;  %v5417_v44 = vld [vmem:[#allocation8 + $0x24] ss:$8 sps:$4 sm:$0xff]   ;;  %v5419_v45 = vld [vmem:[#allocation8 + $0x20] ss:$8 sps:$4 sm:$0xff]   ;;  %1118 = vmatprep.mubr.bf16.mxu1 %v6153_v56 }
 0x1a9   : > { %s7775_s16 = smov (!%p831_p6, %s4596_s16), 7  ;;  %1088 = vmatprep.subr.bf16.mxu1 %v5414_v10  ;;  %v5420_v46 = vld [vmem:[#allocation8 + $0x34] ss:$8 sps:$4 sm:$0xff]   ;;  %v5422_v47 = vld [vmem:[#allocation8 + $0x30] ss:$8 sps:$4 sm:$0xff]   ;;  %5410 = vset.pattern.permute.xlu1 %v6153_v56  ;;  %v5435_v57 = vld [vmem:[#allocation11 + $0x40] sm:$0xff]  }
 0x1aa   : > { %s4714_s23 = sshll.u32 %s7775_s16, 4  ;;  %v5423_v48 = vld [vmem:[#allocation8 + $0x44] ss:$8 sps:$4 sm:$0xff]   ;;  %v5425_v49 = vld [vmem:[#allocation8 + $0x40] ss:$8 sps:$4 sm:$0xff]   ;;  %5409 = vset.pattern.permute.xlu0 %v6153_v56  ;;  %s7739_s1 = sld [smem:[#allocation46_spill]] }
 0x1ab   : > { %v5426_v50 = vld [vmem:[#allocation8 + $0x54] ss:$8 sps:$4 sm:$0xff]   ;;  %v5428_v51 = vld [vmem:[#allocation8 + $0x50] ss:$8 sps:$4 sm:$0xff]   ;;  %v5429_v52 = vld [vmem:[#allocation8 + $0x64] ss:$8 sps:$4 sm:$0xff]  }
 0x1ac   : > { %s835_s22 = scalar_lea.vmem %s7736_s28, %s4714_s23  ;;  %1089 = vmatpush1.bf16.msra.mxu1 %v5416_v43  ;;  %v5431_v53 = vld [vmem:[#allocation8 + $0x60] ss:$8 sps:$4 sm:$0xff]   ;;  %v5432_v54 = vld [vmem:[#allocation8 + $0x74] ss:$8 sps:$4 sm:$0xff]   ;;  %v5434_v55 = vld [vmem:[#allocation8 + $0x70] ss:$8 sps:$4 sm:$0xff]  }
 0x1ad   : > { %v6697_v0 = vld [vmem:[%s835_s22] sm:$0xff]  ;;  %v6699_v1 = vld [vmem:[%s835_s22 + $0x10] sm:$0xff]  ;;  %v6703_v2 = vld [vmem:[%s835_s22 + $0x8] sm:$0xff]  ;;  %1090 = vmatprep.subr.bf16.mxu1 %v5417_v44  ;;  %vm6155_vm0 = vmmov 0   ;;  %vm1949_vm1 = vcmask 261120   ;;  %s7740_s3 = sld [smem:[#allocation47_spill]] }
 0x1ae   : > { %857 = vadd.xlane.f32.xlu0 %v6697_v0  ;;  %861 = vadd.xlane.f32.xlu1 %v6699_v1  ;;  %v6705_v3 = vld [vmem:[%s835_s22 + $0x18] sm:$0xff]  ;;  %v6707_v4 = vld [vmem:[%s835_s22 + $0x20] sm:$0xff]  ;;  %v6709_v5 = vld [vmem:[%s835_s22 + $0x28] sm:$0xff]  ;;  %vm2178_vm5 = vcmask 130048   ;;  %s6157_s28 = smov 64   ;;  %s7758_s19 = sld [smem:[#allocation43_spill]] }
 0x1af   : > { %v6713_v6 = vld [vmem:[%s835_s22 + $0x30] sm:$0xff]  ;;  %v6715_v7 = vld [vmem:[%s835_s22 + $0x38] sm:$0xff]  ;;  %s6158_s22 = smov 32   ;;  %vm4095_vm11 = vcmask 523264   ;;  %vm4104_vm12 = vcmask 785408   ;;  %p7763_p12 = scmp.ne.s32.totalorder %s7714_s2, 0 }
 0x1b0   : > { %1091 = vmatpush1.bf16.msra.mxu1 %v5419_v45 }
 0x1b1   : > { %1092 = vmatprep.subr.bf16.mxu1 %v5420_v46 }
 0x1b2   : > { %859 = vadd.xlane.f32.xlu0 %v6703_v2  ;;  %863 = vadd.xlane.f32.xlu1 %v6705_v3 }
 0x1b4   : > { %1093 = vmatpush1.bf16.msra.mxu1 %v5422_v47  ;;  %v5436_v47 = vld [vmem:[#allocation11] sm:$0xff]   ;;  %s843_s15 = scalar_lea.vmem %s7758_s19, %s4714_s23 }
 0x1b5   : > { %1094 = vmatprep.subr.bf16.mxu1 %v5423_v48 }
 0x1b6   : > { %865 = vadd.xlane.f32.xlu0 %v6707_v4  ;;  %867 = vadd.xlane.f32.xlu1 %v6709_v5 }
 0x1b8   : > { %1095 = vmatpush1.bf16.msra.mxu1 %v5425_v49 }
 0x1b9   : > { %1096 = vmatprep.subr.bf16.mxu1 %v5426_v50  ;;  %v5437_v50 = vld [vmem:[#allocation11 + $0x48] sm:$0xff]  }
 0x1ba   : > { %869 = vadd.xlane.f32.xlu0 %v6713_v6  ;;  %871 = vadd.xlane.f32.xlu1 %v6715_v7 }
 0x1bc   : > { %1097 = vmatpush1.bf16.msra.mxu1 %v5428_v51 }
 0x1bd   : > { %1098 = vmatprep.subr.bf16.mxu1 %v5429_v52 }
 0x1c0   : > { %1099 = vmatpush1.bf16.msra.mxu1 %v5431_v53  ;;  %v5438_v53 = vld [vmem:[#allocation11 + $0x8] sm:$0xff]  }
 0x1c1   : > { %1100 = vmatprep.subr.bf16.mxu1 %v5432_v54 }
 0x1c4   : > { %1101 = vmatpush1.bf16.msra.mxu1 %v5434_v55 }
 0x1c5   : > { %4718 = vmatprep.subr.bf16.mxu1 %v5435_v57 }
 0x23b   : > { %v858_v11 = vpop.xlane.xlu0 %857  ;;  %v862_v12 = vpop.xlane.xlu1 %861 }
 0x23c   : > { %v874_v13 = vmul.f32 0.0078125, %v858_v11  ;;  %v876_v14 = vmul.f32 0.0078125, %v862_v12 }
 0x23e   : > { %v6722_v15 = vsub.f32 %v6697_v0, %v874_v13  ;;  %v6725_v16 = vsub.f32 %v6699_v1, %v876_v14 }
 0x23f   : > { %v860_v17 = vpop.xlane.xlu0 %859  ;;  %v864_v18 = vpop.xlane.xlu1 %863 }
 0x240   : > { %v875_v19 = vmul.f32 0.0078125, %v860_v17  ;;  %v890_v20 = vmul.f32 %v6722_v15, %v6722_v15  ;;  %v877_v21 = vmul.f32 0.0078125, %v864_v18  ;;  %v892_v22 = vmul.f32 %v6725_v16, %v6725_v16 }
 0x242   : > { %898 = vadd.xlane.f32.xlu0 %v890_v20  ;;  %v6732_v23 = vsub.f32 %v6703_v2, %v875_v19  ;;  %v6735_v24 = vsub.f32 %v6705_v3, %v877_v21 }
 0x243   : > { %v866_v25 = vpop.xlane.xlu0 %865  ;;  %v868_v26 = vpop.xlane.xlu1 %867 }
 0x244   : > { %v878_v27 = vmul.f32 0.0078125, %v866_v25  ;;  %v891_v28 = vmul.f32 %v6732_v23, %v6732_v23  ;;  %v879_v29 = vmul.f32 0.0078125, %v868_v26  ;;  %v893_v30 = vmul.f32 %v6735_v24, %v6735_v24 }
 0x246   : > { %902 = vadd.xlane.f32.xlu0 %v892_v22  ;;  %900 = vadd.xlane.f32.xlu1 %v891_v28  ;;  %v6742_v31 = vsub.f32 %v6707_v4, %v878_v27  ;;  %v6745_v32 = vsub.f32 %v6709_v5, %v879_v29  ;;  %v4602_v29 = vld [vmem:[#allocation5] ss:$0 sm:$0xff] }
 0x247   : > { %v870_v33 = vpop.xlane.xlu0 %869  ;;  %v872_v34 = vpop.xlane.xlu1 %871 }
 0x248   : > { %v880_v35 = vmul.f32 0.0078125, %v870_v33  ;;  %v894_v36 = vmul.f32 %v6742_v31, %v6742_v31  ;;  %v881_v37 = vmul.f32 0.0078125, %v872_v34  ;;  %v895_v38 = vmul.f32 %v6745_v32, %v6745_v32 }
 0x24a   : > { %904 = vadd.xlane.f32.xlu1 %v893_v30  ;;  %906 = vadd.xlane.f32.xlu0 %v894_v36  ;;  %v6752_v39 = vsub.f32 %v6713_v6, %v880_v35  ;;  %v6755_v40 = vsub.f32 %v6715_v7, %v881_v37 }
 0x24c   : > { %v896_v41 = vmul.f32 %v6752_v39, %v6752_v39  ;;  %v897_v42 = vmul.f32 %v6755_v40, %v6755_v40 }
 0x24e   : > { %908 = vadd.xlane.f32.xlu1 %v895_v38  ;;  %910 = vadd.xlane.f32.xlu0 %v896_v41  ;;  %v4603_v38 = vld [vmem:[#allocation7] ss:$0 sm:$0xff] }
 0x252   : > { %912 = vadd.xlane.f32.xlu1 %v897_v42 }
 0x2cf   : > { %v899_v58 = vpop.xlane.xlu0 %898 }
 0x2d0   : > { %v914_v59 = vmul.f32 0.0078125, %v899_v58  ;;  %v5440_v58 = vld [vmem:[#allocation11 + $0x10] sm:$0xff]  }
 0x2d2   : > { %v922_v60 = vadd.f32 1e-12, %v914_v59 }
 0x2d3   : > { %v901_v61 = vpop.xlane.xlu1 %900  ;;  %v903_v62 = vpop.xlane.xlu0 %902 }
 0x2d4   : > { %5483 = vrsqrt.f32 %v922_v60  ;;  %v915_v63 = vmul.f32 0.0078125, %v901_v61  ;;  %v916_v8 = vmul.f32 0.0078125, %v903_v62  ;;  %v5441_v61 = vld [vmem:[#allocation11 + $0x58] sm:$0xff]  }
 0x2d6   : > { %v923_v9 = vadd.f32 1e-12, %v915_v63  ;;  %v924_v10 = vadd.f32 1e-12, %v916_v8 }
 0x2d7   : > { %v905_v11 = vpop.xlane.xlu1 %904  ;;  %v907_v12 = vpop.xlane.xlu0 %906 }
 0x2d8   : > { %5485 = vrsqrt.f32 %v923_v9  ;;  %v917_v13 = vmul.f32 0.0078125, %v905_v11  ;;  %v918_v17 = vmul.f32 0.0078125, %v907_v12  ;;  %v5442_v9 = vld [vmem:[#allocation11 + $0x18] sm:$0xff]   ;;  %v5443_v11 = vld [vmem:[#allocation11 + $0x60] sm:$0xff]  }
 0x2d9   : > { %5487 = vrsqrt.f32 %v924_v10 }
 0x2da   : > { %v925_v14 = vadd.f32 1e-12, %v917_v13  ;;  %v926_v21 = vadd.f32 1e-12, %v918_v17  ;;  %v5444_v13 = vld [vmem:[#allocation11 + $0x20] sm:$0xff]  }
 0x2db   : > { %v909_v18 = vpop.xlane.xlu1 %908  ;;  %v911_v25 = vpop.xlane.xlu0 %910 }
 0x2dc   : > { %5489 = vrsqrt.f32 %v925_v14  ;;  %v919_v19 = vmul.f32 0.0078125, %v909_v18  ;;  %v920_v33 = vmul.f32 0.0078125, %v911_v25  ;;  %v5445_v18 = vld [vmem:[#allocation11 + $0x68] sm:$0xff]   ;;  %v5447_v25 = vld [vmem:[#allocation11 + $0x70] sm:$0xff]  }
 0x2de   : > { %v5484_v20 = vpop.eup %5483  ;;  %v927_v22 = vadd.f32 1e-12, %v919_v19  ;;  %v928_v43 = vadd.f32 1e-12, %v920_v33  ;;  %v994_v33 = vld [vmem:[#allocation10] sm:$0x3] }
 0x2df   : > { %v913_v26 = vpop.xlane.xlu1 %912  ;;  %v938_v27 = vmul.f32 %v5484_v20, %v6722_v15 }
 0x2e0   : > { %5491 = vrsqrt.f32 %v927_v22  ;;  %v921_v28 = vmul.f32 0.0078125, %v913_v26  ;;  %v5446_v22 = vld [vmem:[#allocation11 + $0x28] sm:$0xff]   ;;  %v5449_v26 = vld [vmem:[#allocation11 + $0x78] sm:$0xff]  }
 0x2e1   : > { %5493 = vrsqrt.f32 %v926_v21  ;;  %v952_v35 = vmul.f32 %v4602_v29, %v938_v27  ;;  %v5450_v27 = vld [vmem:[#allocation11 + $0x38] sm:$0xff]  }
 0x2e2   : > { %v5486_v30 = vpop.eup %5485  ;;  %v929_v37 = vadd.f32 1e-12, %v921_v28  ;;  %v996_v28 = vlaneseq }
 0x2e3   : > { %v939_v34 = vmul.f32 %v5486_v30, %v6732_v23  ;;  %v5488_v36 = vpop.eup %5487  ;;  %v966_v44 = vadd.f32 %v4603_v38, %v952_v35 }
 0x2e4   : > { %v940_v46 = vmul.f32 %v5488_v36, %v6725_v16  ;;  %5495 = vrsqrt.f32 %v929_v37  ;;  %v5439_v16 = vld [vmem:[#allocation11 + $0x50] sm:$0xff]  }
 0x2e5   : > { %v953_v41 = vmul.f32 %v4602_v29, %v939_v34  ;;  %5497 = vrsqrt.f32 %v928_v43 }
 0x2e6   : > { %v5490_v42 = vpop.eup %5489  ;;  %v954_v23 = vmul.f32 %v4602_v29, %v940_v46 }
 0x2e7   : > { %v967_v45 = vadd.f32 %v4603_v38, %v953_v41  ;;  %v941_v15 = vmul.f32 %v5490_v42, %v6735_v24 }
 0x2e8   : > { %v968_v24 = vadd.f32 %v4603_v38, %v954_v23 }
 0x2e9   : > { %v974_v48 = vpack.c.bf16 %v967_v45, %v966_v44  ;;  %v955_v49 = vmul.f32 %v4602_v29, %v941_v15 }
 0x2ea   : > { %v5492_v51 = vpop.eup %5491 }
 0x2eb   : > { %1119 = vmatmul.mubr.bf16.vlgmr.msra.gmra.mrb[0].mxu1 %v974_v48  ;;  %v5494_v52 = vpop.eup %5493  ;;  %v969_v54 = vadd.f32 %v4603_v38, %v955_v49  ;;  %v943_v55 = vmul.f32 %v5492_v51, %v6745_v32 }
 0x2ec   : > { %1128 = vmatprep.mubr.bf16.mxu1 %v6153_v56  ;;  %4719 = vmatpush3.bf16.msra.mxu1 %v5436_v47  ;;  %v942_v57 = vmul.f32 %v5494_v52, %v6742_v31 }
 0x2ed   : > { %4720 = vmatprep.subr.bf16.mxu1 %v5437_v50  ;;  %v975_v59 = vpack.c.bf16 %v969_v54, %v968_v24  ;;  %v957_v60 = vmul.f32 %v4602_v29, %v943_v55 }
 0x2ee   : > { %v5496_v62 = vpop.eup %5495  ;;  %v956_v63 = vmul.f32 %v4602_v29, %v942_v57 }
 0x2ef   : > { %v5498_v8 = vpop.eup %5497  ;;  %v971_v32 = vadd.f32 %v4603_v38, %v957_v60  ;;  %v945_v10 = vmul.f32 %v5496_v62, %v6755_v40 }
 0x2f0   : > { %4721 = vmatpush3.bf16.msra.mxu1 %v5438_v53  ;;  %v970_v31 = vadd.f32 %v4603_v38, %v956_v63  ;;  %v944_v12 = vmul.f32 %v5498_v8, %v6752_v39  ;;  %v5448_v39 = vld [vmem:[#allocation11 + $0x30] sm:$0xff]  }
 0x2f1   : > { %4722 = vmatprep.subr.bf16.mxu1 %v5439_v16  ;;  %v959_v17 = vmul.f32 %v4602_v29, %v945_v10 }
 0x2f2   : > { %v976_v14 = vpack.c.bf16 %v971_v32, %v970_v31  ;;  %v958_v19 = vmul.f32 %v4602_v29, %v944_v12  ;;  %v997_v29 = vshrl.u32 %v996_v28, 7 }
 0x2f3   : > { %1129 = vmatmul.mubr.bf16.gmra.mrb[4].mxu1 %v975_v59  ;;  %v973_v20 = vadd.f32 %v4603_v38, %v959_v17 }
 0x2f4   : > { %1138 = vmatprep.mubr.bf16.mxu1 %v6153_v56  ;;  %4723 = vmatpush3.bf16.msra.mxu1 %v5440_v58  ;;  %v972_v21 = vadd.f32 %v4603_v38, %v958_v19  ;;  %v6775_v30 = vsub.s32 0, %v997_v29  ;;  %v1002_v34 = vsub.s32 1, %v997_v29 }
 0x2f5   : > { %4724 = vmatprep.subr.bf16.mxu1 %v5441_v61 }
 0x2f6   : > { %v977_v40 = vpack.c.bf16 %v973_v20, %v972_v21  ;;  %v999_v35 = vrot.slane %v994_v33, %v6775_v30  ;;  %v1003_v36 = vrot.slane %v994_v33, %v1002_v34 }
 0x2f8   : > { %4725 = vmatpush3.bf16.msra.mxu1 %v5442_v9 }
 0x2f9   : > { %4726 = vmatprep.subr.bf16.mxu1 %v5443_v11 }
 0x2fb   : > { %1139 = vmatmul.mubr.bf16.gmra.mrb[8].mxu1 %v976_v14 }
 0x2fc   : > { %1148 = vmatprep.mubr.bf16.mxu1 %v6153_v56  ;;  %4727 = vmatpush3.bf16.msra.mxu1 %v5444_v13 }
 0x2fd   : > { %4728 = vmatprep.subr.bf16.mxu1 %v5445_v18 }
 0x300   : > { %4729 = vmatpush3.bf16.msra.mxu1 %v5446_v22 }
 0x301   : > { %4730 = vmatprep.subr.bf16.mxu1 %v5447_v25 }
 0x303   : > { %1149 = vmatmul.mubr.bf16.gmra.mrb[12].mxu1 %v977_v40 }
 0x304   : > { %4731 = vmatpush3.bf16.msra.mxu1 %v5448_v39 }
 0x305   : > { %4732 = vmatprep.subr.bf16.mxu1 %v5449_v26 }
 0x308   : > { %4733 = vmatpush3.bf16.msra.mxu1 %v5450_v27 }
 0x3be   : > { %v1120_v37 = vpop.f32.mrb[0].mxu1 }
 0x3bf   : > { %v1121_v38 = vadd.f32 %v1120_v37, %v999_v35  ;;  %v1122_v41 = vpop.f32.mrb[1].mxu1 }
 0x3c0   : > { %v1123_v42 = vadd.f32 %v1122_v41, %v1003_v36  ;;  %v1124_v43 = vpop.f32.mrb[2].mxu1 }
 0x3c1   : > { %v1125_v44 = vadd.f32 %v1124_v43, %v999_v35  ;;  %v1126_v45 = vpop.f32.mrb[3].mxu1  ;;  %v1159_v15 = vmax.f32 %v1121_v38, 0.0 }
 0x3c2   : > { %v1127_v46 = vadd.f32 %v1126_v45, %v1003_v36  ;;  %v1160_v48 = vmax.f32 %v1123_v42, 0.0 }
 0x3c3   : > { %v1161_v47 = vmax.f32 %v1125_v44, 0.0  ;;  %v4620_v44 = vld [vmem:[#allocation13] ss:$0 sm:$0xff] }
 0x3c4   : > { %v1162_v49 = vmax.f32 %v1127_v46, 0.0 }
 0x3c5   : > { %v1175_v50 = vpack.c.bf16 %v1161_v47, %v1159_v15 }
 0x3c6   : > { %v1176_v51 = vpack.c.bf16 %v1162_v49, %v1160_v48  ;;  %v1130_v23 = vpop.f32.mrb[4].mxu1 }
 0x3c7   : > { %v1131_v52 = vadd.f32 %v1130_v23, %v999_v35  ;;  %v1132_v53 = vpop.f32.mrb[5].mxu1 }
 0x3c8   : > { %v1133_v54 = vadd.f32 %v1132_v53, %v1003_v36  ;;  %v1134_v55 = vpop.f32.mrb[6].mxu1  ;;  %1350 = vmatprep.mubr.bf16.mxu1 %v1176_v51 }
 0x3c9   : > { %v1135_v16 = vadd.f32 %v1134_v55, %v999_v35  ;;  %v1136_v24 = vpop.f32.mrb[7].mxu1  ;;  %1351 = vmatmul.mubr.bf16.vlgmr.msra.gmra.mrb[16].mxu1 %v1175_v50  ;;  %v1163_v58 = vmax.f32 %v1131_v52, 0.0 }
 0x3ca   : > { %v1137_v57 = vadd.f32 %v1136_v24, %v1003_v36  ;;  %v1164_v60 = vmax.f32 %v1133_v54, 0.0 }
 0x3cb   : > { %v1165_v59 = vmax.f32 %v1135_v16, 0.0 }
 0x3cc   : > { %v1166_v61 = vmax.f32 %v1137_v57, 0.0 }
 0x3cd   : > { %v1177_v62 = vpack.c.bf16 %v1165_v59, %v1163_v58 }
 0x3ce   : > { %v1178_v63 = vpack.c.bf16 %v1166_v61, %v1164_v60  ;;  %v1140_v8 = vpop.f32.mrb[8].mxu1 }
 0x3cf   : > { %v1141_v9 = vadd.f32 %v1140_v8, %v999_v35  ;;  %v1142_v32 = vpop.f32.mrb[9].mxu1 }
 0x3d0   : > { %v1143_v10 = vadd.f32 %v1142_v32, %v1003_v36  ;;  %v1144_v11 = vpop.f32.mrb[10].mxu1  ;;  %1358 = vmatprep.mubr.bf16.mxu1 %v1178_v63 }
 0x3d1   : > { %v1145_v31 = vadd.f32 %v1144_v11, %v999_v35  ;;  %v1146_v12 = vpop.f32.mrb[11].mxu1  ;;  %1359 = vmatmul.mubr.bf16.gmra.mrb[20].mxu1 %v1177_v62  ;;  %v1167_v14 = vmax.f32 %v1141_v9, 0.0 }
 0x3d2   : > { %v1147_v13 = vadd.f32 %v1146_v12, %v1003_v36  ;;  %v1168_v18 = vmax.f32 %v1143_v10, 0.0 }
 0x3d3   : > { %v1169_v17 = vmax.f32 %v1145_v31, 0.0 }
 0x3d4   : > { %v1170_v19 = vmax.f32 %v1147_v13, 0.0 }
 0x3d5   : > { %v1179_v20 = vpack.c.bf16 %v1169_v17, %v1167_v14 }
 0x3d6   : > { %v1180_v21 = vpack.c.bf16 %v1170_v19, %v1168_v18  ;;  %v1150_v40 = vpop.f32.mrb[12].mxu1 }
 0x3d7   : > { %v1151_v22 = vadd.f32 %v1150_v40, %v999_v35  ;;  %v1152_v25 = vpop.f32.mrb[13].mxu1 }
 0x3d8   : > { %v1153_v39 = vadd.f32 %v1152_v25, %v1003_v36  ;;  %v1154_v26 = vpop.f32.mrb[14].mxu1  ;;  %1366 = vmatprep.mubr.bf16.mxu1 %v1180_v21 }
 0x3d9   : > { %v1155_v27 = vadd.f32 %v1154_v26, %v999_v35  ;;  %v1156_v28 = vpop.f32.mrb[15].mxu1  ;;  %1367 = vmatmul.mubr.bf16.gmra.mrb[24].mxu1 %v1179_v20  ;;  %v1171_v33 = vmax.f32 %v1151_v22, 0.0 }
 0x3da   : > { %v1157_v29 = vadd.f32 %v1156_v28, %v1003_v36  ;;  %v1172_v37 = vmax.f32 %v1153_v39, 0.0 }
 0x3db   : > { %v1173_v34 = vmax.f32 %v1155_v27, 0.0 }
 0x3dc   : > { %v1174_v38 = vmax.f32 %v1157_v29, 0.0 }
 0x3dd   : > { %v1181_v41 = vpack.c.bf16 %v1173_v34, %v1171_v33 }
 0x3de   : > { %v1182_v42 = vpack.c.bf16 %v1174_v38, %v1172_v37 }
 0x3e0   : > { %1374 = vmatprep.mubr.bf16.mxu1 %v1182_v42 }
 0x3e1   : > { %1375 = vmatmul.mubr.bf16.gmra.mrb[28].mxu1 %v1181_v41 }
 0x49c   : > { %v4734_v43 = vpop.f32.mrb[16].mxu1 }
 0x49d   : > { %v4735_v45 = vpop.f32.mrb[17].mxu1 }
 0x49e   : > { %v4736_v46 = vadd.f32 %v4735_v45, %v4734_v43  ;;  %v4737_v15 = vpop.f32.mrb[18].mxu1 }
 0x49f   : > { %v4738_v47 = vpop.f32.mrb[19].mxu1 }
 0x4a0   : > { %v1353_v48 = vadd.f32 %v4736_v46, %v4620_v44  ;;  %v4739_v49 = vadd.f32 %v4738_v47, %v4737_v15 }
 0x4a2   : > { %v1383_v35 = vmul.f32 0.5, %v1353_v48  ;;  %v1356_v50 = vadd.f32 %v4739_v49, %v4620_v44 }
 0x4a4   : > { %v1384_v51 = vmul.f32 0.5, %v1356_v50  ;;  %v4740_v36 = vpop.f32.mrb[20].mxu1  ;;  %v6779_v23 = vadd.f32 %v1383_v35, %v6697_v0  ;;  %v5451_v35 = vld [vmem:[#allocation17] sm:$0xff]  }
 0x4a5   : > { %v4741_v52 = vpop.f32.mrb[21].mxu1  ;;  %4870 = vmatprep.subr.bf16.mxu0 %v5451_v35 }
 0x4a6   : > { %v4742_v53 = vadd.f32 %v4741_v52, %v4740_v36  ;;  %v4743_v54 = vpop.f32.mrb[22].mxu1  ;;  %1401 = vadd.xlane.f32.xlu0 %v6779_v23  ;;  %v6783_v55 = vadd.f32 %v1384_v51, %v6703_v2  ;;  %v5452_v36 = vld [vmem:[#allocation20] sm:$0xff]   ;;  %4871 = vmatpush3.bf16.msra.mxu0 %v5451_v35 }
 0x4a7   : > { %v4744_v16 = vpop.f32.mrb[23].mxu1  ;;  %4894 = vmatprep.subr.bf16.mxu1 %v5452_v36 }
 0x4a8   : > { %v1361_v24 = vadd.f32 %v4742_v53, %v4620_v44  ;;  %v4745_v57 = vadd.f32 %v4744_v16, %v4743_v54  ;;  %1403 = vadd.xlane.f32.xlu1 %v6783_v55  ;;  %v5453_v54 = vld [vmem:[#allocation17 + $0x8] sm:$0xff]   ;;  %4895 = vmatpush3.bf16.msra.mxu1 %v5452_v36  ;;  %v4638_v36 = vld [vmem:[#allocation16] ss:$0 sm:$0xff] }
 0x4a9   : > { %4872 = vmatprep.subr.bf16.mxu0 %v5453_v54 }
 0x4aa   : > { %v1385_v58 = vmul.f32 0.5, %v1361_v24  ;;  %v1364_v59 = vadd.f32 %v4745_v57, %v4620_v44  ;;  %v5454_v24 = vld [vmem:[#allocation20 + $0x8] sm:$0xff]   ;;  %4873 = vmatpush3.bf16.msra.mxu0 %v5453_v54 }
 0x4ab   : > { %4896 = vmatprep.subr.bf16.mxu1 %v5454_v24 }
 0x4ac   : > { %v1386_v60 = vmul.f32 0.5, %v1364_v59  ;;  %v4746_v61 = vpop.f32.mrb[24].mxu1  ;;  %v6787_v0 = vadd.f32 %v1385_v58, %v6699_v1  ;;  %4897 = vmatpush3.bf16.msra.mxu1 %v5454_v24 }
 0x4ad   : > { %v4747_v62 = vpop.f32.mrb[25].mxu1 }
 0x4ae   : > { %v4748_v63 = vadd.f32 %v4747_v62, %v4746_v61  ;;  %v4749_v8 = vpop.f32.mrb[26].mxu1  ;;  %1405 = vadd.xlane.f32.xlu0 %v6787_v0  ;;  %v6791_v2 = vadd.f32 %v1386_v60, %v6705_v3  ;;  %v5455_v60 = vld [vmem:[#allocation17 + $0x10] sm:$0xff]  }
 0x4af   : > { %v4750_v9 = vpop.f32.mrb[27].mxu1  ;;  %4874 = vmatprep.subr.bf16.mxu0 %v5455_v60 }
 0x4b0   : > { %v1369_v32 = vadd.f32 %v4748_v63, %v4620_v44  ;;  %v4751_v10 = vadd.f32 %v4750_v9, %v4749_v8  ;;  %1407 = vadd.xlane.f32.xlu1 %v6791_v2  ;;  %v5456_v63 = vld [vmem:[#allocation20 + $0x10] sm:$0xff]   ;;  %4875 = vmatpush3.bf16.msra.mxu0 %v5455_v60 }
 0x4b1   : > { %4898 = vmatprep.subr.bf16.mxu1 %v5456_v63  ;;  %v5457_v9 = vld [vmem:[#allocation17 + $0x18] sm:$0xff]  }
 0x4b2   : > { %v1387_v11 = vmul.f32 0.5, %v1369_v32  ;;  %v1372_v31 = vadd.f32 %v4751_v10, %v4620_v44  ;;  %4899 = vmatpush3.bf16.msra.mxu1 %v5456_v63  ;;  %v5458_v32 = vld [vmem:[#allocation20 + $0x18] sm:$0xff]   ;;  %4876 = vmatprep.subr.bf16.mxu0 %v5457_v9 }
 0x4b3   : > { %4900 = vmatprep.subr.bf16.mxu1 %v5458_v32  ;;  %v5459_v10 = vld [vmem:[#allocation17 + $0x20] sm:$0xff]  }
 0x4b4   : > { %v1388_v12 = vmul.f32 0.5, %v1372_v31  ;;  %v4752_v13 = vpop.f32.mrb[28].mxu1  ;;  %v6795_v1 = vadd.f32 %v1387_v11, %v6707_v4  ;;  %4877 = vmatpush3.bf16.msra.mxu0 %v5457_v9  ;;  %v5460_v11 = vld [vmem:[#allocation20 + $0x20] sm:$0xff]  }
 0x4b5   : > { %v4753_v14 = vpop.f32.mrb[29].mxu1  ;;  %4878 = vmatprep.subr.bf16.mxu0 %v5459_v10  ;;  %v5461_v31 = vld [vmem:[#allocation17 + $0x28] sm:$0xff]  }
 0x4b6   : > { %v4754_v17 = vadd.f32 %v4753_v14, %v4752_v13  ;;  %1409 = vadd.xlane.f32.xlu0 %v6795_v1  ;;  %v4755_v18 = vpop.f32.mrb[30].mxu1  ;;  %v6799_v3 = vadd.f32 %v1388_v12, %v6709_v5  ;;  %4901 = vmatpush3.bf16.msra.mxu1 %v5458_v32  ;;  %v5462_v12 = vld [vmem:[#allocation20 + $0x28] sm:$0xff]   ;;  %v5464_v14 = vld [vmem:[#allocation20 + $0x30] sm:$0xff]  }
 0x4b7   : > { %v4756_v19 = vpop.f32.mrb[31].mxu1  ;;  %4902 = vmatprep.subr.bf16.mxu1 %v5460_v11  ;;  %v5463_v13 = vld [vmem:[#allocation17 + $0x30] sm:$0xff]  }
 0x4b8   : > { %7737 = vst [vmem:[#allocation39_spill] sm:$0xff] %v6799_v3  ;;  %v1377_v20 = vadd.f32 %v4754_v17, %v4620_v44  ;;  %v4757_v21 = vadd.f32 %v4756_v19, %v4755_v18  ;;  %1411 = vadd.xlane.f32.xlu1 %v6799_v3  ;;  %4879 = vmatpush3.bf16.msra.mxu0 %v5459_v10  ;;  %v5465_v17 = vld [vmem:[#allocation17 + $0x38] sm:$0xff]   ;;  %v6853_v19 = vld [vmem:[%s7739_s1] sm:$0xff]  }
 0x4b9   : > { %4880 = vmatprep.subr.bf16.mxu0 %v5461_v31  ;;  %v5466_v18 = vld [vmem:[#allocation20 + $0x38] sm:$0xff]  }
 0x4ba   : > { %v1389_v40 = vmul.f32 0.5, %v1377_v20  ;;  %v1380_v22 = vadd.f32 %v4757_v21, %v4620_v44  ;;  %4903 = vmatpush3.bf16.msra.mxu1 %v5460_v11 }
 0x4bb   : > { %4904 = vmatprep.subr.bf16.mxu1 %v5462_v12 }
 0x4bc   : > { %v1390_v25 = vmul.f32 0.5, %v1380_v22  ;;  %v6803_v39 = vadd.f32 %v1389_v40, %v6713_v6  ;;  %4881 = vmatpush3.bf16.msra.mxu0 %v5461_v31 }
 0x4bd   : > { %4882 = vmatprep.subr.bf16.mxu0 %v5463_v13 }
 0x4be   : > { %1413 = vadd.xlane.f32.xlu0 %v6803_v39  ;;  %v6807_v4 = vadd.f32 %v1390_v25, %v6715_v7  ;;  %4905 = vmatpush3.bf16.msra.mxu1 %v5462_v12 }
 0x4bf   : > { %4906 = vmatprep.subr.bf16.mxu1 %v5464_v14 }
 0x4c0   : > { %7738 = vst [vmem:[#allocation40_spill] sm:$0xff] %v6807_v4  ;;  %1415 = vadd.xlane.f32.xlu1 %v6807_v4  ;;  %4883 = vmatpush3.bf16.msra.mxu0 %v5463_v13 }
 0x4c1   : > { %4884 = vmatprep.subr.bf16.mxu0 %v5465_v17 }
 0x4c2   : > { %4907 = vmatpush3.bf16.msra.mxu1 %v5464_v14  ;;  %v5468_v14 = vld [vmem:[%s7739_s1 + $0x8] sm:$0xff]  }
 0x4c3   : > { %4908 = vmatprep.subr.bf16.mxu1 %v5466_v18 }
 0x4c4   : > { %4885 = vmatpush3.bf16.msra.mxu0 %v5465_v17 }
 0x4c5   : > { %4918 = vmatprep.subr.bf16.mxu0 %v6853_v19 }
 0x4c6   : > { %4909 = vmatpush3.bf16.msra.mxu1 %v5466_v18 }
 0x533   : > { %v1402_v5 = vpop.xlane.xlu0 %1401 }
 0x534   : > { %v1417_v26 = vmul.f32 0.0078125, %v1402_v5 }
 0x535   : > { %v1404_v27 = vpop.xlane.xlu1 %1403 }
 0x536   : > { %v1418_v28 = vmul.f32 0.0078125, %v1404_v27  ;;  %v6811_v29 = vsub.f32 %v6779_v23, %v1417_v26 }
 0x538   : > { %v1433_v33 = vmul.f32 %v6811_v29, %v6811_v29  ;;  %v6816_v6 = vsub.f32 %v6783_v55, %v1418_v28 }
 0x53a   : > { %1441 = vadd.xlane.f32.xlu0 %v1433_v33  ;;  %v1434_v7 = vmul.f32 %v6816_v6, %v6816_v6 }
 0x53b   : > { %v1406_v34 = vpop.xlane.xlu0 %1405 }
 0x53c   : > { %v1419_v37 = vmul.f32 0.0078125, %v1406_v34  ;;  %1443 = vadd.xlane.f32.xlu1 %v1434_v7 }
 0x53d   : > { %v1408_v38 = vpop.xlane.xlu1 %1407 }
 0x53e   : > { %v1420_v41 = vmul.f32 0.0078125, %v1408_v38  ;;  %v6821_v42 = vsub.f32 %v6787_v0, %v1419_v37  ;;  %v6856_v38 = vld [vmem:[#allocation14] ss:$0 sm:$0xff] }
 0x540   : > { %v1435_v43 = vmul.f32 %v6821_v42, %v6821_v42  ;;  %v6826_v44 = vsub.f32 %v6791_v2, %v1420_v41 }
 0x542   : > { %1445 = vadd.xlane.f32.xlu0 %v1435_v43  ;;  %v1436_v45 = vmul.f32 %v6826_v44, %v6826_v44 }
 0x543   : > { %v1410_v46 = vpop.xlane.xlu0 %1409 }
 0x544   : > { %v1421_v15 = vmul.f32 0.0078125, %v1410_v46  ;;  %1447 = vadd.xlane.f32.xlu1 %v1436_v45 }
 0x545   : > { %v1412_v47 = vpop.xlane.xlu1 %1411 }
 0x546   : > { %v1422_v48 = vmul.f32 0.0078125, %v1412_v47  ;;  %v6831_v49 = vsub.f32 %v6795_v1, %v1421_v15 }
 0x548   : > { %v1437_v50 = vmul.f32 %v6831_v49, %v6831_v49  ;;  %v6836_v51 = vsub.f32 %v6799_v3, %v1422_v48 }
 0x54a   : > { %1449 = vadd.xlane.f32.xlu0 %v1437_v50  ;;  %v1438_v52 = vmul.f32 %v6836_v51, %v6836_v51 }
 0x54b   : > { %v1414_v53 = vpop.xlane.xlu0 %1413 }
 0x54c   : > { %v1423_v16 = vmul.f32 0.0078125, %v1414_v53  ;;  %1451 = vadd.xlane.f32.xlu1 %v1438_v52 }
 0x54d   : > { %v1416_v57 = vpop.xlane.xlu1 %1415 }
 0x54e   : > { %v1424_v58 = vmul.f32 0.0078125, %v1416_v57  ;;  %v6841_v59 = vsub.f32 %v6803_v39, %v1423_v16 }
 0x550   : > { %v1439_v61 = vmul.f32 %v6841_v59, %v6841_v59  ;;  %v6846_v62 = vsub.f32 %v6807_v4, %v1424_v58 }
 0x552   : > { %1453 = vadd.xlane.f32.xlu0 %v1439_v61  ;;  %v1440_v8 = vmul.f32 %v6846_v62, %v6846_v62 }
 0x554   : > { %1455 = vadd.xlane.f32.xlu1 %v1440_v8 }
 0x5c7   : > { %v1442_v20 = vpop.xlane.xlu0 %1441 }
 0x5c8   : > { %v1457_v21 = vmul.f32 0.0078125, %v1442_v20 }
 0x5c9   : > { %v1444_v40 = vpop.xlane.xlu1 %1443 }
 0x5ca   : > { %v1465_v22 = vadd.f32 1e-12, %v1457_v21  ;;  %v1458_v25 = vmul.f32 0.0078125, %v1444_v40  ;;  %v5469_v21 = vld [vmem:[%s7739_s1 + $0x10] sm:$0xff]  }
 0x5cc   : > { %5499 = vrsqrt.f32 %v1465_v22  ;;  %v1466_v5 = vadd.f32 1e-12, %v1458_v25 }
 0x5ce   : > { %5501 = vrsqrt.f32 %v1466_v5 }
 0x5cf   : > { %v1446_v26 = vpop.xlane.xlu0 %1445 }
 0x5d0   : > { %v1459_v27 = vmul.f32 0.0078125, %v1446_v26 }
 0x5d1   : > { %v1448_v28 = vpop.xlane.xlu1 %1447 }
 0x5d2   : > { %v1467_v33 = vadd.f32 1e-12, %v1459_v27  ;;  %v1460_v7 = vmul.f32 0.0078125, %v1448_v28 }
 0x5d4   : > { %5503 = vrsqrt.f32 %v1467_v33  ;;  %v1468_v34 = vadd.f32 1e-12, %v1460_v7  ;;  %v5471_v33 = vld [vmem:[%s7739_s1 + $0x20] sm:$0xff]  }
 0x5d6   : > { %v5500_v37 = vpop.eup %5499  ;;  %5505 = vrsqrt.f32 %v1468_v34 }
 0x5d7   : > { %v1450_v41 = vpop.xlane.xlu0 %1449  ;;  %v1481_v43 = vmul.f32 %v5500_v37, %v6811_v29 }
 0x5d8   : > { %v5502_v45 = vpop.eup %5501  ;;  %v1461_v46 = vmul.f32 0.0078125, %v1450_v41  ;;  %v5472_v41 = vld [vmem:[%s7739_s1 + $0x28] sm:$0xff]  }
 0x5d9   : > { %v1452_v15 = vpop.xlane.xlu1 %1451  ;;  %v1482_v47 = vmul.f32 %v5502_v45, %v6816_v6  ;;  %v1495_v48 = vmul.f32 %v6856_v38, %v1481_v43  ;;  %v7686_v43 = vmov 0.0  }
 0x5da   : > { %v1469_v35 = vadd.f32 1e-12, %v1461_v46  ;;  %v1462_v50 = vmul.f32 0.0078125, %v1452_v15  ;;  %4948 = vmatprep.subr.bf16.mxu1 %v7686_v43  ;;  %v4639_v46 = vld [vmem:[#allocation19] ss:$0 sm:$0xff] }
 0x5db   : > { %v1496_v52 = vmul.f32 %v6856_v38, %v1482_v47  ;;  %v1509_v54 = vadd.f32 %v4638_v36, %v1495_v48  ;;  %v4648_v47 = vld [vmem:[#allocation22] ss:$0 sm:$0xff] }
 0x5dc   : > { %5507 = vrsqrt.f32 %v1469_v35  ;;  %v1470_v53 = vadd.f32 1e-12, %v1462_v50 }
 0x5dd   : > { %v1510_v16 = vadd.f32 %v4638_v36, %v1496_v52 }
 0x5de   : > { %v5504_v24 = vpop.eup %5503  ;;  %5509 = vrsqrt.f32 %v1470_v53 }
 0x5df   : > { %v1454_v57 = vpop.xlane.xlu0 %1453  ;;  %v1517_v29 = vpack.c.bf16 %v1510_v16, %v1509_v54  ;;  %v1483_v58 = vmul.f32 %v5504_v24, %v6821_v42 }
 0x5e0   : > { %v5506_v60 = vpop.eup %5505  ;;  %v1463_v61 = vmul.f32 0.0078125, %v1454_v57 }
 0x5e1   : > { %v1456_v6 = vpop.xlane.xlu1 %1455  ;;  %4886 = vmatprep.mubr.bf16.mxu0 %v1517_v29  ;;  %4910 = vmatprep.mubr.bf16.mxu1 %v1517_v29  ;;  %v1484_v63 = vmul.f32 %v5506_v60, %v6826_v44  ;;  %v1497_v8 = vmul.f32 %v6856_v38, %v1483_v58 }
 0x5e2   : > { %v1471_v9 = vadd.f32 1e-12, %v1463_v61  ;;  %v1464_v32 = vmul.f32 0.0078125, %v1456_v6 }
 0x5e3   : > { %v1498_v10 = vmul.f32 %v6856_v38, %v1484_v63  ;;  %v1511_v31 = vadd.f32 %v4638_v36, %v1497_v8 }
 0x5e4   : > { %5511 = vrsqrt.f32 %v1471_v9  ;;  %v1472_v11 = vadd.f32 1e-12, %v1464_v32 }
 0x5e5   : > { %v1512_v12 = vadd.f32 %v4638_v36, %v1498_v10 }
 0x5e6   : > { %v5508_v13 = vpop.eup %5507  ;;  %5513 = vrsqrt.f32 %v1472_v11 }
 0x5e7   : > { %v1518_v42 = vpack.c.bf16 %v1512_v12, %v1511_v31  ;;  %v1485_v17 = vmul.f32 %v5508_v13, %v6831_v49 }
 0x5e8   : > { %v5510_v44 = vpop.eup %5509 }
 0x5e9   : > { %4887 = vmatmul.mubr.bf16.vlgmr.msra.gmra.mrb[0].mxu0 %v1518_v42  ;;  %4911 = vmatmul.mubr.bf16.vlgmr.msra.gmra.mrb[32].mxu1 %v1518_v42  ;;  %v1486_v18 = vmul.f32 %v5510_v44, %v6836_v51  ;;  %v1499_v20 = vmul.f32 %v6856_v38, %v1485_v17  ;;  %v5470_v51 = vld [vmem:[%s7739_s1 + $0x18] sm:$0xff]  }
 0x5ea   : > { %4919 = vmatpush3.bf16.msra.mxu0 %v6853_v19 }
 0x5eb   : > { %4920 = vmatprep.subr.bf16.mxu0 %v5468_v14  ;;  %v1500_v40 = vmul.f32 %v6856_v38, %v1486_v18  ;;  %v1513_v22 = vadd.f32 %v4638_v36, %v1499_v20 }
 0x5ed   : > { %v1514_v25 = vadd.f32 %v4638_v36, %v1500_v40 }
 0x5ee   : > { %v5512_v5 = vpop.eup %5511  ;;  %4921 = vmatpush3.bf16.msra.mxu0 %v5468_v14 }
 0x5ef   : > { %4922 = vmatprep.subr.bf16.mxu0 %v5469_v21  ;;  %v1519_v49 = vpack.c.bf16 %v1514_v25, %v1513_v22  ;;  %v1487_v26 = vmul.f32 %v5512_v5, %v6841_v59 }
 0x5f0   : > { %v5514_v19 = vpop.eup %5513 }
 0x5f1   : > { %4890 = vmatprep.mubr.bf16.mxu0 %v1519_v49  ;;  %4914 = vmatprep.mubr.bf16.mxu1 %v1519_v49  ;;  %v1488_v27 = vmul.f32 %v5514_v19, %v6846_v62  ;;  %v1501_v28 = vmul.f32 %v6856_v38, %v1487_v26  ;;  %v5473_v62 = vld [vmem:[%s7739_s1 + $0x30] sm:$0xff]  }
 0x5f2   : > { %4923 = vmatpush3.bf16.msra.mxu0 %v5469_v21 }
 0x5f3   : > { %4924 = vmatprep.subr.bf16.mxu0 %v5470_v51  ;;  %v1502_v7 = vmul.f32 %v6856_v38, %v1488_v27  ;;  %v1515_v34 = vadd.f32 %v4638_v36, %v1501_v28  ;;  %v5474_v38 = vld [vmem:[%s7739_s1 + $0x38] sm:$0xff]  }
 0x5f5   : > { %v1516_v37 = vadd.f32 %v4638_v36, %v1502_v7  ;;  %v4657_v7 = vld [vmem:[%s7740_s3] ss:$0 sm:$0xff]  ;;  %s7759_s3 = sld [smem:[#allocation48_spill]] }
 0x5f6   : > { %4925 = vmatpush3.bf16.msra.mxu0 %v5470_v51 }
 0x5f7   : > { %4926 = vmatprep.subr.bf16.mxu0 %v5471_v33  ;;  %v1520_v59 = vpack.c.bf16 %v1516_v37, %v1515_v34 }
 0x5f9   : > { %4891 = vmatmul.mubr.bf16.gmra.mrb[4].mxu0 %v1520_v59  ;;  %4915 = vmatmul.mubr.bf16.gmra.mrb[36].mxu1 %v1520_v59 }
 0x5fa   : > { %4927 = vmatpush3.bf16.msra.mxu0 %v5471_v33  ;;  %4934 = vmatprep.mubr.bf16.mxu0 %v1517_v29 }
 0x5fb   : > { %4928 = vmatprep.subr.bf16.mxu0 %v5472_v41  ;;  %4950 = vmatprep.mubr.msk.bf16.mxu1 %vm6155_vm0, %v7686_v43 }
 0x5fe   : > { %4929 = vmatpush3.bf16.msra.mxu0 %v5472_v41 }
 0x5ff   : > { %4930 = vmatprep.subr.bf16.mxu0 %v5473_v62 }
 0x602   : > { %4931 = vmatpush3.bf16.msra.mxu0 %v5473_v62 }
 0x603   : > { %4932 = vmatprep.subr.bf16.mxu0 %v5474_v38 }
 0x606   : > { %4933 = vmatpush3.bf16.msra.mxu0 %v5474_v38 }
 0x607   : > { %4942 = vmatprep.subr.bf16.mxu0 %v7686_v43 }
 0x609   : > { %4935 = vmatmul.mubr.bf16.vlgmr.msra.gmra.mrb[8].mxu0 %v1518_v42 }
 0x60a   : > { %4938 = vmatprep.mubr.bf16.mxu0 %v1519_v49 }
 0x611   : > { %4939 = vmatmul.mubr.bf16.gmra.mrb[12].mxu0 %v1520_v59 }
 0x612   : > { %4944 = vmatprep.mubr.msk.bf16.mxu0 %vm6155_vm0, %v7686_v43 }
 0x6bc   : > { %v4888_v45 = vpop.f32.mrb[0].mxu0  ;;  %v4912_v15 = vpop.f32.mrb[32].mxu1 }
 0x6bd   : > { %v1626_v48 = vpop.f32.mrb[1].mxu0  ;;  %v1762_v35 = vpop.f32.mrb[33].mxu1  ;;  %v1635_v52 = vadd.f32 %v4888_v45, %v4639_v46  ;;  %v1771_v53 = vadd.f32 %v4912_v15, %v4648_v47 }
 0x6be   : > { %v4889_v50 = vpop.f32.mrb[2].mxu0  ;;  %v4913_v36 = vpop.f32.mrb[34].mxu1  ;;  %v1627_v29 = vadd.f32 %v4639_v46, %v1626_v48  ;;  %v1763_v58 = vadd.f32 %v4648_v47, %v1762_v35 }
 0x6bf   : > { %v1638_v54 = vadd.f32 %v4889_v50, %v4639_v46  ;;  %v1774_v16 = vadd.f32 %v4913_v36, %v4648_v47  ;;  %v1629_v24 = vpop.f32.mrb[3].mxu0  ;;  %v1765_v57 = vpop.f32.mrb[35].mxu1 }
 0x6c0   : > { %v1630_v60 = vadd.f32 %v4639_v46, %v1629_v24  ;;  %v1766_v61 = vadd.f32 %v4648_v47, %v1765_v57 }
 0x6c1   : > { %v6902_v6 = vpack.c.bf16 %v1638_v54, %v1635_v52  ;;  %v6904_v63 = vpack.c.bf16 %v1774_v16, %v1771_v53 }
 0x6c2   : > { %v6906_v8 = vpack.c.bf16 %v1630_v60, %v1627_v29  ;;  %v6908_v9 = vpack.c.bf16 %v1766_v61, %v1763_v58  ;;  %v1929_v29 = vld [vmem:[%s6654_s18] sm:$0x1]  ;;  %v1930_v58 = vld [vmem:[%s6654_s18 + $0x1] sm:$0x1] }
 0x6c3   : > { %v2001_v32 = vsel %vm1949_vm1, %v6904_v63, 0  ;;  %vm1933_vm2 = vcmp.gt.f32.partialorder %v1929_v29, 0.5  ;;  %vm1934_vm3 = vcmp.gt.f32.partialorder %v1930_v58, 0.5 }
 0x6c4   : > { %4949 = vmatpush3.bf16.xpose.msra.mxu1 %v2001_v32  ;;  %v1954_v10 = vsel %vm1949_vm1, %v6908_v9, 0  ;;  %v2146_v60 = vsel %vm1933_vm2, 1, %v6153_v56  ;;  %v2147_v61 = vsel %vm1934_vm3, 1, %v6153_v56 }
 0x6c5   : > { %4943 = vmatpush3.bf16.xpose.msra.mxu0 %v1954_v10  ;;  %4954 = vmatprep.subr.bf16.mxu1 %v7686_v43  ;;  %v2153_v32 = vrot.slane %v2146_v60, %v6775_v30  ;;  %v2157_v10 = vrot.slane %v2147_v61, %v6775_v30 }
 0x6c6   : > { %4966 = vmatprep.subr.bf16.mxu0 %v7686_v43 }
 0x6c7   : > { %vm6967_vm4 = vcmp.eq.s32.totalorder %v2153_v32, 1  ;;  %vm6972_vm6 = vcmp.eq.s32.totalorder %v2157_v10, 1 }
 0x6cb   : > { %4951 = vmatmul.mubr.msk.bf16.vlgmr.msra.gmra.mrb[40].mxu1 %vm1949_vm1, %v6902_v6 }
 0x6cc   : > { %v4892_v11 = vpop.f32.mrb[4].mxu0  ;;  %v4916_v31 = vpop.f32.mrb[36].mxu1  ;;  %4945 = vmatmul.mubr.msk.bf16.vlgmr.msra.gmra.mrb[16].mxu0 %vm1949_vm1, %v6906_v8  ;;  %4956 = vmatprep.mubr.msk.bf16.mxu1 %vm6155_vm0, %v7686_v43 }
 0x6cd   : > { %v1642_v12 = vpop.f32.mrb[5].mxu0  ;;  %v1778_v13 = vpop.f32.mrb[37].mxu1  ;;  %4968 = vmatprep.mubr.msk.bf16.mxu0 %vm6155_vm0, %v7686_v43  ;;  %v1651_v17 = vadd.f32 %v4892_v11, %v4639_v46  ;;  %v1787_v44 = vadd.f32 %v4916_v31, %v4648_v47 }
 0x6ce   : > { %v4893_v42 = vpop.f32.mrb[6].mxu0  ;;  %v4917_v14 = vpop.f32.mrb[38].mxu1  ;;  %v1643_v22 = vadd.f32 %v4639_v46, %v1642_v12  ;;  %v1779_v25 = vadd.f32 %v4648_v47, %v1778_v13 }
 0x6cf   : > { %v1654_v18 = vadd.f32 %v4893_v42, %v4639_v46  ;;  %v1790_v20 = vadd.f32 %v4917_v14, %v4648_v47  ;;  %v1645_v21 = vpop.f32.mrb[7].mxu0  ;;  %v1781_v40 = vpop.f32.mrb[39].mxu1  ;;  %v1931_v42 = vld [vmem:[%s6654_s18 + $0x2] sm:$0x1] }
 0x6d0   : > { %v1646_v5 = vadd.f32 %v4639_v46, %v1645_v21  ;;  %v1782_v49 = vadd.f32 %v4648_v47, %v1781_v40  ;;  %vm1935_vm7 = vcmp.gt.f32.partialorder %v1931_v42, 0.5 }
 0x6d1   : > { %v6924_v51 = vpack.c.bf16 %v1654_v18, %v1651_v17  ;;  %v6926_v26 = vpack.c.bf16 %v1790_v20, %v1787_v44 }
 0x6d2   : > { %v6928_v19 = vpack.c.bf16 %v1646_v5, %v1643_v22  ;;  %v6930_v27 = vpack.c.bf16 %v1782_v49, %v1779_v25 }
 0x6d3   : > { %v2095_v34 = vsel %vm1949_vm1, %v6926_v26, 0 }
 0x6d4   : > { %v2048_v28 = vsel %vm1949_vm1, %v6930_v27, 0 }
 0x6d5   : > { %4955 = vmatpush3.bf16.xpose.msra.mxu1 %v2048_v28 }
 0x6d6   : > { %4960 = vmatprep.subr.bf16.mxu1 %v7686_v43 }
 0x6dc   : > { %v4936_v33 = vpop.f32.mrb[8].mxu0  ;;  %4957 = vmatmul.mubr.msk.bf16.vlgmr.msra.gmra.mrb[44].mxu1 %vm1949_vm1, %v6928_v19 }
 0x6dd   : > { %v1898_v37 = vpop.f32.mrb[9].mxu0  ;;  %4961 = vmatpush3.bf16.xpose.msra.mxu1 %v2095_v34  ;;  %4962 = vmatprep.mubr.msk.bf16.mxu1 %vm6155_vm0, %v7686_v43  ;;  %v1907_v41 = vadd.f32 %v4936_v33, %v4657_v7 }
 0x6de   : > { %v4937_v59 = vpop.f32.mrb[10].mxu0  ;;  %4972 = vmatprep.subr.bf16.mxu1 %v7686_v43  ;;  %v1899_v45 = vadd.f32 %v4657_v7, %v1898_v37 }
 0x6df   : > { %v1910_v62 = vadd.f32 %v4937_v59, %v4657_v7  ;;  %v1901_v38 = vpop.f32.mrb[11].mxu0 }
 0x6e0   : > { %v1902_v46 = vadd.f32 %v4657_v7, %v1901_v38  ;;  %v1932_v38 = vld [vmem:[%s6654_s18 + $0x3] sm:$0x1]  ;;  %s6156_s18 = smov 96  }
 0x6e1   : > { %v6945_v15 = vpack.c.bf16 %v1910_v62, %v1907_v41  ;;  %v2148_v41 = vsel %vm1935_vm7, 1, %v6153_v56  ;;  %vm1936_vm8 = vcmp.gt.f32.partialorder %v1932_v38, 0.5 }
 0x6e2   : > { %v6947_v47 = vpack.c.bf16 %v1902_v46, %v1899_v45  ;;  %v2161_v45 = vrot.slane %v2148_v41, %v6775_v30 }
 0x6e4   : > { %v4940_v48 = vpop.f32.mrb[12].mxu0  ;;  %4967 = vmatpush3.bf16.msra.mxu0 %v6947_v47  ;;  %4963 = vmatmul.mubr.msk.bf16.vlgmr.msra.gmra.mrb[48].mxu1 %vm1949_vm1, %v6924_v51  ;;  %vm6991_vm9 = vcmp.eq.s32.totalorder %v2161_v45, 1 }
 0x6e5   : > { %v1923_v35 = vadd.f32 %v4940_v48, %v4657_v7  ;;  %v1914_v50 = vpop.f32.mrb[13].mxu0  ;;  %4973 = vmatpush3.bf16.msra.mxu1 %v6945_v15  ;;  %4974 = vmatprep.mubr.msk.bf16.mxu1 %vm6155_vm0, %v7686_v43 }
 0x6e6   : > { %v1915_v36 = vadd.f32 %v4657_v7, %v1914_v50  ;;  %v4941_v52 = vpop.f32.mrb[14].mxu0  ;;  %4984 = vmatprep.subr.bf16.mxu1 %v7686_v43  ;;  %4978 = vmatprep.subr.bf16.mxu0 %v7686_v43 }
 0x6e7   : > { %v1926_v53 = vadd.f32 %v4941_v52, %v4657_v7  ;;  %v1917_v54 = vpop.f32.mrb[15].mxu0 }
 0x6e8   : > { %v1918_v16 = vadd.f32 %v4657_v7, %v1917_v54 }
 0x6e9   : > { %v6957_v24 = vpack.c.bf16 %v1926_v53, %v1923_v35  ;;  %v2149_v35 = vsel %vm1936_vm8, 1, %v6153_v56  ;;  %v5481_v56 = vld [vmem:[#allocation23 + $0x30] sm:$0xff]  }
 0x6ea   : > { %v6959_v57 = vpack.c.bf16 %v1918_v16, %v1915_v36  ;;  %v2165_v29 = vrot.slane %v2149_v35, %v6775_v30 }
 0x6ec   : > { %vm7003_vm10 = vcmp.eq.s32.totalorder %v2165_v29, 1 }
 0x79e   : > { %v2037_v11 = vpop.f32.mrb[40].mxu1 }
 0x79f   : > { %v1990_v12 = vpop.f32.mrb[16].mxu0  ;;  %v4952_v13 = vpop.f32.mrb[41].mxu1  ;;  %v2140_v14 = vmul.f32 0.17677669, %v2037_v11 }
 0x7a0   : > { %v2138_v17 = vmul.f32 0.17677669, %v1990_v12  ;;  %v4946_v44 = vpop.f32.mrb[17].mxu0  ;;  %v2040_v18 = vpop.f32.mrb[42].mxu1 }
 0x7a1   : > { %v2141_v21 = vmul.f32 0.17677669, %v2040_v18  ;;  %v1993_v40 = vpop.f32.mrb[18].mxu0  ;;  %v4953_v22 = vpop.f32.mrb[43].mxu1  ;;  %v2172_v7 = vsel %vm6972_vm6, %v2140_v14, -3.4028235e+38 }
 0x7a2   : > { %v2139_v25 = vmul.f32 0.17677669, %v1993_v40  ;;  %v4947_v5 = vpop.f32.mrb[19].mxu0  ;;  %v2170_v49 = vsel %vm6967_vm4, %v2138_v17, -3.4028235e+38  ;;  %v2185_v59 = vsel %vm2178_vm5, %v2172_v7, -inf }
 0x7a3   : > { %v2179_v28 = vsel %vm2178_vm5, %v2170_v49, -inf  ;;  %v2173_v37 = vsel %vm6972_vm6, %v2141_v21, -3.4028235e+38 }
 0x7a4   : > { %2180 = vmax.xlane.f32.xlu0 %v2179_v28  ;;  %v2171_v33 = vsel %vm6967_vm4, %v2139_v25, -3.4028235e+38  ;;  %v2188_v62 = vsel %vm2178_vm5, %v2173_v37, -inf }
 0x7a5   : > { %v2182_v34 = vsel %vm2178_vm5, %v2171_v33, -inf }
 0x7a6   : > { %2183 = vmax.xlane.f32.xlu1 %v2182_v34 }
 0x7a8   : > { %2186 = vmax.xlane.f32.xlu0 %v2185_v59 }
 0x7aa   : > { %2189 = vmax.xlane.f32.xlu1 %v2188_v62 }
 0x7af   : > { %v2084_v48 = vpop.f32.mrb[44].mxu1 }
 0x7b0   : > { %v2142_v50 = vmul.f32 0.17677669, %v2084_v48  ;;  %v4958_v36 = vpop.f32.mrb[45].mxu1 }
 0x7b1   : > { %v2087_v52 = vpop.f32.mrb[46].mxu1 }
 0x7b2   : > { %v2143_v53 = vmul.f32 0.17677669, %v2087_v52  ;;  %v4959_v54 = vpop.f32.mrb[47].mxu1  ;;  %v2174_v16 = vsel %vm6991_vm9, %v2142_v50, -3.4028235e+38 }
 0x7b3   : > { %v2191_v58 = vsel %vm2178_vm5, %v2174_v16, -inf }
 0x7b4   : > { %2192 = vmax.xlane.f32.xlu0 %v2191_v58  ;;  %v2175_v60 = vsel %vm6991_vm9, %v2143_v53, -3.4028235e+38 }
 0x7b5   : > { %v2194_v61 = vsel %vm2178_vm5, %v2175_v60, -inf }
 0x7b6   : > { %2195 = vmax.xlane.f32.xlu1 %v2194_v61 }
 0x7b7   : > { %v2131_v32 = vpop.f32.mrb[48].mxu1 }
 0x7b8   : > { %v2144_v10 = vmul.f32 0.17677669, %v2131_v32  ;;  %v4964_v11 = vpop.f32.mrb[49].mxu1 }
 0x7b9   : > { %v2134_v12 = vpop.f32.mrb[50].mxu1 }
 0x7ba   : > { %v2145_v13 = vmul.f32 0.17677669, %v2134_v12  ;;  %v4965_v42 = vpop.f32.mrb[51].mxu1  ;;  %v2176_v30 = vsel %vm7003_vm10, %v2144_v10, -3.4028235e+38 }
 0x7bb   : > { %v2197_v14 = vsel %vm2178_vm5, %v2176_v30, -inf }
 0x7bc   : > { %2198 = vmax.xlane.f32.xlu0 %v2197_v14  ;;  %v2177_v17 = vsel %vm7003_vm10, %v2145_v13, -3.4028235e+38 }
 0x7bd   : > { %v2200_v44 = vsel %vm2178_vm5, %v2177_v17, -inf }
 0x7be   : > { %2201 = vmax.xlane.f32.xlu1 %v2200_v44 }
 0x831   : > { %v2181_v18 = vpop.xlane.xlu0 %2180 }
 0x832   : > { %v2203_v21 = vsub.f32 %v2170_v49, %v2181_v18 }
 0x833   : > { %v2184_v40 = vpop.xlane.xlu1 %2183 }
 0x834   : > { %v2204_v25 = vsub.f32 %v2171_v33, %v2184_v40  ;;  %v2211_v28 = vmul.f32 1.442695, %v2203_v21 }
 0x835   : > { %v2187_v22 = vpop.xlane.xlu0 %2186 }
 0x836   : > { %v2205_v5 = vsub.f32 %v2172_v7, %v2187_v22  ;;  %v2213_v62 = vmul.f32 1.442695, %v2204_v25 }
 0x837   : > { %v2190_v34 = vpop.xlane.xlu1 %2189 }
 0x838   : > { %v2215_v59 = vmul.f32 1.442695, %v2205_v5  ;;  %v2206_v41 = vsub.f32 %v2173_v37, %v2190_v34 }
 0x83a   : > { %5515 = vpow2.f32 %v2215_v59  ;;  %v2217_v38 = vmul.f32 1.442695, %v2206_v41 }
 0x83b   : > { %5517 = vpow2.f32 %v2211_v28 }
 0x83c   : > { %5519 = vpow2.f32 %v2217_v38 }
 0x83d   : > { %5521 = vpow2.f32 %v2213_v62 }
 0x841   : > { %v2193_v45 = vpop.xlane.xlu0 %2192 }
 0x842   : > { %v2207_v48 = vsub.f32 %v2174_v16, %v2193_v45 }
 0x843   : > { %v2196_v35 = vpop.xlane.xlu1 %2195 }
 0x844   : > { %v5516_v50 = vpop.eup %5515  ;;  %v2219_v36 = vmul.f32 1.442695, %v2207_v48  ;;  %v2208_v49 = vsub.f32 %v2175_v60, %v2196_v35 }
 0x845   : > { %v5518_v52 = vpop.eup %5517  ;;  %v2233_v33 = vsel %vm2178_vm5, %v5516_v50, 0.0 }
 0x846   : > { %v5520_v7 = vpop.eup %5519  ;;  %5523 = vpow2.f32 %v2219_v36  ;;  %v2221_v53 = vmul.f32 1.442695, %v2208_v49  ;;  %2234 = vadd.xlane.f32.xlu0 %v2233_v33  ;;  %v2227_v58 = vsel %vm2178_vm5, %v5518_v52, 0.0 }
 0x847   : > { %v2236_v37 = vsel %vm2178_vm5, %v5520_v7, 0.0  ;;  %v5522_v54 = vpop.eup %5521 }
 0x848   : > { %5525 = vpow2.f32 %v2221_v53  ;;  %2237 = vadd.xlane.f32.xlu1 %v2236_v37  ;;  %v2230_v61 = vsel %vm2178_vm5, %v5522_v54, 0.0 }
 0x849   : > { %v2199_v29 = vpop.xlane.xlu0 %2198 }
 0x84a   : > { %v2209_v16 = vsub.f32 %v2176_v30, %v2199_v29  ;;  %2228 = vadd.xlane.f32.xlu0 %v2227_v58 }
 0x84b   : > { %v2202_v30 = vpop.xlane.xlu1 %2201 }
 0x84c   : > { %v2223_v60 = vmul.f32 1.442695, %v2209_v16  ;;  %2231 = vadd.xlane.f32.xlu1 %v2230_v61  ;;  %v2210_v14 = vsub.f32 %v2177_v17, %v2202_v30 }
 0x84e   : > { %5527 = vpow2.f32 %v2223_v60  ;;  %v2225_v44 = vmul.f32 1.442695, %v2210_v14 }
 0x850   : > { %v5524_v32 = vpop.eup %5523  ;;  %5529 = vpow2.f32 %v2225_v44 }
 0x851   : > { %v2239_v10 = vsel %vm2178_vm5, %v5524_v32, 0.0 }
 0x852   : > { %v5526_v11 = vpop.eup %5525  ;;  %2240 = vadd.xlane.f32.xlu0 %v2239_v10 }
 0x853   : > { %v2242_v12 = vsel %vm2178_vm5, %v5526_v11, 0.0 }
 0x854   : > { %2243 = vadd.xlane.f32.xlu1 %v2242_v12 }
 0x858   : > { %v7019_v13 = vpop.eup %5527 }
 0x859   : > { %v2245_v42 = vsel %vm2178_vm5, %v7019_v13, 0.0 }
 0x85a   : > { %2246 = vadd.xlane.f32.xlu0 %v2245_v42  ;;  %v7033_v18 = vpop.eup %5529 }
 0x85b   : > { %v2248_v21 = vsel %vm2178_vm5, %v7033_v18, 0.0 }
 0x865   : > { %2512 = vrot.lane.b32.xlu1 %v6904_v63, %s6156_s18 }
 0x869   : > { %2456 = vrot.lane.b32.xlu1 %v6906_v8, %s6156_s18 }
 0x870   : > { %2459 = vrot.lane.b32.xlu0 %v6908_v9, %s6156_s18 }
 0x874   : > { %2509 = vrot.lane.b32.xlu0 %v6902_v6, %s6156_s18 }
 0x878   : > { %2562 = vrot.lane.b32.xlu0 %v6928_v19, %s6156_s18 }
 0x88d   : > { %2249 = vadd.xlane.f32.xlu1 %v2248_v21 }
 0x89e   : > { %2565 = vrot.lane.b32.xlu1 %v6930_v27, %s6156_s18 }
 0x8a2   : > { %2618 = vrot.lane.b32.xlu1 %v6926_v26, %s6156_s18 }
 0x8a6   : > { %2615 = vrot.lane.b32.xlu1 %v6924_v51, %s6156_s18 }
 0x8d3   : > { %v2235_v17 = vpop.xlane.xlu0 %2234 }
 0x8d4   : > { %5531 = vrcp.f32 %v2235_v17 }
 0x8d5   : > { %v2238_v40 = vpop.xlane.xlu1 %2237 }
 0x8d6   : > { %5533 = vrcp.f32 %v2238_v40 }
 0x8d7   : > { %v2229_v22 = vpop.xlane.xlu0 %2228 }
 0x8d8   : > { %5535 = vrcp.f32 %v2229_v22 }
 0x8d9   : > { %v2232_v25 = vpop.xlane.xlu1 %2231 }
 0x8da   : > { %5537 = vrcp.f32 %v2232_v25 }
 0x8de   : > { %v5532_v5 = vpop.eup %5531 }
 0x8df   : > { %v2256_v28 = vmul.f32 %v5532_v5, %v5516_v50  ;;  %v2241_v34 = vpop.xlane.xlu0 %2240 }
 0x8e0   : > { %v5534_v59 = vpop.eup %5533  ;;  %5539 = vrcp.f32 %v2241_v34 }
 0x8e1   : > { %v2258_v41 = vmul.f32 %v5534_v59, %v5520_v7  ;;  %v2244_v62 = vpop.xlane.xlu1 %2243  ;;  %v2269_v48 = vsel %vm6972_vm6, %v2256_v28, 0.0 }
 0x8e2   : > { %v5536_v38 = vpop.eup %5535  ;;  %5541 = vrcp.f32 %v2244_v62 }
 0x8e3   : > { %v2252_v45 = vmul.f32 %v5536_v38, %v5518_v52  ;;  %v2270_v35 = vsel %vm6972_vm6, %v2258_v41, 0.0 }
 0x8e4   : > { %v5538_v36 = vpop.eup %5537  ;;  %v2276_v49 = vpack.c.bf16 %v2270_v35, %v2269_v48 }
 0x8e5   : > { %v2254_v33 = vmul.f32 %v5538_v36, %v5522_v54  ;;  %v2267_v50 = vsel %vm6967_vm4, %v2252_v45, 0.0  ;;  %v2513_v12 = vpop.permute.xlu1 %2512 }
 0x8e6   : > { %4975 = vmatmul.mubr.msk.bf16.vlgmr.msra.gmra.mrb[52].mxu1 %vm2178_vm5, %v2276_v49  ;;  %v2518_v59 = vsel %vm1949_vm1, %v2513_v12, 0 }
 0x8e7   : > { %4985 = vmatpush3.bf16.msra.mxu1 %v6957_v24  ;;  %v2268_v7 = vsel %vm6967_vm4, %v2254_v33, 0.0  ;;  %4986 = vmatprep.mubr.msk.bf16.mxu1 %vm6155_vm0, %v7686_v43  ;;  %v2247_v37 = vpop.xlane.xlu0 %2246 }
 0x8e8   : > { %v2275_v52 = vpack.c.bf16 %v2268_v7, %v2267_v50  ;;  %4996 = vmatprep.subr.bf16.mxu1 %v7686_v43  ;;  %5543 = vrcp.f32 %v2247_v37 }
 0x8ea   : > { %v5540_v53 = vpop.eup %5539  ;;  %4969 = vmatmul.mubr.msk.bf16.vlgmr.msra.gmra.mrb[20].mxu0 %vm2178_vm5, %v2275_v52 }
 0x8eb   : > { %v2260_v54 = vmul.f32 %v5540_v53, %v5524_v32  ;;  %4979 = vmatpush3.bf16.msra.mxu0 %v6959_v57  ;;  %4980 = vmatprep.mubr.msk.bf16.mxu0 %vm6155_vm0, %v7686_v43  ;;  %v2460_v60 = vpop.permute.xlu0 %2459 }
 0x8ec   : > { %v5542_v29 = vpop.eup %5541  ;;  %4990 = vmatprep.subr.bf16.mxu0 %v7686_v43  ;;  %v2465_v32 = vsel %vm1949_vm1, %v2460_v60, 0 }
 0x8ed   : > { %v2262_v58 = vmul.f32 %v5542_v29, %v5526_v11  ;;  %v2271_v16 = vsel %vm6991_vm9, %v2260_v54, 0.0  ;;  %v2457_v11 = vpop.permute.xlu1 %2456 }
 0x8ef   : > { %v2272_v61 = vsel %vm6991_vm9, %v2262_v58, 0.0  ;;  %v2510_v44 = vpop.permute.xlu0 %2509 }
 0x8f0   : > { %v2277_v10 = vpack.c.bf16 %v2272_v61, %v2271_v16 }
 0x8f2   : > { %4981 = vmatmul.mubr.msk.bf16.vlgmr.msra.gmra.mrb[24].mxu0 %vm2178_vm5, %v2277_v10  ;;  %v5544_v21 = vpop.eup %5543 }
 0x8f3   : > { %4992 = vmatprep.mubr.msk.bf16.mxu0 %vm6155_vm0, %v7686_v43  ;;  %v2264_v17 = vmul.f32 %v5544_v21, %v7019_v13  ;;  %v2563_v22 = vpop.permute.xlu0 %2562 }
 0x8f4   : > { %4991 = vmatpush3.bf16.xpose.msra.mxu0 %v2465_v32 }
 0x8f5   : > { %5002 = vmatprep.subr.bf16.mxu0 %v7686_v43  ;;  %v2273_v5 = vsel %vm7003_vm10, %v2264_v17, 0.0 }
 0x8fb   : > { %4993 = vmatmul.mubr.msk.bf16.vlgmr.msra.gmra.mrb[28].mxu0 %vm1949_vm1, %v2457_v11 }
 0x8fc   : > { %5004 = vmatprep.mubr.msk.bf16.mxu0 %vm6155_vm0, %v7686_v43 }
 0x91a   : > { %v2250_v42 = vpop.xlane.xlu1 %2249 }
 0x91b   : > { %5545 = vrcp.f32 %v2250_v42 }
 0x91e   : > { %v2566_v30 = vpop.permute.xlu1 %2565 }
 0x91f   : > { %v2571_v14 = vsel %vm1949_vm1, %v2566_v30, 0 }
 0x920   : > { %5003 = vmatpush3.bf16.xpose.msra.mxu0 %v2571_v14 }
 0x921   : > { %5014 = vmatprep.subr.bf16.mxu0 %v7686_v43 }
 0x922   : > { %v2619_v13 = vpop.permute.xlu1 %2618 }
 0x925   : > { %v5546_v40 = vpop.eup %5545 }
 0x926   : > { %v2266_v25 = vmul.f32 %v5546_v40, %v7033_v18  ;;  %v2624_v18 = vsel %vm1949_vm1, %v2619_v13, 0  ;;  %v2616_v41 = vpop.permute.xlu1 %2615 }
 0x927   : > { %5005 = vmatmul.mubr.msk.bf16.vlgmr.msra.gmra.mrb[32].mxu0 %vm1949_vm1, %v2563_v22 }
 0x928   : > { %v2274_v28 = vsel %vm7003_vm10, %v2266_v25, 0.0  ;;  %5016 = vmatprep.mubr.msk.bf16.mxu0 %vm6155_vm0, %v7686_v43 }
 0x929   : > { %v2278_v34 = vpack.c.bf16 %v2274_v28, %v2273_v5 }
 0x92b   : > { %4987 = vmatmul.mubr.msk.bf16.vlgmr.msra.gmra.mrb[56].mxu1 %vm2178_vm5, %v2278_v34 }
 0x92c   : > { %4997 = vmatpush3.bf16.xpose.msra.mxu1 %v2518_v59  ;;  %4998 = vmatprep.mubr.msk.bf16.mxu1 %vm6155_vm0, %v7686_v43 }
 0x92d   : > { %5008 = vmatprep.subr.bf16.mxu1 %v7686_v43 }
 0x933   : > { %4999 = vmatmul.mubr.msk.bf16.vlgmr.msra.gmra.mrb[60].mxu1 %vm1949_vm1, %v2510_v44 }
 0x934   : > { %5009 = vmatpush3.bf16.xpose.msra.mxu1 %v2624_v18  ;;  %5010 = vmatprep.mubr.msk.bf16.mxu1 %vm6155_vm0, %v7686_v43 }
 0x935   : > { %5020 = vmatprep.subr.bf16.mxu1 %v7686_v43 }
 0x93b   : > { %5011 = vmatmul.mubr.msk.bf16.vlgmr.msra.gmra.mrb[64].mxu1 %vm1949_vm1, %v2616_v41 }
 0x93c   : > { %5022 = vmatprep.mubr.msk.bf16.mxu1 %vm6155_vm0, %v7686_v43 }
 0x9b9   : > { %v7097_v62 = vpop.f32.mrb[52].mxu1 }
 0x9ba   : > { %v4976_v38 = vpop.f32.mrb[53].mxu1 }
 0x9bb   : > { %v7099_v45 = vpop.f32.mrb[54].mxu1 }
 0x9bc   : > { %v4977_v48 = vpop.f32.mrb[55].mxu1 }
 0x9bd   : > { %v7101_v35 = vpop.f32.mrb[20].mxu0 }
 0x9be   : > { %v4970_v36 = vpop.f32.mrb[21].mxu0 }
 0x9bf   : > { %v7103_v49 = vpop.f32.mrb[22].mxu0 }
 0x9c0   : > { %v4971_v33 = vpop.f32.mrb[23].mxu0 }
 0x9c5   : > { %v7105_v50 = vpop.f32.mrb[24].mxu0 }
 0x9c6   : > { %v4982_v7 = vpop.f32.mrb[25].mxu0 }
 0x9c7   : > { %v7107_v52 = vpop.f32.mrb[26].mxu0 }
 0x9c8   : > { %v4983_v53 = vpop.f32.mrb[27].mxu0 }
 0x9ce   : > { %v2501_v37 = vpop.f32.mrb[28].mxu0 }
 0x9cf   : > { %v2667_v54 = vmul.f32 0.17677669, %v2501_v37  ;;  %v4994_v29 = vpop.f32.mrb[29].mxu0 }
 0x9d0   : > { %v2504_v58 = vpop.f32.mrb[30].mxu0 }
 0x9d1   : > { %v2668_v16 = vmul.f32 0.17677669, %v2504_v58  ;;  %v4995_v61 = vpop.f32.mrb[31].mxu0  ;;  %v2675_v60 = vsel %vm6967_vm4, %v2667_v54, -3.4028235e+38 }
 0x9d2   : > { %v2683_v10 = vsel %vm2178_vm5, %v2675_v60, -inf }
 0x9d3   : > { %2684 = vmax.xlane.f32.xlu0 %v2683_v10  ;;  %v2676_v32 = vsel %vm6967_vm4, %v2668_v16, -3.4028235e+38 }
 0x9d4   : > { %v2686_v12 = vsel %vm2178_vm5, %v2676_v32, -inf }
 0x9d5   : > { %2687 = vmax.xlane.f32.xlu1 %v2686_v12 }
 0x9fa   : > { %v2607_v11 = vpop.f32.mrb[32].mxu0 }
 0x9fb   : > { %v5006_v42 = vpop.f32.mrb[33].mxu0  ;;  %v2671_v36 = vmul.f32 0.17677669, %v2607_v11 }
 0x9fc   : > { %v2610_v30 = vpop.f32.mrb[34].mxu0 }
 0x9fd   : > { %v2672_v14 = vmul.f32 0.17677669, %v2610_v30  ;;  %v5007_v44 = vpop.f32.mrb[35].mxu0  ;;  %v2679_v29 = vsel %vm6991_vm9, %v2671_v36, -3.4028235e+38 }
 0x9fe   : > { %v7115_v21 = vpop.f32.mrb[56].mxu1  ;;  %v2695_v61 = vsel %vm2178_vm5, %v2679_v29, -inf }
 0x9ff   : > { %v4988_v17 = vpop.f32.mrb[57].mxu1  ;;  %v2680_v40 = vsel %vm6991_vm9, %v2672_v14, -3.4028235e+38 }
 0xa00   : > { %v7119_v22 = vpop.f32.mrb[58].mxu1  ;;  %v2698_v25 = vsel %vm2178_vm5, %v2680_v40, -inf }
 0xa01   : > { %2699 = vmax.xlane.f32.xlu1 %v2698_v25  ;;  %v4989_v5 = vpop.f32.mrb[59].mxu1 }
 0xa06   : > { %v2554_v28 = vpop.f32.mrb[60].mxu1 }
 0xa07   : > { %v2669_v34 = vmul.f32 0.17677669, %v2554_v28  ;;  %v5000_v59 = vpop.f32.mrb[61].mxu1 }
 0xa08   : > { %v2557_v13 = vpop.f32.mrb[62].mxu1 }
 0xa09   : > { %v2670_v18 = vmul.f32 0.17677669, %v2557_v13  ;;  %v5001_v41 = vpop.f32.mrb[63].mxu1  ;;  %v2677_v38 = vsel %vm6972_vm6, %v2669_v34, -3.4028235e+38 }
 0xa0a   : > { %v2689_v48 = vsel %vm2178_vm5, %v2677_v38, -inf }
 0xa0b   : > { %2690 = vmax.xlane.f32.xlu0 %v2689_v48  ;;  %v2678_v33 = vsel %vm6972_vm6, %v2670_v18, -3.4028235e+38 }
 0xa0c   : > { %v2692_v53 = vsel %vm2178_vm5, %v2678_v33, -inf }
 0xa0e   : > { %v2660_v7 = vpop.f32.mrb[64].mxu1 }
 0xa0f   : > { %v2673_v37 = vmul.f32 0.17677669, %v2660_v7  ;;  %2693 = vmax.xlane.f32.xlu0 %v2692_v53  ;;  %v5012_v54 = vpop.f32.mrb[65].mxu1 }
 0xa10   : > { %v2663_v58 = vpop.f32.mrb[66].mxu1 }
 0xa11   : > { %v5013_v16 = vpop.f32.mrb[67].mxu1  ;;  %v2681_v10 = vsel %vm7003_vm10, %v2673_v37, -3.4028235e+38  ;;  %v2674_v11 = vmul.f32 0.17677669, %v2663_v58 }
 0xa12   : > { %2832 = vrot.lane.b32.xlu1 %v6945_v15, %s6156_s18  ;;  %v2701_v12 = vsel %vm2178_vm5, %v2681_v10, -inf }
 0xa13   : > { %2696 = vmax.xlane.f32.xlu0 %v2695_v61  ;;  %v7142_v42 = vsel %vm7003_vm10, %v2674_v11, -3.4028235e+38 }
 0xa14   : > { %v2704_v30 = vsel %vm2178_vm5, %v7142_v42, -inf }
 0xa16   : > { %2880 = vrot.lane.b32.xlu1 %v6959_v57, %s6156_s18 }
 0xa17   : > { %2702 = vmax.xlane.f32.xlu0 %v2701_v12 }
 0xa2d   : > { %2784 = vrot.lane.b32.xlu0 %v6947_v47, %s6156_s18 }
 0xa3a   : > { %2705 = vmax.xlane.f32.xlu1 %v2704_v30 }
 0xa4b   : > { %2928 = vrot.lane.b32.xlu1 %v6957_v24, %s6156_s18 }
 0xa60   : > { %v2685_v14 = vpop.xlane.xlu0 %2684 }
 0xa61   : > { %v2707_v44 = vsub.f32 %v2675_v60, %v2685_v14 }
 0xa62   : > { %v2688_v17 = vpop.xlane.xlu1 %2687 }
 0xa63   : > { %v2715_v25 = vmul.f32 1.442695, %v2707_v44  ;;  %v2708_v5 = vsub.f32 %v2676_v32, %v2688_v17 }
 0xa65   : > { %5547 = vpow2.f32 %v2715_v25  ;;  %v2717_v28 = vmul.f32 1.442695, %v2708_v5 }
 0xa67   : > { %5549 = vpow2.f32 %v2717_v28 }
 0xa6f   : > { %v7148_v34 = vpop.eup %5547 }
 0xa70   : > { %v2731_v59 = vsel %vm2178_vm5, %v7148_v34, 0.0 }
 0xa71   : > { %v7152_v13 = vpop.eup %5549  ;;  %2732 = vadd.xlane.f32.xlu0 %v2731_v59 }
 0xa72   : > { %v2734_v18 = vsel %vm2178_vm5, %v7152_v13, 0.0 }
 0xa73   : > { %2735 = vadd.xlane.f32.xlu1 %v2734_v18 }
 0xa8e   : > { %v2700_v41 = vpop.xlane.xlu1 %2699 }
 0xa8f   : > { %v2712_v36 = vsub.f32 %v2680_v40, %v2700_v41 }
 0xa91   : > { %v2725_v54 = vmul.f32 1.442695, %v2712_v36 }
 0xa92   : > { %v2833_v60 = vpop.permute.xlu1 %2832 }
 0xa93   : > { %5021 = vmatpush3.bf16.msra.mxu1 %v2833_v60 }
 0xa94   : > { %5032 = vmatprep.subr.bf16.mxu1 %v7686_v43 }
 0xa96   : > { %v2881_v18 = vpop.permute.xlu1 %2880 }
 0xa98   : > { %v2691_v32 = vpop.xlane.xlu0 %2690 }
 0xa99   : > { %v2709_v48 = vsub.f32 %v2677_v38, %v2691_v32 }
 0xa9b   : > { %v2719_v7 = vmul.f32 1.442695, %v2709_v48 }
 0xa9c   : > { %v2694_v53 = vpop.xlane.xlu0 %2693 }
 0xa9d   : > { %5551 = vpow2.f32 %v2719_v7  ;;  %v2710_v37 = vsub.f32 %v2678_v33, %v2694_v53 }
 0xa9f   : > { %v2721_v58 = vmul.f32 1.442695, %v2710_v37 }
 0xaa0   : > { %v2697_v16 = vpop.xlane.xlu0 %2696 }
 0xaa1   : > { %5553 = vpow2.f32 %v2721_v58  ;;  %v2711_v61 = vsub.f32 %v2679_v29, %v2697_v16 }
 0xaa2   : > { %5555 = vpow2.f32 %v2725_v54 }
 0xaa3   : > { %v2723_v12 = vmul.f32 1.442695, %v2711_v61 }
 0xaa4   : > { %v2703_v11 = vpop.xlane.xlu0 %2702 }
 0xaa5   : > { %5557 = vpow2.f32 %v2723_v12  ;;  %v2713_v30 = vsub.f32 %v2681_v10, %v2703_v11 }
 0xaa7   : > { %v5552_v14 = vpop.eup %5551  ;;  %v2727_v44 = vmul.f32 1.442695, %v2713_v30 }
 0xaa8   : > { %v2785_v17 = vpop.permute.xlu0 %2784  ;;  %v2737_v38 = vsel %vm2178_vm5, %v5552_v14, 0.0 }
 0xaa9   : > { %5559 = vpow2.f32 %v2727_v44  ;;  %2738 = vadd.xlane.f32.xlu0 %v2737_v38  ;;  %5015 = vmatpush3.bf16.msra.mxu0 %v2785_v17 }
 0xaaa   : > { %5026 = vmatprep.subr.bf16.mxu0 %v7686_v43 }
 0xaab   : > { %v5554_v40 = vpop.eup %5553 }
 0xaac   : > { %v2740_v33 = vsel %vm2178_vm5, %v5554_v40, 0.0  ;;  %v5556_v25 = vpop.eup %5555 }
 0xaad   : > { %2741 = vadd.xlane.f32.xlu1 %v2740_v33  ;;  %v2746_v10 = vsel %vm2178_vm5, %v5556_v25, 0.0 }
 0xaaf   : > { %v5558_v29 = vpop.eup %5557 }
 0xab0   : > { %v2743_v5 = vsel %vm2178_vm5, %v5558_v29, 0.0 }
 0xab1   : > { %2744 = vadd.xlane.f32.xlu0 %v2743_v5  ;;  %2747 = vadd.xlane.f32.xlu1 %v2746_v10 }
 0xab3   : > { %v7162_v28 = vpop.eup %5559 }
 0xab4   : > { %v2749_v59 = vsel %vm2178_vm5, %v7162_v28, 0.0 }
 0xab5   : > { %2750 = vadd.xlane.f32.xlu0 %v2749_v59 }
 0xac2   : > { %3028 = vrot.lane.b32.xlu1 %v6904_v63, %s6157_s28 }
 0xac7   : > { %v2706_v41 = vpop.xlane.xlu1 %2705 }
 0xac8   : > { %v2714_v60 = vsub.f32 %v7142_v42, %v2706_v41 }
 0xaca   : > { %v2729_v32 = vmul.f32 1.442695, %v2714_v60 }
 0xacb   : > { %2977 = vrot.lane.b32.xlu0 %v6908_v9, %s6157_s28  ;;  %v2929_v42 = vpop.permute.xlu1 %2928 }
 0xacc   : > { %5561 = vpow2.f32 %v2729_v32 }
 0xacf   : > { %2975 = vrot.lane.b32.xlu0 %v6906_v8, %s6157_s28 }
 0xad3   : > { %3026 = vrot.lane.b32.xlu0 %v6902_v6, %s6157_s28 }
 0xad6   : > { %v7177_v48 = vpop.eup %5561 }
 0xad7   : > { %3077 = vrot.lane.b32.xlu0 %v6928_v19, %s6157_s28  ;;  %v2752_v36 = vsel %vm2178_vm5, %v7177_v48, 0.0 }
 0xae6   : > { %2753 = vadd.xlane.f32.xlu1 %v2752_v36 }
 0xaf7   : > { %3079 = vrot.lane.b32.xlu1 %v6930_v27, %s6157_s28 }
 0xafb   : > { %3130 = vrot.lane.b32.xlu1 %v6926_v26, %s6157_s28 }
 0xafe   : > { %v2733_v7 = vpop.xlane.xlu0 %2732 }
 0xaff   : > { %5563 = vrcp.f32 %v2733_v7  ;;  %3128 = vrot.lane.b32.xlu1 %v6924_v51, %s6157_s28 }
 0xb00   : > { %v2736_v53 = vpop.xlane.xlu1 %2735 }
 0xb01   : > { %5565 = vrcp.f32 %v2736_v53 }
 0xb09   : > { %v5564_v37 = vpop.eup %5563 }
 0xb0a   : > { %v2756_v54 = vmul.f32 %v5564_v37, %v7148_v34 }
 0xb0b   : > { %v5566_v58 = vpop.eup %5565 }
 0xb0c   : > { %v2758_v16 = vmul.f32 %v5566_v58, %v7152_v13  ;;  %v2771_v61 = vsel %vm6967_vm4, %v2756_v54, 0.0 }
 0xb0e   : > { %v2772_v12 = vsel %vm6967_vm4, %v2758_v16, 0.0 }
 0xb0f   : > { %v2779_v11 = vpack.c.bf16 %v2772_v12, %v2771_v61 }
 0xb11   : > { %5017 = vmatmul.mubr.msk.bf16.vlgmr.msra.gmra.mrb[36].mxu0 %vm2178_vm5, %v2779_v11 }
 0xb12   : > { %5027 = vmatpush3.bf16.msra.mxu0 %v2881_v18  ;;  %5028 = vmatprep.mubr.msk.bf16.mxu0 %vm6155_vm0, %v7686_v43 }
 0xb13   : > { %5038 = vmatprep.subr.bf16.mxu0 %v7686_v43 }
 0xb36   : > { %v2739_v30 = vpop.xlane.xlu0 %2738 }
 0xb37   : > { %5567 = vrcp.f32 %v2739_v30 }
 0xb3a   : > { %v2742_v34 = vpop.xlane.xlu1 %2741 }
 0xb3b   : > { %5569 = vrcp.f32 %v2742_v34 }
 0xb3e   : > { %v2745_v13 = vpop.xlane.xlu0 %2744  ;;  %v2748_v44 = vpop.xlane.xlu1 %2747 }
 0xb3f   : > { %5571 = vrcp.f32 %v2745_v13 }
 0xb40   : > { %5573 = vrcp.f32 %v2748_v44 }
 0xb41   : > { %v5568_v17 = vpop.eup %5567 }
 0xb42   : > { %v2760_v38 = vmul.f32 %v5568_v17, %v5552_v14  ;;  %v2751_v10 = vpop.xlane.xlu0 %2750 }
 0xb43   : > { %5575 = vrcp.f32 %v2751_v10 }
 0xb44   : > { %v2773_v59 = vsel %vm6972_vm6, %v2760_v38, 0.0 }
 0xb45   : > { %v5570_v33 = vpop.eup %5569 }
 0xb46   : > { %v2762_v5 = vmul.f32 %v5570_v33, %v5554_v40  ;;  %v2978_v40 = vpop.permute.xlu0 %2977 }
 0xb47   : > { %v2983_v54 = vsel %vm1949_vm1, %v2978_v40, 0 }
 0xb48   : > { %v2774_v18 = vsel %vm6972_vm6, %v2762_v5, 0.0 }
 0xb49   : > { %v5572_v41 = vpop.eup %5571  ;;  %v2780_v60 = vpack.c.bf16 %v2774_v18, %v2773_v59 }
 0xb4a   : > { %v5574_v32 = vpop.eup %5573  ;;  %v2764_v36 = vmul.f32 %v5572_v41, %v5558_v29  ;;  %v3029_v29 = vpop.permute.xlu1 %3028 }
 0xb4b   : > { %v2766_v7 = vmul.f32 %v5574_v32, %v5556_v25  ;;  %5023 = vmatmul.mubr.msk.bf16.vlgmr.msra.gmra.mrb[68].mxu1 %vm2178_vm5, %v2780_v60  ;;  %v2976_v25 = vpop.permute.xlu0 %2975  ;;  %v3034_v33 = vsel %vm1949_vm1, %v3029_v29, 0 }
 0xb4c   : > { %5033 = vmatpush3.bf16.msra.mxu1 %v2929_v42  ;;  %v2775_v14 = vsel %vm6991_vm9, %v2764_v36, 0.0  ;;  %5034 = vmatprep.mubr.msk.bf16.mxu1 %vm6155_vm0, %v7686_v43 }
 0xb4d   : > { %v2776_v53 = vsel %vm6991_vm9, %v2766_v7, 0.0  ;;  %5044 = vmatprep.subr.bf16.mxu1 %v7686_v43  ;;  %v5576_v12 = vpop.eup %5575 }
 0xb4e   : > { %v2781_v37 = vpack.c.bf16 %v2776_v53, %v2775_v14  ;;  %v2768_v11 = vmul.f32 %v5576_v12, %v7162_v28 }
 0xb4f   : > { %v3027_v61 = vpop.permute.xlu0 %3026 }
 0xb50   : > { %5029 = vmatmul.mubr.msk.bf16.vlgmr.msra.gmra.mrb[40].mxu0 %vm2178_vm5, %v2781_v37  ;;  %v2777_v44 = vsel %vm7003_vm10, %v2768_v11, 0.0 }
 0xb51   : > { %5039 = vmatpush3.bf16.xpose.msra.mxu0 %v2983_v54  ;;  %5040 = vmatprep.mubr.msk.bf16.mxu0 %vm6155_vm0, %v7686_v43 }
 0xb52   : > { %5050 = vmatprep.subr.bf16.mxu0 %v7686_v43 }
 0xb53   : > { %v3078_v34 = vpop.permute.xlu0 %3077 }
 0xb58   : > { %5041 = vmatmul.mubr.msk.bf16.vlgmr.msra.gmra.mrb[44].mxu0 %vm1949_vm1, %v2976_v25 }
 0xb59   : > { %5052 = vmatprep.mubr.msk.bf16.mxu0 %vm6155_vm0, %v7686_v43 }
 0xb73   : > { %v2754_v42 = vpop.xlane.xlu1 %2753 }
 0xb74   : > { %5577 = vrcp.f32 %v2754_v42 }
 0xb77   : > { %v3080_v58 = vpop.permute.xlu1 %3079 }
 0xb78   : > { %v3085_v16 = vsel %vm1949_vm1, %v3080_v58, 0 }
 0xb79   : > { %5051 = vmatpush3.bf16.xpose.msra.mxu0 %v3085_v16 }
 0xb7a   : > { %5062 = vmatprep.subr.bf16.mxu0 %v7686_v43 }
 0xb7b   : > { %v3131_v28 = vpop.permute.xlu1 %3130 }
 0xb7e   : > { %v5578_v30 = vpop.eup %5577 }
 0xb7f   : > { %v2770_v13 = vmul.f32 %v5578_v30, %v7177_v48  ;;  %v3136_v48 = vsel %vm1949_vm1, %v3131_v28, 0  ;;  %v3129_v5 = vpop.permute.xlu1 %3128 }
 0xb80   : > { %5053 = vmatmul.mubr.msk.bf16.vlgmr.msra.gmra.mrb[48].mxu0 %vm1949_vm1, %v3078_v34 }
 0xb81   : > { %v2778_v17 = vsel %vm7003_vm10, %v2770_v13, 0.0  ;;  %5064 = vmatprep.mubr.msk.bf16.mxu0 %vm6155_vm0, %v7686_v43 }
 0xb82   : > { %v2782_v38 = vpack.c.bf16 %v2778_v17, %v2777_v44 }
 0xb84   : > { %5035 = vmatmul.mubr.msk.bf16.vlgmr.msra.gmra.mrb[72].mxu1 %vm2178_vm5, %v2782_v38 }
 0xb85   : > { %5045 = vmatpush3.bf16.xpose.msra.mxu1 %v3034_v33  ;;  %5046 = vmatprep.mubr.msk.bf16.mxu1 %vm6155_vm0, %v7686_v43 }
 0xb86   : > { %5056 = vmatprep.subr.bf16.mxu1 %v7686_v43 }
 0xb8c   : > { %5047 = vmatmul.mubr.msk.bf16.vlgmr.msra.gmra.mrb[76].mxu1 %vm1949_vm1, %v3027_v61 }
 0xb8d   : > { %5057 = vmatpush3.bf16.xpose.msra.mxu1 %v3136_v48  ;;  %5058 = vmatprep.mubr.msk.bf16.mxu1 %vm6155_vm0, %v7686_v43 }
 0xb8e   : > { %5068 = vmatprep.subr.bf16.mxu1 %v7686_v43 }
 0xb94   : > { %5059 = vmatmul.mubr.msk.bf16.vlgmr.msra.gmra.mrb[80].mxu1 %vm1949_vm1, %v3129_v5 }
 0xb95   : > { %5070 = vmatprep.mubr.msk.bf16.mxu1 %vm6155_vm0, %v7686_v43 }
 0xbe4   : > { %v7241_v10 = vpop.f32.mrb[36].mxu0 }
 0xbe5   : > { %v5018_v59 = vpop.f32.mrb[37].mxu0 }
 0xbe6   : > { %v7243_v18 = vpop.f32.mrb[38].mxu0 }
 0xbe7   : > { %v5019_v60 = vpop.f32.mrb[39].mxu0 }
 0xc1e   : > { %v7247_v32 = vpop.f32.mrb[68].mxu1 }
 0xc1f   : > { %v5024_v36 = vpop.f32.mrb[69].mxu1 }
 0xc20   : > { %v7249_v7 = vpop.f32.mrb[70].mxu1 }
 0xc21   : > { %v5025_v40 = vpop.f32.mrb[71].mxu1 }
 0xc23   : > { %v7253_v53 = vpop.f32.mrb[40].mxu0 }
 0xc24   : > { %v5030_v37 = vpop.f32.mrb[41].mxu0 }
 0xc25   : > { %v7255_v54 = vpop.f32.mrb[42].mxu0 }
 0xc26   : > { %v5031_v29 = vpop.f32.mrb[43].mxu0 }
 0xc2b   : > { %v3019_v42 = vpop.f32.mrb[44].mxu0 }
 0xc2c   : > { %v3179_v58 = vmul.f32 0.17677669, %v3019_v42  ;;  %v5042_v16 = vpop.f32.mrb[45].mxu0 }
 0xc2d   : > { %v3022_v61 = vpop.f32.mrb[46].mxu0 }
 0xc2e   : > { %v3180_v12 = vmul.f32 0.17677669, %v3022_v61  ;;  %v5043_v11 = vpop.f32.mrb[47].mxu0  ;;  %v3187_v30 = vsel %vm6967_vm4, %v3179_v58, -3.4028235e+38 }
 0xc2f   : > { %v3195_v34 = vsel %vm2178_vm5, %v3187_v30, -inf }
 0xc30   : > { %3196 = vmax.xlane.f32.xlu0 %v3195_v34  ;;  %v3188_v13 = vsel %vm6967_vm4, %v3180_v12, -3.4028235e+38 }
 0xc31   : > { %v3198_v44 = vsel %vm2178_vm5, %v3188_v13, -inf }
 0xc32   : > { %3199 = vmax.xlane.f32.xlu1 %v3198_v44 }
 0xc53   : > { %v3121_v17 = vpop.f32.mrb[48].mxu0 }
 0xc54   : > { %v5054_v38 = vpop.f32.mrb[49].mxu0 }
 0xc55   : > { %v3124_v33 = vpop.f32.mrb[50].mxu0  ;;  %v3183_v38 = vmul.f32 0.17677669, %v3121_v17 }
 0xc56   : > { %v3184_v28 = vmul.f32 0.17677669, %v3124_v33  ;;  %v5055_v48 = vpop.f32.mrb[51].mxu0 }
 0xc57   : > { %v7265_v5 = vpop.f32.mrb[72].mxu1 }
 0xc58   : > { %v5036_v59 = vpop.f32.mrb[73].mxu1  ;;  %v7269_v60 = vsel %vm6991_vm9, %v3184_v28, -3.4028235e+38 }
 0xc59   : > { %v7271_v36 = vpop.f32.mrb[74].mxu1  ;;  %v3210_v40 = vsel %vm2178_vm5, %v7269_v60, -inf }
 0xc5a   : > { %3211 = vmax.xlane.f32.xlu1 %v3210_v40  ;;  %v5037_v29 = vpop.f32.mrb[75].mxu1 }
 0xc5b   : > { %v3191_v29 = vsel %vm6991_vm9, %v3183_v38, -3.4028235e+38 }
 0xc5c   : > { %v3207_v17 = vsel %vm2178_vm5, %v3191_v29, -inf }
 0xc5f   : > { %v3070_v42 = vpop.f32.mrb[76].mxu1 }
 0xc60   : > { %v3181_v58 = vmul.f32 0.17677669, %v3070_v42  ;;  %v5048_v16 = vpop.f32.mrb[77].mxu1 }
 0xc61   : > { %v3073_v61 = vpop.f32.mrb[78].mxu1 }
 0xc62   : > { %v3182_v12 = vmul.f32 0.17677669, %v3073_v61  ;;  %v5049_v11 = vpop.f32.mrb[79].mxu1  ;;  %v3189_v34 = vsel %vm6972_vm6, %v3181_v58, -3.4028235e+38 }
 0xc63   : > { %v3201_v44 = vsel %vm2178_vm5, %v3189_v34, -inf }
 0xc64   : > { %3202 = vmax.xlane.f32.xlu0 %v3201_v44  ;;  %v3190_v33 = vsel %vm6972_vm6, %v3182_v12, -3.4028235e+38 }
 0xc65   : > { %v3204_v48 = vsel %vm2178_vm5, %v3190_v33, -inf }
 0xc67   : > { %v3172_v28 = vpop.f32.mrb[80].mxu1 }
 0xc68   : > { %v3185_v59 = vmul.f32 0.17677669, %v3172_v28  ;;  %3205 = vmax.xlane.f32.xlu0 %v3204_v48  ;;  %v5060_v40 = vpop.f32.mrb[81].mxu1 }
 0xc69   : > { %v3175_v42 = vpop.f32.mrb[82].mxu1 }
 0xc6a   : > { %v5061_v16 = vpop.f32.mrb[83].mxu1  ;;  %v3193_v58 = vsel %vm7003_vm10, %v3185_v59, -3.4028235e+38  ;;  %v3186_v12 = vmul.f32 0.17677669, %v3175_v42 }
 0xc6b   : > { %3342 = vrot.lane.b32.xlu1 %v6945_v15, %s6157_s28  ;;  %v3213_v61 = vsel %vm2178_vm5, %v3193_v58, -inf }
 0xc6c   : > { %3208 = vmax.xlane.f32.xlu0 %v3207_v17  ;;  %v7297_v11 = vsel %vm7003_vm10, %v3186_v12, -3.4028235e+38 }
 0xc6d   : > { %v3216_v44 = vsel %vm2178_vm5, %v7297_v11, -inf }
 0xc6f   : > { %3389 = vrot.lane.b32.xlu1 %v6959_v57, %s6157_s28 }
 0xc70   : > { %3214 = vmax.xlane.f32.xlu0 %v3213_v61 }
 0xc86   : > { %3295 = vrot.lane.b32.xlu0 %v6947_v47, %s6157_s28 }
 0xc93   : > { %3217 = vmax.xlane.f32.xlu1 %v3216_v44 }
 0xca4   : > { %3436 = vrot.lane.b32.xlu1 %v6957_v24, %s6157_s28 }
 0xcbd   : > { %v3197_v38 = vpop.xlane.xlu0 %3196 }
 0xcbe   : > { %v3219_v28 = vsub.f32 %v3187_v30, %v3197_v38 }
 0xcbf   : > { %v3200_v48 = vpop.xlane.xlu1 %3199 }
 0xcc0   : > { %v3227_v59 = vmul.f32 1.442695, %v3219_v28  ;;  %v3220_v40 = vsub.f32 %v3188_v13, %v3200_v48 }
 0xcc2   : > { %5579 = vpow2.f32 %v3227_v59  ;;  %v3229_v16 = vmul.f32 1.442695, %v3220_v40 }
 0xcc4   : > { %5581 = vpow2.f32 %v3229_v16 }
 0xccc   : > { %v7303_v42 = vpop.eup %5579 }
 0xccd   : > { %v3243_v17 = vsel %vm2178_vm5, %v7303_v42, 0.0 }
 0xcce   : > { %v7307_v61 = vpop.eup %5581  ;;  %3244 = vadd.xlane.f32.xlu0 %v3243_v17 }
 0xccf   : > { %v3246_v12 = vsel %vm2178_vm5, %v7307_v61, 0.0 }
 0xcd0   : > { %3247 = vadd.xlane.f32.xlu1 %v3246_v12 }
 0xce7   : > { %v3212_v44 = vpop.xlane.xlu1 %3211 }
 0xce8   : > { %v3224_v28 = vsub.f32 %v7269_v60, %v3212_v44  ;;  %v7749_v60 = vmov 0.0  }
 0xcea   : > { %v3237_v16 = vmul.f32 1.442695, %v3224_v28 }
 0xceb   : > { %v3343_v30 = vpop.permute.xlu1 %3342 }
 0xcec   : > { %5069 = vmatpush3.bf16.msra.mxu1 %v3343_v30 }
 0xced   : > { %5080 = vmatprep.subr.bf16.mxu1 %v7686_v43 }
 0xcf1   : > { %v3203_v13 = vpop.xlane.xlu0 %3202 }
 0xcf2   : > { %v3221_v38 = vsub.f32 %v3189_v34, %v3203_v13 }
 0xcf4   : > { %v3231_v48 = vmul.f32 1.442695, %v3221_v38 }
 0xcf5   : > { %v3206_v59 = vpop.xlane.xlu0 %3205 }
 0xcf6   : > { %5583 = vpow2.f32 %v3231_v48  ;;  %v3222_v40 = vsub.f32 %v3190_v33, %v3206_v59 }
 0xcf8   : > { %v3233_v37 = vmul.f32 1.442695, %v3222_v40 }
 0xcf9   : > { %v3209_v17 = vpop.xlane.xlu0 %3208 }
 0xcfa   : > { %5585 = vpow2.f32 %v3233_v37  ;;  %v3223_v14 = vsub.f32 %v3191_v29, %v3209_v17 }
 0xcfb   : > { %5587 = vpow2.f32 %v3237_v16 }
 0xcfc   : > { %v3235_v12 = vmul.f32 1.442695, %v3223_v14 }
 0xcfd   : > { %v3215_v25 = vpop.xlane.xlu0 %3214 }
 0xcfe   : > { %5589 = vpow2.f32 %v3235_v12  ;;  %v3225_v30 = vsub.f32 %v3193_v58, %v3215_v25 }
 0xd00   : > { %v5584_v41 = vpop.eup %5583  ;;  %v3239_v43 = vmul.f32 1.442695, %v3225_v30 }
 0xd01   : > { %v3296_v3 = vpop.permute.xlu0 %3295  ;;  %v3249_v34 = vsel %vm2178_vm5, %v5584_v41, 0.0 }
 0xd02   : > { %5591 = vpow2.f32 %v3239_v43  ;;  %3250 = vadd.xlane.f32.xlu0 %v3249_v34  ;;  %5063 = vmatpush3.bf16.msra.mxu0 %v3296_v3  ;;  %v3390_v3 = vpop.permute.xlu1 %3389 }
 0xd03   : > { %5074 = vmatprep.subr.bf16.mxu0 %v7749_v60 }
 0xd04   : > { %v5586_v33 = vpop.eup %5585 }
 0xd05   : > { %v3252_v44 = vsel %vm2178_vm5, %v5586_v33, 0.0  ;;  %v5588_v37 = vpop.eup %5587 }
 0xd06   : > { %3253 = vadd.xlane.f32.xlu1 %v3252_v44  ;;  %v3258_v25 = vsel %vm2178_vm5, %v5588_v37, 0.0 }
 0xd08   : > { %v5590_v29 = vpop.eup %5589 }
 0xd09   : > { %v3255_v14 = vsel %vm2178_vm5, %v5590_v29, 0.0 }
 0xd0a   : > { %3256 = vadd.xlane.f32.xlu0 %v3255_v14  ;;  %3259 = vadd.xlane.f32.xlu1 %v3258_v25 }
 0xd0c   : > { %v7318_v58 = vpop.eup %5591 }
 0xd0d   : > { %v3261_v43 = vsel %vm2178_vm5, %v7318_v58, 0.0 }
 0xd0e   : > { %3262 = vadd.xlane.f32.xlu0 %v3261_v43 }
 0xd1b   : > { %3536 = vrot.lane.b32.xlu1 %v6904_v63, %s6158_s22 }
 0xd20   : > { %v3218_v13 = vpop.xlane.xlu1 %3217 }
 0xd21   : > { %v3226_v38 = vsub.f32 %v7297_v11, %v3218_v13 }
 0xd23   : > { %v3241_v28 = vmul.f32 1.442695, %v3226_v38 }
 0xd24   : > { %3485 = vrot.lane.b32.xlu0 %v6908_v9, %s6158_s22 }
 0xd25   : > { %5593 = vpow2.f32 %v3241_v28 }
 0xd28   : > { %3483 = vrot.lane.b32.xlu0 %v6906_v8, %s6158_s22 }
 0xd2c   : > { %3534 = vrot.lane.b32.xlu0 %v6902_v6, %s6158_s22  ;;  %v3437_v6 = vpop.permute.xlu1 %3436 }
 0xd2f   : > { %v7333_v48 = vpop.eup %5593 }
 0xd30   : > { %3585 = vrot.lane.b32.xlu0 %v6928_v19, %s6158_s22  ;;  %v3264_v63 = vsel %vm2178_vm5, %v7333_v48, 0.0 }
 0xd3f   : > { %3265 = vadd.xlane.f32.xlu1 %v3264_v63 }
 0xd50   : > { %3587 = vrot.lane.b32.xlu1 %v6930_v27, %s6158_s22 }
 0xd54   : > { %3638 = vrot.lane.b32.xlu1 %v6926_v26, %s6158_s22 }
 0xd58   : > { %3636 = vrot.lane.b32.xlu1 %v6924_v51, %s6158_s22 }
 0xd5b   : > { %v3245_v8 = vpop.xlane.xlu0 %3244 }
 0xd5c   : > { %5595 = vrcp.f32 %v3245_v8 }
 0xd5d   : > { %v3248_v9 = vpop.xlane.xlu1 %3247 }
 0xd5e   : > { %5597 = vrcp.f32 %v3248_v9 }
 0xd66   : > { %v5596_v19 = vpop.eup %5595 }
 0xd67   : > { %v3268_v11 = vmul.f32 %v5596_v19, %v7303_v42 }
 0xd68   : > { %v5598_v59 = vpop.eup %5597 }
 0xd69   : > { %v3270_v40 = vmul.f32 %v5598_v59, %v7307_v61  ;;  %v3283_v27 = vsel %vm6967_vm4, %v3268_v11, 0.0 }
 0xd6b   : > { %v3284_v26 = vsel %vm6967_vm4, %v3270_v40, 0.0 }
 0xd6c   : > { %v3291_v16 = vpack.c.bf16 %v3284_v26, %v3283_v27 }
 0xd6e   : > { %5065 = vmatmul.mubr.msk.bf16.vlgmr.msra.gmra.mrb[52].mxu0 %vm2178_vm5, %v3291_v16 }
 0xd6f   : > { %5075 = vmatpush3.bf16.msra.mxu0 %v3390_v3  ;;  %5076 = vmatprep.mubr.msk.bf16.mxu0 %vm6155_vm0, %v7749_v60 }
 0xd70   : > { %5086 = vmatprep.subr.bf16.mxu0 %v7749_v60 }
 0xd8f   : > { %v3251_v51 = vpop.xlane.xlu0 %3250 }
 0xd90   : > { %5599 = vrcp.f32 %v3251_v51 }
 0xd93   : > { %v3254_v42 = vpop.xlane.xlu1 %3253 }
 0xd94   : > { %5601 = vrcp.f32 %v3254_v42 }
 0xd97   : > { %v3257_v61 = vpop.xlane.xlu0 %3256  ;;  %v3260_v17 = vpop.xlane.xlu1 %3259 }
 0xd98   : > { %5603 = vrcp.f32 %v3257_v61 }
 0xd99   : > { %5605 = vrcp.f32 %v3260_v17 }
 0xd9a   : > { %v5600_v12 = vpop.eup %5599 }
 0xd9b   : > { %v3272_v30 = vmul.f32 %v5600_v12, %v5584_v41  ;;  %v3263_v14 = vpop.xlane.xlu0 %3262 }
 0xd9c   : > { %5607 = vrcp.f32 %v3263_v14 }
 0xd9d   : > { %v3285_v25 = vsel %vm6972_vm6, %v3272_v30, 0.0 }
 0xd9e   : > { %v5602_v34 = vpop.eup %5601 }
 0xd9f   : > { %v3274_v44 = vmul.f32 %v5602_v34, %v5586_v33  ;;  %v3486_v33 = vpop.permute.xlu0 %3485 }
 0xda0   : > { %v3491_v19 = vsel %vm1949_vm1, %v3486_v33, 0 }
 0xda1   : > { %v3286_v43 = vsel %vm6972_vm6, %v3274_v44, 0.0 }
 0xda2   : > { %v5604_v3 = vpop.eup %5603  ;;  %v3292_v13 = vpack.c.bf16 %v3286_v43, %v3285_v25 }
 0xda3   : > { %v5606_v38 = vpop.eup %5605  ;;  %v3276_v28 = vmul.f32 %v5604_v3, %v5590_v29  ;;  %v3537_v29 = vpop.permute.xlu1 %3536 }
 0xda4   : > { %v3278_v63 = vmul.f32 %v5606_v38, %v5588_v37  ;;  %5071 = vmatmul.mubr.msk.bf16.vlgmr.msra.gmra.mrb[84].mxu1 %vm2178_vm5, %v3292_v13  ;;  %v3484_v37 = vpop.permute.xlu0 %3483  ;;  %v3542_v30 = vsel %vm1949_vm1, %v3537_v29, 0 }
 0xda5   : > { %5081 = vmatpush3.bf16.msra.mxu1 %v3437_v6  ;;  %v3287_v41 = vsel %vm6991_vm9, %v3276_v28, 0.0  ;;  %5082 = vmatprep.mubr.msk.bf16.mxu1 %vm6155_vm0, %v7749_v60 }
 0xda6   : > { %v3288_v8 = vsel %vm6991_vm9, %v3278_v63, 0.0  ;;  %5092 = vmatprep.subr.bf16.mxu1 %v7749_v60  ;;  %v5608_v27 = vpop.eup %5607 }
 0xda7   : > { %v3293_v9 = vpack.c.bf16 %v3288_v8, %v3287_v41  ;;  %v3280_v26 = vmul.f32 %v5608_v27, %v7318_v58 }
 0xda8   : > { %v3535_v40 = vpop.permute.xlu0 %3534 }
 0xda9   : > { %5077 = vmatmul.mubr.msk.bf16.vlgmr.msra.gmra.mrb[56].mxu0 %vm2178_vm5, %v3293_v9  ;;  %v3289_v61 = vsel %vm7003_vm10, %v3280_v26, 0.0 }
 0xdaa   : > { %5087 = vmatpush3.bf16.xpose.msra.mxu0 %v3491_v19  ;;  %5088 = vmatprep.mubr.msk.bf16.mxu0 %vm6155_vm0, %v7749_v60 }
 0xdab   : > { %5098 = vmatprep.subr.bf16.mxu0 %v7749_v60 }
 0xdac   : > { %v3586_v51 = vpop.permute.xlu0 %3585 }
 0xdb1   : > { %5089 = vmatmul.mubr.msk.bf16.vlgmr.msra.gmra.mrb[60].mxu0 %vm1949_vm1, %v3484_v37 }
 0xdb2   : > { %5100 = vmatprep.mubr.msk.bf16.mxu0 %vm6155_vm0, %v7749_v60 }
 0xdcc   : > { %v3266_v6 = vpop.xlane.xlu1 %3265 }
 0xdcd   : > { %5609 = vrcp.f32 %v3266_v6 }
 0xdd0   : > { %v3588_v11 = vpop.permute.xlu1 %3587 }
 0xdd1   : > { %v3593_v59 = vsel %vm1949_vm1, %v3588_v11, 0 }
 0xdd2   : > { %5099 = vmatpush3.bf16.xpose.msra.mxu0 %v3593_v59 }
 0xdd3   : > { %5110 = vmatprep.subr.bf16.mxu0 %v7749_v60 }
 0xdd4   : > { %v3639_v58 = vpop.permute.xlu1 %3638 }
 0xdd7   : > { %v5610_v16 = vpop.eup %5609 }
 0xdd8   : > { %v3282_v42 = vmul.f32 %v5610_v16, %v7333_v48  ;;  %v3644_v48 = vsel %vm1949_vm1, %v3639_v58, 0  ;;  %v3637_v34 = vpop.permute.xlu1 %3636 }
 0xdd9   : > { %5101 = vmatmul.mubr.msk.bf16.vlgmr.msra.gmra.mrb[64].mxu0 %vm1949_vm1, %v3586_v51 }
 0xdda   : > { %v3290_v17 = vsel %vm7003_vm10, %v3282_v42, 0.0  ;;  %5112 = vmatprep.mubr.msk.bf16.mxu0 %vm6155_vm0, %v7749_v60 }
 0xddb   : > { %v3294_v12 = vpack.c.bf16 %v3290_v17, %v3289_v61 }
 0xddd   : > { %5083 = vmatmul.mubr.msk.bf16.vlgmr.msra.gmra.mrb[88].mxu1 %vm2178_vm5, %v3294_v12 }
 0xdde   : > { %5093 = vmatpush3.bf16.xpose.msra.mxu1 %v3542_v30  ;;  %5094 = vmatprep.mubr.msk.bf16.mxu1 %vm6155_vm0, %v7749_v60 }
 0xddf   : > { %5104 = vmatprep.subr.bf16.mxu1 %v7749_v60 }
 0xde5   : > { %5095 = vmatmul.mubr.msk.bf16.vlgmr.msra.gmra.mrb[92].mxu1 %vm1949_vm1, %v3535_v40 }
 0xde6   : > { %5105 = vmatpush3.bf16.xpose.msra.mxu1 %v3644_v48  ;;  %5106 = vmatprep.mubr.msk.bf16.mxu1 %vm6155_vm0, %v7749_v60 }
 0xde7   : > { %5116 = vmatprep.subr.bf16.mxu1 %v7749_v60 }
 0xded   : > { %5107 = vmatmul.mubr.msk.bf16.vlgmr.msra.gmra.mrb[96].mxu1 %vm1949_vm1, %v3637_v34 }
 0xdee   : > { %5118 = vmatprep.mubr.msk.bf16.mxu1 %vm6155_vm0, %v7749_v60 }
 0xe41   : > { %v7397_v44 = vpop.f32.mrb[52].mxu0 }
 0xe42   : > { %v5066_v14 = vpop.f32.mrb[53].mxu0 }
 0xe43   : > { %v7399_v25 = vpop.f32.mrb[54].mxu0 }
 0xe44   : > { %v5067_v3 = vpop.f32.mrb[55].mxu0 }
 0xe77   : > { %v7403_v13 = vpop.f32.mrb[84].mxu1 }
 0xe78   : > { %v5072_v38 = vpop.f32.mrb[85].mxu1 }
 0xe79   : > { %v7405_v28 = vpop.f32.mrb[86].mxu1 }
 0xe7a   : > { %v5073_v41 = vpop.f32.mrb[87].mxu1 }
 0xe7c   : > { %v7409_v33 = vpop.f32.mrb[56].mxu0 }
 0xe7d   : > { %v5078_v8 = vpop.f32.mrb[57].mxu0 }
 0xe7e   : > { %v7411_v9 = vpop.f32.mrb[58].mxu0 }
 0xe7f   : > { %v5079_v37 = vpop.f32.mrb[59].mxu0 }
 0xe84   : > { %v3527_v29 = vpop.f32.mrb[60].mxu0 }
 0xe85   : > { %v3687_v6 = vmul.f32 0.17677669, %v3527_v29  ;;  %v5090_v11 = vpop.f32.mrb[61].mxu0 }
 0xe86   : > { %v3530_v59 = vpop.f32.mrb[62].mxu0 }
 0xe87   : > { %v3695_v40 = vsel %vm6967_vm4, %v3687_v6, -3.4028235e+38  ;;  %v3688_v27 = vmul.f32 0.17677669, %v3530_v59  ;;  %v5091_v26 = vpop.f32.mrb[63].mxu0 }
 0xe88   : > { %v3703_v16 = vsel %vm2178_vm5, %v3695_v40, -inf }
 0xe89   : > { %v3696_v51 = vsel %vm6967_vm4, %v3688_v27, -3.4028235e+38  ;;  %3704 = vmax.xlane.f32.xlu0 %v3703_v16 }
 0xe8a   : > { %v3706_v42 = vsel %vm2178_vm5, %v3696_v51, -inf }
 0xe8b   : > { %3707 = vmax.xlane.f32.xlu1 %v3706_v42 }
 0xeac   : > { %v3629_v61 = vpop.f32.mrb[64].mxu0 }
 0xead   : > { %v5102_v17 = vpop.f32.mrb[65].mxu0  ;;  %v3691_v42 = vmul.f32 0.17677669, %v3629_v61 }
 0xeae   : > { %v3632_v12 = vpop.f32.mrb[66].mxu0 }
 0xeaf   : > { %v3692_v30 = vmul.f32 0.17677669, %v3632_v12  ;;  %v5103_v58 = vpop.f32.mrb[67].mxu0 }
 0xeb0   : > { %v7421_v48 = vpop.f32.mrb[88].mxu1  ;;  %v3699_v58 = vsel %vm6991_vm9, %v3691_v42, -3.4028235e+38 }
 0xeb1   : > { %v3700_v34 = vsel %vm6991_vm9, %v3692_v30, -3.4028235e+38  ;;  %v5084_v14 = vpop.f32.mrb[89].mxu1 }
 0xeb2   : > { %v7425_v3 = vpop.f32.mrb[90].mxu1  ;;  %v3718_v38 = vsel %vm2178_vm5, %v3700_v34, -inf }
 0xeb3   : > { %3719 = vmax.xlane.f32.xlu1 %v3718_v38  ;;  %v5085_v8 = vpop.f32.mrb[91].mxu1 }
 0xeb8   : > { %v3578_v37 = vpop.f32.mrb[92].mxu1 }
 0xeb9   : > { %v3689_v29 = vmul.f32 0.17677669, %v3578_v37  ;;  %v5096_v6 = vpop.f32.mrb[93].mxu1 }
 0xeba   : > { %v3581_v11 = vpop.f32.mrb[94].mxu1  ;;  %v3715_v6 = vsel %vm2178_vm5, %v3699_v58, -inf }
 0xebb   : > { %v3697_v59 = vsel %vm6972_vm6, %v3689_v29, -3.4028235e+38  ;;  %v3690_v27 = vmul.f32 0.17677669, %v3581_v11  ;;  %v5097_v26 = vpop.f32.mrb[95].mxu1 }
 0xebc   : > { %v3709_v16 = vsel %vm2178_vm5, %v3697_v59, -inf }
 0xebd   : > { %v3698_v17 = vsel %vm6972_vm6, %v3690_v27, -3.4028235e+38  ;;  %3710 = vmax.xlane.f32.xlu0 %v3709_v16 }
 0xebe   : > { %v3712_v30 = vsel %vm2178_vm5, %v3698_v17, -inf }
 0xec0   : > { %v3680_v12 = vpop.f32.mrb[96].mxu1 }
 0xec1   : > { %v3693_v14 = vmul.f32 0.17677669, %v3680_v12  ;;  %3713 = vmax.xlane.f32.xlu0 %v3712_v30  ;;  %v5108_v38 = vpop.f32.mrb[97].mxu1 }
 0xec2   : > { %v3683_v8 = vpop.f32.mrb[98].mxu1 }
 0xec3   : > { %v3694_v37 = vmul.f32 0.17677669, %v3683_v8  ;;  %v5109_v29 = vpop.f32.mrb[99].mxu1  ;;  %v3701_v61 = vsel %vm7003_vm10, %v3693_v14, -3.4028235e+38 }
 0xec4   : > { %v3721_v26 = vsel %vm2178_vm5, %v3701_v61, -inf }
 0xec5   : > { %v7443_v11 = vsel %vm7003_vm10, %v3694_v37, -3.4028235e+38  ;;  %3716 = vmax.xlane.f32.xlu0 %v3715_v6 }
 0xec6   : > { %v3724_v27 = vsel %vm2178_vm5, %v7443_v11, -inf }
 0xec7   : > { %3725 = vmax.xlane.f32.xlu1 %v3724_v27 }
 0xec9   : > { %3722 = vmax.xlane.f32.xlu0 %v3721_v26 }
 0xf16   : > { %v3705_v16 = vpop.xlane.xlu0 %3704 }
 0xf17   : > { %v3727_v42 = vsub.f32 %v3695_v40, %v3705_v16 }
 0xf18   : > { %v3708_v12 = vpop.xlane.xlu1 %3707 }
 0xf19   : > { %v3735_v30 = vmul.f32 1.442695, %v3727_v42  ;;  %v3728_v38 = vsub.f32 %v3696_v51, %v3708_v12 }
 0xf1b   : > { %5611 = vpow2.f32 %v3735_v30  ;;  %v3737_v8 = vmul.f32 1.442695, %v3728_v38 }
 0xf1d   : > { %5613 = vpow2.f32 %v3737_v8 }
 0xf25   : > { %v7448_v14 = vpop.eup %5611 }
 0xf26   : > { %v3751_v37 = vsel %vm2178_vm5, %v7448_v14, 0.0 }
 0xf27   : > { %v7452_v29 = vpop.eup %5613  ;;  %3752 = vadd.xlane.f32.xlu0 %v3751_v37 }
 0xf28   : > { %v3754_v6 = vsel %vm2178_vm5, %v7452_v29, 0.0 }
 0xf29   : > { %3755 = vadd.xlane.f32.xlu1 %v3754_v6 }
 0xf40   : > { %v3720_v27 = vpop.xlane.xlu1 %3719 }
 0xf41   : > { %v3732_v16 = vsub.f32 %v3700_v34, %v3720_v27 }
 0xf43   : > { %v3745_v30 = vmul.f32 1.442695, %v3732_v16 }
 0xf4a   : > { %v3711_v40 = vpop.xlane.xlu0 %3710 }
 0xf4b   : > { %v3729_v26 = vsub.f32 %v3697_v59, %v3711_v40  ;;  %v7751_v40 = vpack.i.bf16 %v7399_v25, %v7397_v44 }
 0xf4d   : > { %v3739_v51 = vmul.f32 1.442695, %v3729_v26 }
 0xf4e   : > { %v3714_v42 = vpop.xlane.xlu0 %3713 }
 0xf4f   : > { %5615 = vpow2.f32 %v3739_v51  ;;  %v3730_v12 = vsub.f32 %v3698_v17, %v3714_v42 }
 0xf51   : > { %v3741_v38 = vmul.f32 1.442695, %v3730_v12 }
 0xf52   : > { %v3717_v8 = vpop.xlane.xlu0 %3716 }
 0xf53   : > { %5617 = vpow2.f32 %v3741_v38  ;;  %v3731_v41 = vsub.f32 %v3699_v58, %v3717_v8 }
 0xf54   : > { %5619 = vpow2.f32 %v3745_v30 }
 0xf55   : > { %v3743_v19 = vmul.f32 1.442695, %v3731_v41 }
 0xf56   : > { %v3723_v37 = vpop.xlane.xlu0 %3722 }
 0xf57   : > { %5621 = vpow2.f32 %v3743_v19  ;;  %v3733_v63 = vsub.f32 %v3701_v61, %v3723_v37  ;;  %v3726_v61 = vpop.xlane.xlu1 %3725 }
 0xf58   : > { %v3734_v26 = vsub.f32 %v7443_v11, %v3726_v61 }
 0xf59   : > { %v5616_v43 = vpop.eup %5615  ;;  %v3747_v6 = vmul.f32 1.442695, %v3733_v63 }
 0xf5a   : > { %v3757_v4 = vsel %vm2178_vm5, %v5616_v43, 0.0 }
 0xf5b   : > { %5623 = vpow2.f32 %v3747_v6  ;;  %3758 = vadd.xlane.f32.xlu0 %v3757_v4  ;;  %v7750_v4 = vpack.i.bf16 %v7243_v18, %v7241_v10  ;;  %v7753_v10 = vpack.i.bf16 %v7249_v7, %v7247_v32  ;;  %v7754_v18 = vpack.i.bf16 %v7405_v28, %v7403_v13 }
 0xf5d   : > { %v5618_v34 = vpop.eup %5617 }
 0xf5e   : > { %v3760_v59 = vsel %vm2178_vm5, %v5618_v34, 0.0  ;;  %v7458_v17 = vpop.eup %5619 }
 0xf5f   : > { %3761 = vadd.xlane.f32.xlu1 %v3760_v59  ;;  %v3766_v41 = vsel %vm2178_vm5, %v7458_v17, 0.0 }
 0xf61   : > { %v5622_v27 = vpop.eup %5621 }
 0xf62   : > { %v3763_v58 = vsel %vm2178_vm5, %v5622_v27, 0.0 }
 0xf63   : > { %3764 = vadd.xlane.f32.xlu0 %v3763_v58  ;;  %3767 = vadd.xlane.f32.xlu1 %v3766_v41 }
 0xf65   : > { %v7463_v19 = vpop.eup %5623 }
 0xf66   : > { %v3769_v63 = vsel %vm2178_vm5, %v7463_v19, 0.0 }
 0xf67   : > { %3770 = vadd.xlane.f32.xlu0 %v3769_v63 }
 0xf74   : > { %3850 = vrot.lane.b32.xlu1 %v6945_v15, %s6158_s22  ;;  %v7752_v15 = vpack.i.bf16 %v7255_v54, %v7253_v53  ;;  %v7755_v53 = vpack.i.bf16 %v7271_v36, %v7265_v5 }
 0xf78   : > { %3897 = vrot.lane.b32.xlu1 %v6959_v57, %s6158_s22  ;;  %v3749_v57 = vmul.f32 1.442695, %v3734_v26 }
 0xf7a   : > { %5625 = vpow2.f32 %v3749_v57 }
 0xf7d   : > { %3803 = vrot.lane.b32.xlu0 %v6947_v47, %s6158_s22 }
 0xf81   : > { %5350 = vrot.lane.b32.xlu0 %v7750_v4, %s6158_s22 }
 0xf84   : > { %v5626_v47 = vpop.eup %5625 }
 0xf85   : > { %5360 = vrot.lane.b32.xlu0 %v7751_v40, %s6157_s28  ;;  %v3772_v16 = vsel %vm2178_vm5, %v5626_v47, 0.0 }
 0xf89   : > { %5370 = vrot.lane.b32.xlu0 %v7752_v15, %s6158_s22 }
 0xf9c   : > { %3773 = vadd.xlane.f32.xlu1 %v3772_v16 }
 0xfad   : > { %3944 = vrot.lane.b32.xlu1 %v6957_v24, %s6158_s22 }
 0xfb1   : > { %5355 = vrot.lane.b32.xlu1 %v7753_v10, %s6158_s22  ;;  %v5475_v10 = vld [vmem:[#allocation23] sm:$0xff]  }
 0xfb4   : > { %v3753_v44 = vpop.xlane.xlu0 %3752 }
 0xfb5   : > { %5365 = vrot.lane.b32.xlu1 %v7754_v18, %s6157_s28  ;;  %v5476_v18 = vld [vmem:[#allocation23 + $0x8] sm:$0xff]  }
 0xfb6   : > { %v3756_v54 = vpop.xlane.xlu1 %3755 }
 0xfb7   : > { %5627 = vrcp.f32 %v3756_v54  ;;  %v5480_v54 = vld [vmem:[#allocation23 + $0x28] sm:$0xff]  }
 0xfb8   : > { %5629 = vrcp.f32 %v3753_v44  ;;  %v5482_v44 = vld [vmem:[#allocation23 + $0x38] sm:$0xff]  }
 0xfb9   : > { %5375 = vrot.lane.b32.xlu1 %v7755_v53, %s6158_s22  ;;  %v5477_v53 = vld [vmem:[#allocation23 + $0x10] sm:$0xff]   ;;  %s4717_s22 = sshll.u32 %s7721_s5, 10 }
 0xfc1   : > { %v5628_v32 = vpop.eup %5627 }
 0xfc2   : > { %v5630_v51 = vpop.eup %5629  ;;  %v3778_v28 = vmul.f32 %v5628_v32, %v7452_v29 }
 0xfc3   : > { %v3776_v36 = vmul.f32 %v5630_v51, %v7448_v14 }
 0xfc4   : > { %v3792_v38 = vsel %vm6967_vm4, %v3778_v28, 0.0 }
 0xfc5   : > { %v3791_v6 = vsel %vm6967_vm4, %v3776_v36, 0.0 }
 0xfc6   : > { %v3799_v29 = vpack.c.bf16 %v3792_v38, %v3791_v6 }
 0xfe8   : > { %v3759_v24 = vpop.xlane.xlu0 %3758 }
 0xfe9   : > { %5631 = vrcp.f32 %v3759_v24 }
 0xfec   : > { %v3762_v25 = vpop.xlane.xlu1 %3761 }
 0xfed   : > { %5633 = vrcp.f32 %v3762_v25 }
 0xff0   : > { %v3765_v7 = vpop.xlane.xlu0 %3764  ;;  %v3768_v11 = vpop.xlane.xlu1 %3767 }
 0xff1   : > { %5635 = vrcp.f32 %v3765_v7 }
 0xff2   : > { %5637 = vrcp.f32 %v3768_v11 }
 0xff3   : > { %v5632_v13 = vpop.eup %5631 }
 0xff4   : > { %v3771_v42 = vpop.xlane.xlu0 %3770  ;;  %v3851_v5 = vpop.permute.xlu1 %3850  ;;  %v3780_v12 = vmul.f32 %v5632_v13, %v5616_v43 }
 0xff5   : > { %5117 = vmatpush3.bf16.msra.mxu1 %v3851_v5  ;;  %5639 = vrcp.f32 %v3771_v42 }
 0xff6   : > { %5128 = vmatprep.subr.bf16.mxu1 %v7749_v60  ;;  %v3793_v14 = vsel %vm6972_vm6, %v3780_v12, 0.0  ;;  %v7756_v12 = vpack.i.bf16 %v7411_v9, %v7409_v33  ;;  %v4256_v9 = vld [vmem:[%s843_s15 + $0x18] sm:$0xff] }
 0xff7   : > { %v5634_v30 = vpop.eup %5633 }
 0xff8   : > { %v3782_v8 = vmul.f32 %v5634_v30, %v5618_v34  ;;  %v3804_v37 = vpop.permute.xlu0 %3803  ;;  %v3898_v4 = vpop.permute.xlu1 %3897 }
 0xff9   : > { %5111 = vmatpush3.bf16.msra.mxu0 %v3804_v37 }
 0xffa   : > { %5122 = vmatprep.subr.bf16.mxu0 %v7749_v60  ;;  %v3794_v43 = vsel %vm6972_vm6, %v3782_v8, 0.0  ;;  %v7757_v8 = vpack.i.bf16 %v7425_v3, %v7421_v48  ;;  %v4258_v48 = vld [vmem:[%s843_s15 + $0x28] sm:$0xff] }
 0xffb   : > { %v5636_v59 = vpop.eup %5635  ;;  %v3800_v58 = vpack.c.bf16 %v3794_v43, %v3793_v14  ;;  %v4254_v3 = vld [vmem:[%s843_s15 + $0x8] sm:$0xff] }
 0xffc   : > { %v5638_v41 = vpop.eup %5637  ;;  %v3784_v63 = vmul.f32 %v5636_v59, %v5622_v27  ;;  %5113 = vmatmul.mubr.msk.bf16.vlgmr.msra.gmra.mrb[68].mxu0 %vm2178_vm5, %v3799_v29  ;;  %v4253_v29 = vld [vmem:[%s843_s15] sm:$0xff] }
 0xffd   : > { %v3786_v34 = vmul.f32 %v5638_v41, %v7458_v17  ;;  %5119 = vmatmul.mubr.msk.bf16.vlgmr.msra.gmra.mrb[100].mxu1 %vm2178_vm5, %v3800_v58  ;;  %5123 = vmatpush3.bf16.msra.mxu0 %v3898_v4  ;;  %v4260_v41 = vld [vmem:[%s843_s15 + $0x38] sm:$0xff]  ;;  %v4257_v4 = vld [vmem:[%s843_s15 + $0x20] sm:$0xff] }
 0xffe   : > { %5124 = vmatprep.mubr.msk.bf16.mxu0 %vm6155_vm0, %v7749_v60  ;;  %5130 = vmatprep.mubr.msk.bf16.mxu1 %vm6155_vm0, %v7749_v60  ;;  %v3795_v31 = vsel %vm6991_vm9, %v3784_v63, 0.0  ;;  %v4255_v63 = vld [vmem:[%s843_s15 + $0x10] sm:$0xff] }
 0xfff   : > { %v3796_v20 = vsel %vm6991_vm9, %v3786_v34, 0.0  ;;  %v5640_v40 = vpop.eup %5639  ;;  %5134 = vmatprep.subr.bf16.mxu0 %v5475_v10  ;;  %v4259_v34 = vld [vmem:[%s843_s15 + $0x30] sm:$0xff]  ;;  %s7761_s15 = sld [smem:[#allocation49_spill]] }
0x1000   : > { %v3801_v27 = vpack.c.bf16 %v3796_v20, %v3795_v31  ;;  %v3788_v26 = vmul.f32 %v5640_v40, %v7463_v19  ;;  %v5478_v19 = vld [vmem:[#allocation23 + $0x18] sm:$0xff]   ;;  %v5351_v31 = vpop.permute.xlu0 %5350 }
0x1001   : > { %v5352_v40 = vunpack.i.l.bf16 %v5351_v31 }
0x1002   : > { %v3797_v60 = vsel %vm7003_vm10, %v3788_v26, 0.0 }
0x1004   : > { %5125 = vmatmul.mubr.msk.bf16.vlgmr.msra.gmra.mrb[72].mxu0 %vm2178_vm5, %v3801_v27  ;;  %v5361_v27 = vpop.permute.xlu0 %5360 }
0x1005   : > { %5135 = vmatpush3.bf16.msra.mxu0 %v5475_v10  ;;  %s7603_s16 = scalar_lea.hbm %s7761_s15, %s4717_s22 }
0x1006   : > { %5136 = vmatprep.subr.bf16.mxu0 %v5476_v18 }
0x1008   : > { %v5371_v26 = vpop.permute.xlu0 %5370 }
0x1009   : > { %5137 = vmatpush3.bf16.msra.mxu0 %v5476_v18 }
0x100a   : > { %5138 = vmatprep.subr.bf16.mxu0 %v5477_v53 }
0x100d   : > { %5139 = vmatpush3.bf16.msra.mxu0 %v5477_v53 }
0x100e   : > { %5140 = vmatprep.subr.bf16.mxu0 %v5478_v19 }
0x1011   : > { %5141 = vmatpush3.bf16.msra.mxu0 %v5478_v19  ;;  %v4087_v19 = vsel %vm1949_vm1, %v7101_v35, %v5352_v40 }
0x1029   : > { %v3774_v17 = vpop.xlane.xlu1 %3773 }
0x102a   : > { %5641 = vrcp.f32 %v3774_v17 }
0x102d   : > { %v3945_v61 = vpop.permute.xlu1 %3944 }
0x102e   : > { %5129 = vmatpush3.bf16.msra.mxu1 %v3945_v61  ;;  %v5353_v61 = vunpack.i.h.bf16 %v5351_v31 }
0x1030   : > { %v4088_v53 = vsel %vm1949_vm1, %v7103_v49, %v5353_v61 }
0x1031   : > { %v5356_v20 = vpop.permute.xlu1 %5355 }
0x1034   : > { %v5642_v15 = vpop.eup %5641 }
0x1035   : > { %v3790_v57 = vmul.f32 %v5642_v15, %v5626_v47  ;;  %v5479_v47 = vld [vmem:[#allocation23 + $0x20] sm:$0xff]   ;;  %v5366_v17 = vpop.permute.xlu1 %5365  ;;  %v5363_v15 = vunpack.i.h.bf16 %v5361_v27 }
0x1036   : > { %5142 = vmatprep.subr.bf16.mxu0 %v5479_v47  ;;  %v5368_v10 = vunpack.i.h.bf16 %v5366_v17  ;;  %v5367_v18 = vunpack.i.l.bf16 %v5366_v17 }
0x1037   : > { %v3798_v46 = vsel %vm7003_vm10, %v3790_v57, 0.0  ;;  %5143 = vmatpush3.bf16.msra.mxu0 %v5479_v47  ;;  %v5362_v57 = vunpack.i.l.bf16 %v5361_v27 }
0x1038   : > { %v3802_v16 = vpack.c.bf16 %v3798_v46, %v3797_v60  ;;  %5144 = vmatprep.subr.bf16.mxu0 %v5480_v54  ;;  %v5358_v46 = vunpack.i.h.bf16 %v5356_v20 }
0x1039   : > { %v5376_v60 = vpop.permute.xlu1 %5375 }
0x103a   : > { %5131 = vmatmul.mubr.msk.bf16.vlgmr.msra.gmra.mrb[104].mxu1 %vm2178_vm5, %v3802_v16  ;;  %v5357_v16 = vunpack.i.l.bf16 %v5356_v20 }
0x103b   : > { %5145 = vmatpush3.bf16.msra.mxu0 %v5480_v54  ;;  %v4096_v54 = vsel %vm4095_vm11, %v4087_v19, %v5362_v57 }
0x103c   : > { %5146 = vmatprep.subr.bf16.mxu0 %v5481_v56 }
0x103f   : > { %5147 = vmatpush3.bf16.msra.mxu0 %v5481_v56  ;;  %v4097_v56 = vsel %vm4095_vm11, %v4088_v53, %v5363_v15 }
0x1040   : > { %5148 = vmatprep.subr.bf16.mxu0 %v5482_v44 }
0x1043   : > { %5149 = vmatpush3.bf16.msra.mxu0 %v5482_v44 }
0x10cf   : > { %v3843_v24 = vpop.f32.mrb[68].mxu0 }
0x10d0   : > { %v5114_v25 = vpop.f32.mrb[69].mxu0  ;;  %v3890_v32 = vpop.f32.mrb[100].mxu1 }
0x10d1   : > { %v3846_v7 = vpop.f32.mrb[70].mxu0  ;;  %v5120_v11 = vpop.f32.mrb[101].mxu1 }
0x10d2   : > { %v5379_v51 = vpack.i.bf16 %v3846_v7, %v3843_v24  ;;  %v5115_v13 = vpop.f32.mrb[71].mxu0  ;;  %v3893_v28 = vpop.f32.mrb[102].mxu1  ;;  %v4089_v7 = vsel %vm1949_vm1, %v7097_v62, %v5357_v16 }
0x10d3   : > { %v5389_v42 = vpack.i.bf16 %v3893_v28, %v3890_v32  ;;  %v5121_v5 = vpop.f32.mrb[103].mxu1  ;;  %v4090_v32 = vsel %vm1949_vm1, %v7099_v45, %v5358_v46  ;;  %v5373_v45 = vunpack.i.h.bf16 %v5371_v26 }
0x10d4   : > { %5380 = vrot.lane.b32.xlu0 %v5379_v51, %s6156_s18  ;;  %v4098_v51 = vsel %vm4095_vm11, %v4089_v7, %v5367_v18  ;;  %v4099_v35 = vsel %vm4095_vm11, %v4090_v32, %v5368_v10 }
0x10d5   : > { %5390 = vrot.lane.b32.xlu1 %v5389_v42, %s6156_s18 }
0x10d7   : > { %v3937_v36 = vpop.f32.mrb[72].mxu0 }
0x10d8   : > { %5385 = vrot.lane.b32.xlu0 %v7756_v12, %s6157_s28  ;;  %v5126_v30 = vpop.f32.mrb[73].mxu0 }
0x10d9   : > { %v3940_v38 = vpop.f32.mrb[74].mxu0  ;;  %5395 = vrot.lane.b32.xlu1 %v7757_v8, %s6157_s28  ;;  %v5372_v30 = vunpack.i.l.bf16 %v5371_v26 }
0x10da   : > { %v5399_v37 = vpack.i.bf16 %v3940_v38, %v3937_v36  ;;  %v5127_v6 = vpop.f32.mrb[75].mxu0 }
0x10db   : > { %v4092_v6 = vsel %vm1949_vm1, %v7107_v52, %v5373_v45 }
0x10dc   : > { %5400 = vrot.lane.b32.xlu0 %v5399_v37, %s6156_s18 }
0x10e0   : > { %4263 = vperm.xlu0 %5409, %v4253_v29   ;;  %v4091_v29 = vsel %vm1949_vm1, %v7105_v50, %v5372_v30 }
0x10e4   : > { %4278 = vperm.xlu0 %5409, %v4256_v9  }
0x10e8   : > { %4288 = vperm.xlu0 %5409, %v4258_v48  }
0x10ec   : > { %4298 = vperm.xlu0 %5409, %v4260_v41   ;;  %v5378_v41 = vunpack.i.h.bf16 %v5376_v60 }
0x10ee   : > { %v4094_v50 = vsel %vm1949_vm1, %v7119_v22, %v5378_v41  ;;  %v4698_v22 = vld [vmem:[%s7759_s3] ss:$0 sm:$0xff]  ;;  %s6159_s3 = smov [#allocation25]  }
0x110d   : > { %v3984_v33 = vpop.f32.mrb[104].mxu1 }
0x110e   : > { %v5132_v14 = vpop.f32.mrb[105].mxu1 }
0x110f   : > { %v3987_v43 = vpop.f32.mrb[106].mxu1 }
0x1110   : > { %v5404_v59 = vpack.i.bf16 %v3987_v43, %v3984_v33  ;;  %v5133_v58 = vpop.f32.mrb[107].mxu1 }
0x1112   : > { %5405 = vrot.lane.b32.xlu1 %v5404_v59, %s6156_s18  ;;  %s4595_s18 = sshll.u32 %s6650_s24, 6 }
0x1113   : > { %s7586_s28 = scalar_lea.vmem [#allocation25], %s4595_s18  ;;  %s6041_s18 = sshll.u32 %s6159_s3, 4  ;;  %s6042_s18 = int_to_ptr.vmem [resolvable:$false] %s6041_s18 }
0x1114   : > { %s4340_s27 = sshll.u32 %s7586_s28, 4  ;;  %s6043_s22 = scalar_lea.vmem %s6042_s18, 2048  ;;  %s7605_s27 = int_to_ptr.vmem [resolvable:$true] %s4340_s27 }
0x1115   : > { %s6037_s23 = scalar_lea.vmem %s7605_s27, 1024  ;;  %p6044_p9 = scmp.lt.s32.totalorder %s7605_s27, %s6042_s18 }
0x1116   : > { %4268 = vperm.xlu1 %5410, %v4254_v3   ;;  %p6038_p11 = scmp.ne.s32.totalorder %s7605_s27, %s6037_s23  ;;  %p6045_p7 = scmp.lt.s32.totalorder %s6043_s22, %s6037_s23 }
0x1118   : > { %p6039_p0 = pnand %p6038_p11, %p7763_p12  ;;  %p6046_p10 = por %p6045_p7, %p6044_p9 }
0x111a   : > { %4273 = vperm.xlu1 %5410, %v4255_v63   ;;  %v5377_v63 = vunpack.i.l.bf16 %v5376_v60  ;;  %p6040_p5 = pneg %p6039_p0 }
0x111c   : > { %v4093_v31 = vsel %vm1949_vm1, %v7115_v21, %v5377_v63  ;;  %p6047_p4 = pnand %p6046_p10, %p6040_p5 }
0x111e   : > { %4283 = vperm.xlu1 %5410, %v4257_v4  }
0x1122   : > { %4293 = vperm.xlu1 %5410, %v4259_v34  }
0x1146   : > { %v5381_v47 = vpop.permute.xlu0 %5380 }
0x1147   : > { %v5383_v44 = vunpack.i.h.bf16 %v5381_v47  ;;  %v5382_v24 = vunpack.i.l.bf16 %v5381_v47  ;;  %v5391_v25 = vpop.permute.xlu1 %5390 }
0x1148   : > { %v5393_v11 = vunpack.i.h.bf16 %v5391_v25  ;;  %v5392_v49 = vunpack.i.l.bf16 %v5391_v25 }
0x1149   : > { %v4105_v13 = vsel %vm4104_vm12, %v4096_v54, %v5382_v24  ;;  %v4106_v28 = vsel %vm4104_vm12, %v4097_v56, %v5383_v44 }
0x114a   : > { %v4108_v42 = vsel %vm4104_vm12, %v4099_v35, %v5393_v11  ;;  %v4107_v5 = vsel %vm4104_vm12, %v4098_v51, %v5392_v49  ;;  %v5386_v36 = vpop.permute.xlu0 %5385  ;;  %v4113_v12 = vpack.c.bf16 %v4106_v28, %v4105_v13 }
0x114b   : > { %v4114_v38 = vpack.c.bf16 %v4108_v42, %v4107_v5  ;;  %v5388_v62 = vunpack.i.h.bf16 %v5386_v36  ;;  %v5387_v8 = vunpack.i.l.bf16 %v5386_v36  ;;  %v5396_v3 = vpop.permute.xlu1 %5395 }
0x114c   : > { %5150 = vmatprep.mubr.bf16.mxu0 %v4113_v12  ;;  %v5398_v4 = vunpack.i.h.bf16 %v5396_v3  ;;  %v5397_v52 = vunpack.i.l.bf16 %v5396_v3 }
0x114d   : > { %5151 = vmatmul.mubr.bf16.vlgmr.msra.gmra.mrb[76].mxu0 %v4114_v38  ;;  %v4101_v14 = vsel %vm4095_vm11, %v4092_v6, %v5388_v62  ;;  %v4100_v43 = vsel %vm4095_vm11, %v4091_v29, %v5387_v8  ;;  %v7760_v29 = vld [vmem:[#allocation40_spill] sm:$0xff] }
0x114e   : > { %v5401_v37 = vpop.permute.xlu0 %5400  ;;  %v4103_v17 = vsel %vm4095_vm11, %v4094_v50, %v5398_v4  ;;  %v4102_v61 = vsel %vm4095_vm11, %v4093_v31, %v5397_v52 }
0x114f   : > { %v5403_v33 = vunpack.i.h.bf16 %v5401_v37  ;;  %v5402_v9 = vunpack.i.l.bf16 %v5401_v37 }
0x1151   : > { %v4109_v59 = vsel %vm4104_vm12, %v4100_v43, %v5402_v9  ;;  %v4110_v58 = vsel %vm4104_vm12, %v4101_v14, %v5403_v33  ;;  %v7762_v9 = vld [vmem:[#allocation39_spill] sm:$0xff] }
0x1152   : > { %v4115_v48 = vpack.c.bf16 %v4110_v58, %v4109_v59 }
0x1154   : > { %5154 = vmatprep.mubr.bf16.mxu0 %v4115_v48 }
0x115f   : > { %v4264_v60 = vpop.permute.xlu0 %4263 }
0x1163   : > { %v4279_v19 = vpop.permute.xlu0 %4278 }
0x1167   : > { %v4289_v35 = vpop.permute.xlu0 %4288 }
0x116b   : > { %v4299_v30 = vpop.permute.xlu0 %4298 }
0x1184   : > { %v5406_v34 = vpop.permute.xlu1 %5405 }
0x1185   : > { %v5408_v20 = vunpack.i.h.bf16 %v5406_v34  ;;  %v5407_v27 = vunpack.i.l.bf16 %v5406_v34 }
0x1187   : > { %v4111_v40 = vsel %vm4104_vm12, %v4102_v61, %v5407_v27  ;;  %v4112_v26 = vsel %vm4104_vm12, %v4103_v17, %v5408_v20 }
0x1188   : > { %v4116_v15 = vpack.c.bf16 %v4112_v26, %v4111_v40 }
0x118a   : > { %5155 = vmatmul.mubr.bf16.gmra.mrb[80].mxu0 %v4116_v15 }
0x1195   : > { %v4269_v57 = vpop.permute.xlu1 %4268 }
0x1199   : > { %v4274_v21 = vpop.permute.xlu1 %4273 }
0x1220   : > { %v5152_v46 = vpop.f32.mrb[76].mxu0 }
0x1221   : > { %v4231_v16 = vadd.f32 %v5152_v46, %v4698_v22  ;;  %v4222_v10 = vpop.f32.mrb[77].mxu0 }
0x1222   : > { %v4223_v18 = vadd.f32 %v4698_v22, %v4222_v10  ;;  %v5153_v53 = vpop.f32.mrb[78].mxu0 }
0x1223   : > { %v4234_v47 = vadd.f32 %v5153_v53, %v4698_v22  ;;  %v4303_v54 = vmul.f32 %v4274_v21, %v4231_v16  ;;  %v4225_v56 = vpop.f32.mrb[79].mxu0 }
0x1224   : > { %v4301_v44 = vmul.f32 %v4264_v60, %v4223_v18  ;;  %v4226_v24 = vadd.f32 %v4698_v22, %v4225_v56 }
0x1225   : > { %v4311_v25 = vadd.f32 %v4303_v54, %v6787_v0  ;;  %v4304_v32 = vmul.f32 %v4279_v19, %v4234_v47  ;;  %v4284_v0 = vpop.permute.xlu1 %4283 }
0x1226   : > { %v4309_v7 = vadd.f32 %v4301_v44, %v6779_v23  ;;  %v4302_v11 = vmul.f32 %v4269_v57, %v4226_v24 }
0x1227   : > { %4319 = vst [vmem:[%s7586_s28 + $0x10] sm:$0xff] %v4311_v25  ;;  %v4312_v49 = vadd.f32 %v4304_v32, %v6791_v2 }
0x1228   : > { %4317 = vst [vmem:[%s7586_s28] sm:$0xff] %v4309_v7  ;;  %v4310_v51 = vadd.f32 %v4302_v11, %v6783_v55 }
0x1229   : > { %4320 = vst [vmem:[%s7586_s28 + $0x18] sm:$0xff] %v4312_v49  ;;  %v4294_v42 = vpop.permute.xlu1 %4293 }
0x122a   : > { %4318 = vst [vmem:[%s7586_s28 + $0x8] sm:$0xff] %v4310_v51 }
0x125d   : > { %v5156_v23 = vpop.f32.mrb[80].mxu0 }
0x125e   : > { %v4247_v13 = vadd.f32 %v5156_v23, %v4698_v22  ;;  %v4238_v28 = vpop.f32.mrb[81].mxu0 }
0x125f   : > { %v4239_v5 = vadd.f32 %v4698_v22, %v4238_v28  ;;  %v5157_v36 = vpop.f32.mrb[82].mxu0 }
0x1260   : > { %v4307_v12 = vmul.f32 %v4294_v42, %v4247_v13  ;;  %v4250_v45 = vadd.f32 %v5157_v36, %v4698_v22  ;;  %v4241_v2 = vpop.f32.mrb[83].mxu0 }
0x1261   : > { %v4305_v55 = vmul.f32 %v4284_v0, %v4239_v5  ;;  %v4242_v38 = vadd.f32 %v4698_v22, %v4241_v2 }
0x1262   : > { %v4315_v62 = vadd.f32 %v4307_v12, %v6803_v39  ;;  %v4308_v8 = vmul.f32 %v4299_v30, %v4250_v45 }
0x1263   : > { %v4313_v37 = vadd.f32 %v4305_v55, %v6795_v1  ;;  %v4306_v6 = vmul.f32 %v4289_v35, %v4242_v38 }
0x1264   : > { %4323 = vst [vmem:[%s7586_s28 + $0x30] sm:$0xff] %v4315_v62  ;;  %v4316_v33 = vadd.f32 %v4308_v8, %v7760_v29 }
0x1265   : > { %4321 = vst [vmem:[%s7586_s28 + $0x20] sm:$0xff] %v4313_v37  ;;  %v4314_v39 = vadd.f32 %v4306_v6, %v7762_v9 }
0x1266   : > { %4324 = vst [vmem:[%s7586_s28 + $0x38] sm:$0xff] %v4316_v33 }
0x1267   : > { %4322 = vst [vmem:[%s7586_s28 + $0x28] sm:$0xff] %v4314_v39 }
0x1268   : > { %6050 = shalt.err (!%p6047_p4)
}
0x1269   : > { %s6051_s28 = scalar_lea.hbm %s7603_s16, 1024  ;;  %s6055_s3 = scalar_lea.hbm %s7761_s15, 2048 }
0x126a   : > { %p6052_p13 = scmp.ne.s32.totalorder %s7603_s16, %s6051_s28  ;;  %p6056_p2 = scmp.lt.u32.totalorder %s7603_s16, %s7761_s15 }
0x126b   : > { %p6057_p8 = scmp.lt.u32.totalorder %s6055_s3, %s6051_s28  ;;  %p6059_p11 = scmp.lt.u32.totalorder %s6051_s28, %s7603_s16 }
0x126c   : > { %p6053_p1 = pnand %p6052_p13, %p7763_p12 }
0x126d   : > { %p6058_p6 = por %p6057_p8, %p6056_p2 }
0x126e   : > { %p6054_p3 = pneg %p6053_p1 }
0x126f   : > { %p6060_p0 = por %p6059_p11, %p6058_p6 }
0x1271   : > { %p6061_p5 = pnand %p6060_p0, %p6054_p3 }
0x1273   : > { %6064 = shalt.err (!%p6061_p5)
}
0x1274   : > { %s6160_s23 = smov 128   ;;  %s6161_s22 = smov 8  }
0x1275   : > { %s7764_s1 = scalar_lea.sflag [#allocation4], %s6650_s24 }
0x1276   : > { %5212 = dma.vmem_to_hbm [thread:$0]  (%p7763_p12), %s7605_s27, 1024, %s7603_s16, %s7764_s1, %s6160_s23, %s6160_s23, %s6161_s22  }
0x1277 PF: > { %s7765_s26 = sld [smem:[#allocation35_spill]]  ;;  %p7766_p9 = scmp.ne.s32.totalorder %s7715_s30, 0 }
0x1278   : > { %p7767_p7 = scmp.ge.s32.totalorder %s6131_s21, 2 }
0x127a   : > { %p5259_p10 = pnand %p7767_p7, %p7766_p9 }
0x127d   : > { %s4355_s5 = sand.u32 1, %s7765_s26  }
0x127e   : > { %s4356_s28 = scalar_lea.sflag [#allocation4], %s4355_s5 }
0x127f   : > { %6114 = dma.done.wait (!%p5259_p10), %s4356_s28, 1024  }
0x1280   : > { %6116 = vsyncadd (!%p5259_p10), %s4356_s28, 4294966272  ;;  %s7768_s19 = sld [smem:[#allocation36_spill]]  ;;  %s7769_s3 = smov %s6577_s0 }
0x1281   : > { %p39_p4 = scmp.ge.s32.totalorder %s6577_s0, 4   ;;  %s7771_s30 = smov %s6127_s20 }
0x1282   : > { %s7772_s20 = smov %s6589_s29  ;;  %s7773_s21 = smov %s7769_s3 }
0x1283   :  { %41 = sbr.rel (!%p39_p4) target bundleno = 22 (0x16), region = 199 }
0x1286   : > { %s7770_s0 = smov %s7768_s19 }
0x128a   :  { %4361 = vsyncpa [#allocation3], 1 }
0x128b   :  { %4363 = vsyncpa [#allocation3 + $0x1], 1 }
0x128c   :  { %4364 = vsyncpa [#allocation6], 1 }
0x128d   :  { %4365 = vsyncpa [#allocation9], 1 }
0x128e   :  { %4366 = vsyncpa [#allocation12], 1 }
0x128f   :  { %4367 = vsyncpa [#allocation15], 1 }
0x1290   :  { %4368 = vsyncpa [#allocation18], 1 }
0x1291   :  { %4369 = vsyncpa [#allocation21], 1 }
0x1292   :  { %4370 = vsyncpa [#allocation24], 1 }
0x1293   :  { %4371 = vsyncpa [#allocation4], 1 }
0x1294   :  { %4373 = vsyncpa [#allocation4 + $0x1], 1 }

</bundles_post_ra>
